<compile_context>
chip_gen: v5e
topology: v5e:2x2
jax: 0.10.0
libtpu: 0.0.40
codegen_flags: <defaults>
</compile_context>

<pallas_src>
import math
import functools

import jax
import jax.numpy as jnp
from jax.experimental import pallas as pl
from jax.experimental.pallas import tpu as pltpu

FFN_HIDDEN = 256   # fixed by FFN(dim_q, [256, dim_q]) in the reference module
LN_EPS = 1e-5      # torch.nn.LayerNorm default
LANE = 128


def _round_up(n, m):
    return ((n + m - 1) // m) * m


# --------------------------- kernel ----------------------------------------
def _ln_padded(x, gamma, beta, true_dim):
    """LayerNorm over the last dim when x is zero-padded beyond `true_dim`.

    Uses E[x^2] - mu^2 so the zero padding drops out of the sums; gamma/beta are
    zero in the padded region so padded outputs stay exactly zero.
    """
    inv_n = 1.0 / true_dim
    mu = jnp.sum(x, axis=-1, keepdims=True) * inv_n
    var = jnp.sum(x * x, axis=-1, keepdims=True) * inv_n - mu * mu
    return (x - mu) * jax.lax.rsqrt(var + LN_EPS) * gamma + beta


def _decoder_kernel(true_dim_q, compute_dtype,
                    x_ref, kv_ref,
                    wq_ref, bq_ref, wk_ref, bk_ref, wv_ref, bv_ref,
                    g1_ref, be1_ref, w1_ref, b1_ref, w2_ref, b2_ref,
                    g2_ref, be2_ref,
                    o_ref):
    num_blocks, num_heads = wq_ref.shape[0], wq_ref.shape[1]
    approx = compute_dtype == jnp.bfloat16

    x = x_ref[0]                               # (Sq, DP)   float32
    kv = kv_ref[0].astype(compute_dtype)       # (Skv, DKVP)

    for l in range(num_blocks):                # static unroll over decoder blocks
        xc = x.astype(compute_dtype)

        # ---------------- cross attention --------------------------------
        ca = None
        for h in range(num_heads):             # static unroll over heads
            # head-major weights indexed on leading dims -> no lane slicing;
            # 1/sqrt(head_dim) already folded into wq/bq by the wrapper.
            q_h = jnp.dot(xc, wq_ref[l, h],
                          preferred_element_type=jnp.float32) + bq_ref[l, h]
            k_h = jnp.dot(kv, wk_ref[l, h],
                          preferred_element_type=jnp.float32) + bk_ref[l, h]
            v_h = jnp.dot(kv, wv_ref[l, h],
                          preferred_element_type=jnp.float32) + bv_ref[l, h]

            s = jax.lax.dot_general(
                q_h.astype(compute_dtype), k_h.astype(compute_dtype),
                (((1,), (1,)), ((), ())),
                preferred_element_type=jnp.float32)            # (Sq, Skv)
            s = s - jnp.max(s, axis=-1, keepdims=True)
            p = jnp.exp(s)
            p = p * pl.reciprocal(jnp.sum(p, axis=-1, keepdims=True),
                                  approx=approx)

            # V is embedded at this head's output columns of the padded feature
            # layout, so per-head outputs merge with a plain add (no concat).
            ca_h = jnp.dot(p.astype(compute_dtype), v_h.astype(compute_dtype),
                           preferred_element_type=jnp.float32)  # (Sq, DP)
            ca = ca_h if ca is None else ca + ca_h

        h1 = _ln_padded(x + ca, g1_ref[l], be1_ref[l], true_dim_q)

        # ---------------- FFN ---------------------------------------------
        f = jnp.dot(h1.astype(compute_dtype), w1_ref[l],
                    preferred_element_type=jnp.float32) + b1_ref[l]
        f = jnp.maximum(f, 0.0)
        f = jnp.dot(f.astype(compute_dtype), w2_ref[l],
                    preferred_element_type=jnp.float32) + b2_ref[l]

        x = _ln_padded(h1 + f, g2_ref[l], be2_ref[l], true_dim_q)

    o_ref[0] = x


# --------------------------- wrapper ----------------------------------------
def prepare_decoder_params(block_params, dim_q, dim_kv, num_heads, compute_dtype):
    """Pad / restructure per-block params into stacked, TPU-friendly arrays."""
    hd = dim_q // num_heads
    assert hd * num_heads == dim_q
    dp = _round_up(dim_q, LANE)
    dkvp = _round_up(dim_kv, LANE)
    scale = 1.0 / math.sqrt(hd)

    def pad_to(a, rows, cols, col_off=0):
        return jnp.pad(a, ((0, rows - a.shape[0]),
                           (col_off, cols - col_off - a.shape[1])))

    keys = ("wq", "bq", "wk", "bk", "wv", "bv",
            "g1", "be1", "w1", "b1", "w2", "b2", "g2", "be2")
    acc = {k: [] for k in keys}

    for p in block_params:
        wq_h, bq_h, wk_h, bk_h, wv_h, bv_h = [], [], [], [], [], []
        for h in range(num_heads):
            sl = slice(h * hd, (h + 1) * hd)
            wq_h.append(pad_to(p["wq"][:, sl] * scale, dp, dp))
            bq_h.append(pad_to(p["bq"][:, sl] * scale, 1, dp))
            wk_h.append(pad_to(p["wk"][:, sl], dkvp, dp))
            bk_h.append(pad_to(p["bk"][:, sl], 1, dp))
            # embed V at this head's output columns of the padded feature layout
            wv_h.append(pad_to(p["wv"][:, sl], dkvp, dp, col_off=h * hd))
            bv_h.append(pad_to(p["bv"][:, sl], 1, dp, col_off=h * hd))
        acc["wq"].append(jnp.stack(wq_h))
        acc["bq"].append(jnp.stack(bq_h))
        acc["wk"].append(jnp.stack(wk_h))
        acc["bk"].append(jnp.stack(bk_h))
        acc["wv"].append(jnp.stack(wv_h))
        acc["bv"].append(jnp.stack(bv_h))
        acc["g1"].append(pad_to(p["ln1_g"], 1, dp))
        acc["be1"].append(pad_to(p["ln1_b"], 1, dp))
        acc["w1"].append(pad_to(p["w1"], dp, FFN_HIDDEN))
        acc["b1"].append(p["b1"])
        acc["w2"].append(pad_to(p["w2"], FFN_HIDDEN, dp))
        acc["b2"].append(pad_to(p["b2"], 1, dp))
        acc["g2"].append(pad_to(p["ln2_g"], 1, dp))
        acc["be2"].append(pad_to(p["ln2_b"], 1, dp))

    stacked = {k: jnp.stack(v) for k, v in acc.items()}
    # only the MXU operands go to the (possibly bf16) compute dtype; biases and
    # LayerNorm params stay f32 and are added to f32 accumulations.
    for k in ("wq", "wk", "wv", "w1", "w2"):
        stacked[k] = stacked[k].astype(compute_dtype)
    return stacked, keys


def decoder_forward(text_features, gs_features, block_params, num_heads,
                    mask=None, compute_dtype=jnp.bfloat16):
    """Equivalent of Decoder.forward (lin_after_decode=False, mask=None)."""
    assert mask is None  # TODO(synk): mask semantics of Cross_MultiAttention unknown
    B, Sq, dim_q = text_features.shape
    _, Skv, dim_kv = gs_features.shape
    dp = _round_up(dim_q, LANE)
    dkvp = _round_up(dim_kv, LANE)

    params, keys = prepare_decoder_params(
        block_params, dim_q, dim_kv, num_heads, compute_dtype)
    weights = [params[k] for k in keys]

    x_pad = jnp.pad(text_features, ((0, 0), (0, 0), (0, dp - dim_q)))
    kv_pad = jnp.pad(gs_features, ((0, 0), (0, 0), (0, dkvp - dim_kv)))

    def full_spec(a):
        return pl.BlockSpec(a.shape, lambda b, nd=a.ndim: (0,) * nd)

    kernel = functools.partial(_decoder_kernel, dim_q, compute_dtype)
    out_pad = pl.pallas_call(
        kernel,
        out_shape=jax.ShapeDtypeStruct((B, Sq, dp), jnp.float32),
        grid=(B,),
        in_specs=[pl.BlockSpec((1, Sq, dp), lambda b: (b, 0, 0)),
                  pl.BlockSpec((1, Skv, dkvp), lambda b: (b, 0, 0))]
                 + [full_spec(w) for w in weights],
        out_specs=pl.BlockSpec((1, Sq, dp), lambda b: (b, 0, 0)),
        compiler_params=pltpu.CompilerParams(
            dimension_semantics=("parallel",)),
    )(x_pad, kv_pad, *weights)

    return out_pad[..., :dim_q]


# ------------------------- pure-JAX reference --------------------------------
def _layernorm_ref(x, gamma, beta):
    mu = jnp.mean(x, axis=-1, keepdims=True)
    var = jnp.mean((x - mu) ** 2, axis=-1, keepdims=True)
    return (x - mu) * jax.lax.rsqrt(var + LN_EPS) * gamma + beta


def _ref_block(x, kv, p, num_heads):
    q = x @ p["wq"] + p["bq"]
    k = kv @ p["wk"] + p["bk"]
    v = kv @ p["wv"] + p["bv"]
    B, Sq, Dq = q.shape
    Skv = k.shape[1]
    hd = Dq // num_heads
    qh = q.reshape(B, Sq, num_heads, hd).transpose(0, 2, 1, 3)
    kh = k.reshape(B, Skv, num_heads, hd).transpose(0, 2, 1, 3)
    vh = v.reshape(B, Skv, num_heads, hd).transpose(0, 2, 1, 3)
    s = jnp.einsum("bhqd,bhkd->bhqk", qh, kh) / math.sqrt(hd)
    a = jax.nn.softmax(s, axis=-1)
    ca = jnp.einsum("bhqk,bhkd->bhqd", a, vh).transpose(0, 2, 1, 3).reshape(B, Sq, Dq)
    h1 = _layernorm_ref(x + ca, p["ln1_g"], p["ln1_b"])
    f = jnp.maximum(h1 @ p["w1"] + p["b1"], 0.0) @ p["w2"] + p["b2"]
    return _layernorm_ref(h1 + f, p["ln2_g"], p["ln2_b"])


def decoder_ref(text, gs, block_params, num_heads):
    out = text
    for p in block_params:
        out = _ref_block(out, gs, p, num_heads)
    return out


# ------------------------- param init ----------------------------------------
def init_block_params(key, dim_q, dim_kv):
    ks = jax.random.split(key, 10)
    std = 0.02
    return {
        "wq": jax.random.normal(ks[0], (dim_q, dim_q), jnp.float32) * std,
        "bq": jax.random.normal(ks[1], (1, dim_q), jnp.float32) * std,
        "wk": jax.random.normal(ks[2], (dim_kv, dim_q), jnp.float32) * std,
        "bk": jax.random.normal(ks[3], (1, dim_q), jnp.float32) * std,
        "wv": jax.random.normal(ks[4], (dim_kv, dim_q), jnp.float32) * std,
        "bv": jax.random.normal(ks[5], (1, dim_q), jnp.float32) * std,
        "ln1_g": jnp.ones((1, dim_q), jnp.float32),
        "ln1_b": jnp.zeros((1, dim_q), jnp.float32),
        "w1": jax.random.normal(ks[6], (dim_q, FFN_HIDDEN), jnp.float32) * std,
        "b1": jax.random.normal(ks[7], (1, FFN_HIDDEN), jnp.float32) * std,
        "w2": jax.random.normal(ks[8], (FFN_HIDDEN, dim_q), jnp.float32) * std,
        "b2": jax.random.normal(ks[9], (1, dim_q), jnp.float32) * std,
        "ln2_g": jnp.ones((1, dim_q), jnp.float32),
        "ln2_b": jnp.zeros((1, dim_q), jnp.float32),
    }


if __name__ == "__main__":
    B, Sq, Skv = 2, 8, 16
    dim_q, dim_kv, num_heads, num_blocks = 32, 64, 4, 2

    key = jax.random.PRNGKey(0)
    k_text, k_gs, k_params = jax.random.split(key, 3)
    text_features = jax.random.normal(k_text, (B, Sq, dim_q), jnp.float32)
    gs_features = jax.random.normal(k_gs, (B, Skv, dim_kv), jnp.float32)

    block_params = [init_block_params(k, dim_q, dim_kv)
                    for k in jax.random.split(k_params, num_blocks)]

    ref = decoder_ref(text_features, gs_features, block_params, num_heads)

    # exact-math check: f32 MXU inputs, tight tolerance vs pure-JAX reference
    out_f32 = decoder_forward(text_features, gs_features, block_params, num_heads,
                              compute_dtype=jnp.float32)
    out_f32 = jax.block_until_ready(out_f32)
    assert out_f32.shape == (B, Sq, dim_q)
    assert jnp.allclose(out_f32, ref, atol=2e-4, rtol=2e-4), "f32 kernel mismatch"

    # fast path: bf16 MXU inputs, f32 accumulation / softmax / LayerNorm
    out_bf16 = decoder_forward(text_features, gs_features, block_params, num_heads,
                               compute_dtype=jnp.bfloat16)
    out_bf16 = jax.block_until_ready(out_bf16)
    assert out_bf16.shape == (B, Sq, dim_q)
    assert jnp.allclose(out_bf16, ref, atol=7.5e-2, rtol=7.5e-2), "bf16 kernel mismatch"

    print("KERNEL_OK")
</pallas_src>

<mosaic_0001>
module attributes {stable_mosaic.version = 11 : i64} {
  func.func @_decoder_kernel(%arg0: i32, %arg1: memref<1x8x128xf32, #tpu.memory_space<vmem>>, %arg2: memref<1x16x128xf32, #tpu.memory_space<vmem>>, %arg3: memref<2x4x128x128xf32, #tpu.memory_space<vmem>>, %arg4: memref<2x4x1x128xf32, #tpu.memory_space<vmem>>, %arg5: memref<2x4x128x128xf32, #tpu.memory_space<vmem>>, %arg6: memref<2x4x1x128xf32, #tpu.memory_space<vmem>>, %arg7: memref<2x4x128x128xf32, #tpu.memory_space<vmem>>, %arg8: memref<2x4x1x128xf32, #tpu.memory_space<vmem>>, %arg9: memref<2x1x128xf32, #tpu.memory_space<vmem>>, %arg10: memref<2x1x128xf32, #tpu.memory_space<vmem>>, %arg11: memref<2x128x256xf32, #tpu.memory_space<vmem>>, %arg12: memref<2x1x256xf32, #tpu.memory_space<vmem>>, %arg13: memref<2x256x128xf32, #tpu.memory_space<vmem>>, %arg14: memref<2x1x128xf32, #tpu.memory_space<vmem>>, %arg15: memref<2x1x128xf32, #tpu.memory_space<vmem>>, %arg16: memref<2x1x128xf32, #tpu.memory_space<vmem>>, %arg17: memref<1x8x128xf32, #tpu.memory_space<vmem>>) attributes {dimension_semantics = [#tpu.dimension_semantics<parallel>], iteration_bounds = array<i64: 2>, scalar_prefetch = 0 : i64, scratch_operands = 0 : i64, tpu.core_type = #tpu.core_type<tc>, window_params = [{transform_indices = @transform_0, window_bounds = array<i64: 1, 8, 128>}, {transform_indices = @transform_1, window_bounds = array<i64: 1, 16, 128>}, {pipeline_mode = #tpu.pipeline_mode<synchronous>, transform_indices = @transform_2, window_bounds = array<i64: 2, 4, 128, 128>}, {pipeline_mode = #tpu.pipeline_mode<synchronous>, transform_indices = @transform_3, window_bounds = array<i64: 2, 4, 1, 128>}, {pipeline_mode = #tpu.pipeline_mode<synchronous>, transform_indices = @transform_4, window_bounds = array<i64: 2, 4, 128, 128>}, {pipeline_mode = #tpu.pipeline_mode<synchronous>, transform_indices = @transform_5, window_bounds = array<i64: 2, 4, 1, 128>}, {pipeline_mode = #tpu.pipeline_mode<synchronous>, transform_indices = @transform_6, window_bounds = array<i64: 2, 4, 128, 128>}, {pipeline_mode = #tpu.pipeline_mode<synchronous>, transform_indices = @transform_7, window_bounds = array<i64: 2, 4, 1, 128>}, {pipeline_mode = #tpu.pipeline_mode<synchronous>, transform_indices = @transform_8, window_bounds = array<i64: 2, 1, 128>}, {pipeline_mode = #tpu.pipeline_mode<synchronous>, transform_indices = @transform_9, window_bounds = array<i64: 2, 1, 128>}, {pipeline_mode = #tpu.pipeline_mode<synchronous>, transform_indices = @transform_10, window_bounds = array<i64: 2, 128, 256>}, {pipeline_mode = #tpu.pipeline_mode<synchronous>, transform_indices = @transform_11, window_bounds = array<i64: 2, 1, 256>}, {pipeline_mode = #tpu.pipeline_mode<synchronous>, transform_indices = @transform_12, window_bounds = array<i64: 2, 256, 128>}, {pipeline_mode = #tpu.pipeline_mode<synchronous>, transform_indices = @transform_13, window_bounds = array<i64: 2, 1, 128>}, {pipeline_mode = #tpu.pipeline_mode<synchronous>, transform_indices = @transform_14, window_bounds = array<i64: 2, 1, 128>}, {pipeline_mode = #tpu.pipeline_mode<synchronous>, transform_indices = @transform_15, window_bounds = array<i64: 2, 1, 128>}, {transform_indices = @transform_16, window_bounds = array<i64: 1, 8, 128>}]} {
    %c0 = arith.constant 0 : index
    %c0_0 = arith.constant 0 : index
    %c0_1 = arith.constant 0 : index
    %0 = vector.load %arg1[%c0, %c0_0, %c0_1] : memref<1x8x128xf32, #tpu.memory_space<vmem>>, vector<1x8x128xf32>
    %1 = vector.shape_cast %0 : vector<1x8x128xf32> to vector<8x128xf32>
    %c0_2 = arith.constant 0 : index
    %c0_3 = arith.constant 0 : index
    %c0_4 = arith.constant 0 : index
    %2 = vector.load %arg2[%c0_2, %c0_3, %c0_4] : memref<1x16x128xf32, #tpu.memory_space<vmem>>, vector<1x16x128xf32>
    %3 = vector.shape_cast %2 : vector<1x16x128xf32> to vector<16x128xf32>
    %c0_5 = arith.constant 0 : index
    %c0_6 = arith.constant 0 : index
    %c0_7 = arith.constant 0 : index
    %c0_8 = arith.constant 0 : index
    %4 = vector.load %arg3[%c0_5, %c0_6, %c0_7, %c0_8] : memref<2x4x128x128xf32, #tpu.memory_space<vmem>>, vector<1x1x128x128xf32>
    %5 = vector.shape_cast %4 : vector<1x1x128x128xf32> to vector<128x128xf32>
    %cst = arith.constant dense<0.000000e+00> : vector<8x128xf32>
    %6 = tpu.matmul %1, %5, %cst {dimension_numbers = #tpu.dot_dimension_numbers<[1], [0], [0], [1], [0, 0, 1, 1], [], []>} : vector<8x128xf32>, vector<128x128xf32>, vector<8x128xf32> -> vector<8x128xf32>
    %c0_9 = arith.constant 0 : index
    %c0_10 = arith.constant 0 : index
    %c0_11 = arith.constant 0 : index
    %c0_12 = arith.constant 0 : index
    %7 = vector.load %arg4[%c0_9, %c0_10, %c0_11, %c0_12] : memref<2x4x1x128xf32, #tpu.memory_space<vmem>>, vector<1x1x1x128xf32>
    %8 = vector.shape_cast %7 : vector<1x1x1x128xf32> to vector<1x128xf32>
    %9 = vector.broadcast %8 : vector<1x128xf32> to vector<8x128xf32>
    %10 = arith.addf %6, %9 : vector<8x128xf32>
    %c0_13 = arith.constant 0 : index
    %c0_14 = arith.constant 0 : index
    %c0_15 = arith.constant 0 : index
    %c0_16 = arith.constant 0 : index
    %11 = vector.load %arg5[%c0_13, %c0_14, %c0_15, %c0_16] : memref<2x4x128x128xf32, #tpu.memory_space<vmem>>, vector<1x1x128x128xf32>
    %12 = vector.shape_cast %11 : vector<1x1x128x128xf32> to vector<128x128xf32>
    %cst_17 = arith.constant dense<0.000000e+00> : vector<16x128xf32>
    %13 = tpu.matmul %3, %12, %cst_17 {dimension_numbers = #tpu.dot_dimension_numbers<[1], [0], [0], [1], [0, 0, 1, 1], [], []>} : vector<16x128xf32>, vector<128x128xf32>, vector<16x128xf32> -> vector<16x128xf32>
    %c0_18 = arith.constant 0 : index
    %c0_19 = arith.constant 0 : index
    %c0_20 = arith.constant 0 : index
    %c0_21 = arith.constant 0 : index
    %14 = vector.load %arg6[%c0_18, %c0_19, %c0_20, %c0_21] : memref<2x4x1x128xf32, #tpu.memory_space<vmem>>, vector<1x1x1x128xf32>
    %15 = vector.shape_cast %14 : vector<1x1x1x128xf32> to vector<1x128xf32>
    %16 = vector.broadcast %15 : vector<1x128xf32> to vector<16x128xf32>
    %17 = arith.addf %13, %16 : vector<16x128xf32>
    %c0_22 = arith.constant 0 : index
    %c0_23 = arith.constant 0 : index
    %c0_24 = arith.constant 0 : index
    %c0_25 = arith.constant 0 : index
    %18 = vector.load %arg7[%c0_22, %c0_23, %c0_24, %c0_25] : memref<2x4x128x128xf32, #tpu.memory_space<vmem>>, vector<1x1x128x128xf32>
    %19 = vector.shape_cast %18 : vector<1x1x128x128xf32> to vector<128x128xf32>
    %cst_26 = arith.constant dense<0.000000e+00> : vector<16x128xf32>
    %20 = tpu.matmul %3, %19, %cst_26 {dimension_numbers = #tpu.dot_dimension_numbers<[1], [0], [0], [1], [0, 0, 1, 1], [], []>} : vector<16x128xf32>, vector<128x128xf32>, vector<16x128xf32> -> vector<16x128xf32>
    %c0_27 = arith.constant 0 : index
    %c0_28 = arith.constant 0 : index
    %c0_29 = arith.constant 0 : index
    %c0_30 = arith.constant 0 : index
    %21 = vector.load %arg8[%c0_27, %c0_28, %c0_29, %c0_30] : memref<2x4x1x128xf32, #tpu.memory_space<vmem>>, vector<1x1x1x128xf32>
    %22 = vector.shape_cast %21 : vector<1x1x1x128xf32> to vector<1x128xf32>
    %23 = vector.broadcast %22 : vector<1x128xf32> to vector<16x128xf32>
    %24 = arith.addf %20, %23 : vector<16x128xf32>
    %cst_31 = arith.constant dense<0.000000e+00> : vector<8x16xf32>
    %25 = tpu.matmul %10, %17, %cst_31 {dimension_numbers = #tpu.dot_dimension_numbers<[1], [1], [0], [0], [0, 0, 1, 0], [], []>} : vector<8x128xf32>, vector<16x128xf32>, vector<8x16xf32> -> vector<8x16xf32>
    %cst_32 = arith.constant dense<0xFF800000> : vector<8xf32>
    %26 = vector.multi_reduction <maximumf>, %25, %cst_32 [1] : vector<8x16xf32> to vector<8xf32>
    %27 = vector.shape_cast %26 : vector<8xf32> to vector<8x1xf32>
    %28 = vector.broadcast %27 : vector<8x1xf32> to vector<8x16xf32>
    %29 = arith.subf %25, %28 : vector<8x16xf32>
    %30 = math.exp %29 : vector<8x16xf32>
    %cst_33 = arith.constant dense<0.000000e+00> : vector<8xf32>
    %31 = vector.multi_reduction <add>, %30, %cst_33 [1] : vector<8x16xf32> to vector<8xf32>
    %32 = vector.shape_cast %31 : vector<8xf32> to vector<8x1xf32>
    %33 = tpu.reciprocal %32 : vector<8x1xf32> -> vector<8x1xf32>
    %34 = vector.broadcast %33 : vector<8x1xf32> to vector<8x16xf32>
    %35 = arith.mulf %30, %34 : vector<8x16xf32>
    %cst_34 = arith.constant dense<0.000000e+00> : vector<8x128xf32>
    %36 = tpu.matmul %35, %24, %cst_34 {dimension_numbers = #tpu.dot_dimension_numbers<[1], [0], [0], [1], [0, 0, 1, 1], [], []>} : vector<8x16xf32>, vector<16x128xf32>, vector<8x128xf32> -> vector<8x128xf32>
    %c0_35 = arith.constant 0 : index
    %c1 = arith.constant 1 : index
    %c0_36 = arith.constant 0 : index
    %c0_37 = arith.constant 0 : index
    %37 = vector.load %arg3[%c0_35, %c1, %c0_36, %c0_37] : memref<2x4x128x128xf32, #tpu.memory_space<vmem>>, vector<1x1x128x128xf32>
    %38 = vector.shape_cast %37 : vector<1x1x128x128xf32> to vector<128x128xf32>
    %cst_38 = arith.constant dense<0.000000e+00> : vector<8x128xf32>
    %39 = tpu.matmul %1, %38, %cst_38 {dimension_numbers = #tpu.dot_dimension_numbers<[1], [0], [0], [1], [0, 0, 1, 1], [], []>} : vector<8x128xf32>, vector<128x128xf32>, vector<8x128xf32> -> vector<8x128xf32>
    %c0_39 = arith.constant 0 : index
    %c1_40 = arith.constant 1 : index
    %c0_41 = arith.constant 0 : index
    %c0_42 = arith.constant 0 : index
    %40 = vector.load %arg4[%c0_39, %c1_40, %c0_41, %c0_42] : memref<2x4x1x128xf32, #tpu.memory_space<vmem>>, vector<1x1x1x128xf32>
    %41 = vector.shape_cast %40 : vector<1x1x1x128xf32> to vector<1x128xf32>
    %42 = vector.broadcast %41 : vector<1x128xf32> to vector<8x128xf32>
    %43 = arith.addf %39, %42 : vector<8x128xf32>
    %c0_43 = arith.constant 0 : index
    %c1_44 = arith.constant 1 : index
    %c0_45 = arith.constant 0 : index
    %c0_46 = arith.constant 0 : index
    %44 = vector.load %arg5[%c0_43, %c1_44, %c0_45, %c0_46] : memref<2x4x128x128xf32, #tpu.memory_space<vmem>>, vector<1x1x128x128xf32>
    %45 = vector.shape_cast %44 : vector<1x1x128x128xf32> to vector<128x128xf32>
    %cst_47 = arith.constant dense<0.000000e+00> : vector<16x128xf32>
    %46 = tpu.matmul %3, %45, %cst_47 {dimension_numbers = #tpu.dot_dimension_numbers<[1], [0], [0], [1], [0, 0, 1, 1], [], []>} : vector<16x128xf32>, vector<128x128xf32>, vector<16x128xf32> -> vector<16x128xf32>
    %c0_48 = arith.constant 0 : index
    %c1_49 = arith.constant 1 : index
    %c0_50 = arith.constant 0 : index
    %c0_51 = arith.constant 0 : index
    %47 = vector.load %arg6[%c0_48, %c1_49, %c0_50, %c0_51] : memref<2x4x1x128xf32, #tpu.memory_space<vmem>>, vector<1x1x1x128xf32>
    %48 = vector.shape_cast %47 : vector<1x1x1x128xf32> to vector<1x128xf32>
    %49 = vector.broadcast %48 : vector<1x128xf32> to vector<16x128xf32>
    %50 = arith.addf %46, %49 : vector<16x128xf32>
    %c0_52 = arith.constant 0 : index
    %c1_53 = arith.constant 1 : index
    %c0_54 = arith.constant 0 : index
    %c0_55 = arith.constant 0 : index
    %51 = vector.load %arg7[%c0_52, %c1_53, %c0_54, %c0_55] : memref<2x4x128x128xf32, #tpu.memory_space<vmem>>, vector<1x1x128x128xf32>
    %52 = vector.shape_cast %51 : vector<1x1x128x128xf32> to vector<128x128xf32>
    %cst_56 = arith.constant dense<0.000000e+00> : vector<16x128xf32>
    %53 = tpu.matmul %3, %52, %cst_56 {dimension_numbers = #tpu.dot_dimension_numbers<[1], [0], [0], [1], [0, 0, 1, 1], [], []>} : vector<16x128xf32>, vector<128x128xf32>, vector<16x128xf32> -> vector<16x128xf32>
    %c0_57 = arith.constant 0 : index
    %c1_58 = arith.constant 1 : index
    %c0_59 = arith.constant 0 : index
    %c0_60 = arith.constant 0 : index
    %54 = vector.load %arg8[%c0_57, %c1_58, %c0_59, %c0_60] : memref<2x4x1x128xf32, #tpu.memory_space<vmem>>, vector<1x1x1x128xf32>
    %55 = vector.shape_cast %54 : vector<1x1x1x128xf32> to vector<1x128xf32>
    %56 = vector.broadcast %55 : vector<1x128xf32> to vector<16x128xf32>
    %57 = arith.addf %53, %56 : vector<16x128xf32>
    %cst_61 = arith.constant dense<0.000000e+00> : vector<8x16xf32>
    %58 = tpu.matmul %43, %50, %cst_61 {dimension_numbers = #tpu.dot_dimension_numbers<[1], [1], [0], [0], [0, 0, 1, 0], [], []>} : vector<8x128xf32>, vector<16x128xf32>, vector<8x16xf32> -> vector<8x16xf32>
    %cst_62 = arith.constant dense<0xFF800000> : vector<8xf32>
    %59 = vector.multi_reduction <maximumf>, %58, %cst_62 [1] : vector<8x16xf32> to vector<8xf32>
    %60 = vector.shape_cast %59 : vector<8xf32> to vector<8x1xf32>
    %61 = vector.broadcast %60 : vector<8x1xf32> to vector<8x16xf32>
    %62 = arith.subf %58, %61 : vector<8x16xf32>
    %63 = math.exp %62 : vector<8x16xf32>
    %cst_63 = arith.constant dense<0.000000e+00> : vector<8xf32>
    %64 = vector.multi_reduction <add>, %63, %cst_63 [1] : vector<8x16xf32> to vector<8xf32>
    %65 = vector.shape_cast %64 : vector<8xf32> to vector<8x1xf32>
    %66 = tpu.reciprocal %65 : vector<8x1xf32> -> vector<8x1xf32>
    %67 = vector.broadcast %66 : vector<8x1xf32> to vector<8x16xf32>
    %68 = arith.mulf %63, %67 : vector<8x16xf32>
    %cst_64 = arith.constant dense<0.000000e+00> : vector<8x128xf32>
    %69 = tpu.matmul %68, %57, %cst_64 {dimension_numbers = #tpu.dot_dimension_numbers<[1], [0], [0], [1], [0, 0, 1, 1], [], []>} : vector<8x16xf32>, vector<16x128xf32>, vector<8x128xf32> -> vector<8x128xf32>
    %70 = arith.addf %36, %69 : vector<8x128xf32>
    %c0_65 = arith.constant 0 : index
    %c2 = arith.constant 2 : index
    %c0_66 = arith.constant 0 : index
    %c0_67 = arith.constant 0 : index
    %71 = vector.load %arg3[%c0_65, %c2, %c0_66, %c0_67] : memref<2x4x128x128xf32, #tpu.memory_space<vmem>>, vector<1x1x128x128xf32>
    %72 = vector.shape_cast %71 : vector<1x1x128x128xf32> to vector<128x128xf32>
    %cst_68 = arith.constant dense<0.000000e+00> : vector<8x128xf32>
    %73 = tpu.matmul %1, %72, %cst_68 {dimension_numbers = #tpu.dot_dimension_numbers<[1], [0], [0], [1], [0, 0, 1, 1], [], []>} : vector<8x128xf32>, vector<128x128xf32>, vector<8x128xf32> -> vector<8x128xf32>
    %c0_69 = arith.constant 0 : index
    %c2_70 = arith.constant 2 : index
    %c0_71 = arith.constant 0 : index
    %c0_72 = arith.constant 0 : index
    %74 = vector.load %arg4[%c0_69, %c2_70, %c0_71, %c0_72] : memref<2x4x1x128xf32, #tpu.memory_space<vmem>>, vector<1x1x1x128xf32>
    %75 = vector.shape_cast %74 : vector<1x1x1x128xf32> to vector<1x128xf32>
    %76 = vector.broadcast %75 : vector<1x128xf32> to vector<8x128xf32>
    %77 = arith.addf %73, %76 : vector<8x128xf32>
    %c0_73 = arith.constant 0 : index
    %c2_74 = arith.constant 2 : index
    %c0_75 = arith.constant 0 : index
    %c0_76 = arith.constant 0 : index
    %78 = vector.load %arg5[%c0_73, %c2_74, %c0_75, %c0_76] : memref<2x4x128x128xf32, #tpu.memory_space<vmem>>, vector<1x1x128x128xf32>
    %79 = vector.shape_cast %78 : vector<1x1x128x128xf32> to vector<128x128xf32>
    %cst_77 = arith.constant dense<0.000000e+00> : vector<16x128xf32>
    %80 = tpu.matmul %3, %79, %cst_77 {dimension_numbers = #tpu.dot_dimension_numbers<[1], [0], [0], [1], [0, 0, 1, 1], [], []>} : vector<16x128xf32>, vector<128x128xf32>, vector<16x128xf32> -> vector<16x128xf32>
    %c0_78 = arith.constant 0 : index
    %c2_79 = arith.constant 2 : index
    %c0_80 = arith.constant 0 : index
    %c0_81 = arith.constant 0 : index
    %81 = vector.load %arg6[%c0_78, %c2_79, %c0_80, %c0_81] : memref<2x4x1x128xf32, #tpu.memory_space<vmem>>, vector<1x1x1x128xf32>
    %82 = vector.shape_cast %81 : vector<1x1x1x128xf32> to vector<1x128xf32>
    %83 = vector.broadcast %82 : vector<1x128xf32> to vector<16x128xf32>
    %84 = arith.addf %80, %83 : vector<16x128xf32>
    %c0_82 = arith.constant 0 : index
    %c2_83 = arith.constant 2 : index
    %c0_84 = arith.constant 0 : index
    %c0_85 = arith.constant 0 : index
    %85 = vector.load %arg7[%c0_82, %c2_83, %c0_84, %c0_85] : memref<2x4x128x128xf32, #tpu.memory_space<vmem>>, vector<1x1x128x128xf32>
    %86 = vector.shape_cast %85 : vector<1x1x128x128xf32> to vector<128x128xf32>
    %cst_86 = arith.constant dense<0.000000e+00> : vector<16x128xf32>
    %87 = tpu.matmul %3, %86, %cst_86 {dimension_numbers = #tpu.dot_dimension_numbers<[1], [0], [0], [1], [0, 0, 1, 1], [], []>} : vector<16x128xf32>, vector<128x128xf32>, vector<16x128xf32> -> vector<16x128xf32>
    %c0_87 = arith.constant 0 : index
    %c2_88 = arith.constant 2 : index
    %c0_89 = arith.constant 0 : index
    %c0_90 = arith.constant 0 : index
    %88 = vector.load %arg8[%c0_87, %c2_88, %c0_89, %c0_90] : memref<2x4x1x128xf32, #tpu.memory_space<vmem>>, vector<1x1x1x128xf32>
    %89 = vector.shape_cast %88 : vector<1x1x1x128xf32> to vector<1x128xf32>
    %90 = vector.broadcast %89 : vector<1x128xf32> to vector<16x128xf32>
    %91 = arith.addf %87, %90 : vector<16x128xf32>
    %cst_91 = arith.constant dense<0.000000e+00> : vector<8x16xf32>
    %92 = tpu.matmul %77, %84, %cst_91 {dimension_numbers = #tpu.dot_dimension_numbers<[1], [1], [0], [0], [0, 0, 1, 0], [], []>} : vector<8x128xf32>, vector<16x128xf32>, vector<8x16xf32> -> vector<8x16xf32>
    %cst_92 = arith.constant dense<0xFF800000> : vector<8xf32>
    %93 = vector.multi_reduction <maximumf>, %92, %cst_92 [1] : vector<8x16xf32> to vector<8xf32>
    %94 = vector.shape_cast %93 : vector<8xf32> to vector<8x1xf32>
    %95 = vector.broadcast %94 : vector<8x1xf32> to vector<8x16xf32>
    %96 = arith.subf %92, %95 : vector<8x16xf32>
    %97 = math.exp %96 : vector<8x16xf32>
    %cst_93 = arith.constant dense<0.000000e+00> : vector<8xf32>
    %98 = vector.multi_reduction <add>, %97, %cst_93 [1] : vector<8x16xf32> to vector<8xf32>
    %99 = vector.shape_cast %98 : vector<8xf32> to vector<8x1xf32>
    %100 = tpu.reciprocal %99 : vector<8x1xf32> -> vector<8x1xf32>
    %101 = vector.broadcast %100 : vector<8x1xf32> to vector<8x16xf32>
    %102 = arith.mulf %97, %101 : vector<8x16xf32>
    %cst_94 = arith.constant dense<0.000000e+00> : vector<8x128xf32>
    %103 = tpu.matmul %102, %91, %cst_94 {dimension_numbers = #tpu.dot_dimension_numbers<[1], [0], [0], [1], [0, 0, 1, 1], [], []>} : vector<8x16xf32>, vector<16x128xf32>, vector<8x128xf32> -> vector<8x128xf32>
    %104 = arith.addf %70, %103 : vector<8x128xf32>
    %c0_95 = arith.constant 0 : index
    %c3 = arith.constant 3 : index
    %c0_96 = arith.constant 0 : index
    %c0_97 = arith.constant 0 : index
    %105 = vector.load %arg3[%c0_95, %c3, %c0_96, %c0_97] : memref<2x4x128x128xf32, #tpu.memory_space<vmem>>, vector<1x1x128x128xf32>
    %106 = vector.shape_cast %105 : vector<1x1x128x128xf32> to vector<128x128xf32>
    %cst_98 = arith.constant dense<0.000000e+00> : vector<8x128xf32>
    %107 = tpu.matmul %1, %106, %cst_98 {dimension_numbers = #tpu.dot_dimension_numbers<[1], [0], [0], [1], [0, 0, 1, 1], [], []>} : vector<8x128xf32>, vector<128x128xf32>, vector<8x128xf32> -> vector<8x128xf32>
    %c0_99 = arith.constant 0 : index
    %c3_100 = arith.constant 3 : index
    %c0_101 = arith.constant 0 : index
    %c0_102 = arith.constant 0 : index
    %108 = vector.load %arg4[%c0_99, %c3_100, %c0_101, %c0_102] : memref<2x4x1x128xf32, #tpu.memory_space<vmem>>, vector<1x1x1x128xf32>
    %109 = vector.shape_cast %108 : vector<1x1x1x128xf32> to vector<1x128xf32>
    %110 = vector.broadcast %109 : vector<1x128xf32> to vector<8x128xf32>
    %111 = arith.addf %107, %110 : vector<8x128xf32>
    %c0_103 = arith.constant 0 : index
    %c3_104 = arith.constant 3 : index
    %c0_105 = arith.constant 0 : index
    %c0_106 = arith.constant 0 : index
    %112 = vector.load %arg5[%c0_103, %c3_104, %c0_105, %c0_106] : memref<2x4x128x128xf32, #tpu.memory_space<vmem>>, vector<1x1x128x128xf32>
    %113 = vector.shape_cast %112 : vector<1x1x128x128xf32> to vector<128x128xf32>
    %cst_107 = arith.constant dense<0.000000e+00> : vector<16x128xf32>
    %114 = tpu.matmul %3, %113, %cst_107 {dimension_numbers = #tpu.dot_dimension_numbers<[1], [0], [0], [1], [0, 0, 1, 1], [], []>} : vector<16x128xf32>, vector<128x128xf32>, vector<16x128xf32> -> vector<16x128xf32>
    %c0_108 = arith.constant 0 : index
    %c3_109 = arith.constant 3 : index
    %c0_110 = arith.constant 0 : index
    %c0_111 = arith.constant 0 : index
    %115 = vector.load %arg6[%c0_108, %c3_109, %c0_110, %c0_111] : memref<2x4x1x128xf32, #tpu.memory_space<vmem>>, vector<1x1x1x128xf32>
    %116 = vector.shape_cast %115 : vector<1x1x1x128xf32> to vector<1x128xf32>
    %117 = vector.broadcast %116 : vector<1x128xf32> to vector<16x128xf32>
    %118 = arith.addf %114, %117 : vector<16x128xf32>
    %c0_112 = arith.constant 0 : index
    %c3_113 = arith.constant 3 : index
    %c0_114 = arith.constant 0 : index
    %c0_115 = arith.constant 0 : index
    %119 = vector.load %arg7[%c0_112, %c3_113, %c0_114, %c0_115] : memref<2x4x128x128xf32, #tpu.memory_space<vmem>>, vector<1x1x128x128xf32>
    %120 = vector.shape_cast %119 : vector<1x1x128x128xf32> to vector<128x128xf32>
    %cst_116 = arith.constant dense<0.000000e+00> : vector<16x128xf32>
    %121 = tpu.matmul %3, %120, %cst_116 {dimension_numbers = #tpu.dot_dimension_numbers<[1], [0], [0], [1], [0, 0, 1, 1], [], []>} : vector<16x128xf32>, vector<128x128xf32>, vector<16x128xf32> -> vector<16x128xf32>
    %c0_117 = arith.constant 0 : index
    %c3_118 = arith.constant 3 : index
    %c0_119 = arith.constant 0 : index
    %c0_120 = arith.constant 0 : index
    %122 = vector.load %arg8[%c0_117, %c3_118, %c0_119, %c0_120] : memref<2x4x1x128xf32, #tpu.memory_space<vmem>>, vector<1x1x1x128xf32>
    %123 = vector.shape_cast %122 : vector<1x1x1x128xf32> to vector<1x128xf32>
    %124 = vector.broadcast %123 : vector<1x128xf32> to vector<16x128xf32>
    %125 = arith.addf %121, %124 : vector<16x128xf32>
    %cst_121 = arith.constant dense<0.000000e+00> : vector<8x16xf32>
    %126 = tpu.matmul %111, %118, %cst_121 {dimension_numbers = #tpu.dot_dimension_numbers<[1], [1], [0], [0], [0, 0, 1, 0], [], []>} : vector<8x128xf32>, vector<16x128xf32>, vector<8x16xf32> -> vector<8x16xf32>
    %cst_122 = arith.constant dense<0xFF800000> : vector<8xf32>
    %127 = vector.multi_reduction <maximumf>, %126, %cst_122 [1] : vector<8x16xf32> to vector<8xf32>
    %128 = vector.shape_cast %127 : vector<8xf32> to vector<8x1xf32>
    %129 = vector.broadcast %128 : vector<8x1xf32> to vector<8x16xf32>
    %130 = arith.subf %126, %129 : vector<8x16xf32>
    %131 = math.exp %130 : vector<8x16xf32>
    %cst_123 = arith.constant dense<0.000000e+00> : vector<8xf32>
    %132 = vector.multi_reduction <add>, %131, %cst_123 [1] : vector<8x16xf32> to vector<8xf32>
    %133 = vector.shape_cast %132 : vector<8xf32> to vector<8x1xf32>
    %134 = tpu.reciprocal %133 : vector<8x1xf32> -> vector<8x1xf32>
    %135 = vector.broadcast %134 : vector<8x1xf32> to vector<8x16xf32>
    %136 = arith.mulf %131, %135 : vector<8x16xf32>
    %cst_124 = arith.constant dense<0.000000e+00> : vector<8x128xf32>
    %137 = tpu.matmul %136, %125, %cst_124 {dimension_numbers = #tpu.dot_dimension_numbers<[1], [0], [0], [1], [0, 0, 1, 1], [], []>} : vector<8x16xf32>, vector<16x128xf32>, vector<8x128xf32> -> vector<8x128xf32>
    %138 = arith.addf %104, %137 : vector<8x128xf32>
    %139 = arith.addf %1, %138 : vector<8x128xf32>
    %c0_125 = arith.constant 0 : index
    %c0_126 = arith.constant 0 : index
    %c0_127 = arith.constant 0 : index
    %140 = vector.load %arg9[%c0_125, %c0_126, %c0_127] : memref<2x1x128xf32, #tpu.memory_space<vmem>>, vector<1x1x128xf32>
    %141 = vector.shape_cast %140 : vector<1x1x128xf32> to vector<1x128xf32>
    %c0_128 = arith.constant 0 : index
    %c0_129 = arith.constant 0 : index
    %c0_130 = arith.constant 0 : index
    %142 = vector.load %arg10[%c0_128, %c0_129, %c0_130] : memref<2x1x128xf32, #tpu.memory_space<vmem>>, vector<1x1x128xf32>
    %143 = vector.shape_cast %142 : vector<1x1x128xf32> to vector<1x128xf32>
    %cst_131 = arith.constant dense<0.000000e+00> : vector<8xf32>
    %144 = vector.multi_reduction <add>, %139, %cst_131 [1] : vector<8x128xf32> to vector<8xf32>
    %145 = vector.shape_cast %144 : vector<8xf32> to vector<8x1xf32>
    %cst_132 = arith.constant 3.125000e-02 : f32
    %146 = vector.broadcast %cst_132 : f32 to vector<8x1xf32>
    %147 = arith.mulf %145, %146 : vector<8x1xf32>
    %148 = arith.mulf %139, %139 : vector<8x128xf32>
    %cst_133 = arith.constant dense<0.000000e+00> : vector<8xf32>
    %149 = vector.multi_reduction <add>, %148, %cst_133 [1] : vector<8x128xf32> to vector<8xf32>
    %150 = vector.shape_cast %149 : vector<8xf32> to vector<8x1xf32>
    %cst_134 = arith.constant 3.125000e-02 : f32
    %151 = vector.broadcast %cst_134 : f32 to vector<8x1xf32>
    %152 = arith.mulf %150, %151 : vector<8x1xf32>
    %153 = arith.mulf %147, %147 : vector<8x1xf32>
    %154 = arith.subf %152, %153 : vector<8x1xf32>
    %155 = vector.broadcast %147 : vector<8x1xf32> to vector<8x128xf32>
    %156 = arith.subf %139, %155 : vector<8x128xf32>
    %cst_135 = arith.constant 9.99999974E-6 : f32
    %157 = vector.broadcast %cst_135 : f32 to vector<8x1xf32>
    %158 = arith.addf %154, %157 : vector<8x1xf32>
    %159 = math.rsqrt %158 : vector<8x1xf32>
    %160 = vector.broadcast %159 : vector<8x1xf32> to vector<8x128xf32>
    %161 = arith.mulf %156, %160 : vector<8x128xf32>
    %162 = vector.broadcast %141 : vector<1x128xf32> to vector<8x128xf32>
    %163 = arith.mulf %161, %162 : vector<8x128xf32>
    %164 = vector.broadcast %143 : vector<1x128xf32> to vector<8x128xf32>
    %165 = arith.addf %163, %164 : vector<8x128xf32>
    %c0_136 = arith.constant 0 : index
    %c0_137 = arith.constant 0 : index
    %c0_138 = arith.constant 0 : index
    %166 = vector.load %arg11[%c0_136, %c0_137, %c0_138] : memref<2x128x256xf32, #tpu.memory_space<vmem>>, vector<1x128x256xf32>
    %167 = vector.shape_cast %166 : vector<1x128x256xf32> to vector<128x256xf32>
    %cst_139 = arith.constant dense<0.000000e+00> : vector<8x256xf32>
    %168 = tpu.matmul %165, %167, %cst_139 {dimension_numbers = #tpu.dot_dimension_numbers<[1], [0], [0], [1], [0, 0, 1, 1], [], []>} : vector<8x128xf32>, vector<128x256xf32>, vector<8x256xf32> -> vector<8x256xf32>
    %c0_140 = arith.constant 0 : index
    %c0_141 = arith.constant 0 : index
    %c0_142 = arith.constant 0 : index
    %169 = vector.load %arg12[%c0_140, %c0_141, %c0_142] : memref<2x1x256xf32, #tpu.memory_space<vmem>>, vector<1x1x256xf32>
    %170 = vector.shape_cast %169 : vector<1x1x256xf32> to vector<1x256xf32>
    %171 = vector.broadcast %170 : vector<1x256xf32> to vector<8x256xf32>
    %172 = arith.addf %168, %171 : vector<8x256xf32>
    %cst_143 = arith.constant 0.000000e+00 : f32
    %173 = vector.broadcast %cst_143 : f32 to vector<8x256xf32>
    %174 = arith.maximumf %172, %173 : vector<8x256xf32>
    %c0_144 = arith.constant 0 : index
    %c0_145 = arith.constant 0 : index
    %c0_146 = arith.constant 0 : index
    %175 = vector.load %arg13[%c0_144, %c0_145, %c0_146] : memref<2x256x128xf32, #tpu.memory_space<vmem>>, vector<1x256x128xf32>
    %176 = vector.shape_cast %175 : vector<1x256x128xf32> to vector<256x128xf32>
    %cst_147 = arith.constant dense<0.000000e+00> : vector<8x128xf32>
    %177 = tpu.matmul %174, %176, %cst_147 {dimension_numbers = #tpu.dot_dimension_numbers<[1], [0], [0], [1], [0, 0, 1, 1], [], []>} : vector<8x256xf32>, vector<256x128xf32>, vector<8x128xf32> -> vector<8x128xf32>
    %c0_148 = arith.constant 0 : index
    %c0_149 = arith.constant 0 : index
    %c0_150 = arith.constant 0 : index
    %178 = vector.load %arg14[%c0_148, %c0_149, %c0_150] : memref<2x1x128xf32, #tpu.memory_space<vmem>>, vector<1x1x128xf32>
    %179 = vector.shape_cast %178 : vector<1x1x128xf32> to vector<1x128xf32>
    %180 = vector.broadcast %179 : vector<1x128xf32> to vector<8x128xf32>
    %181 = arith.addf %177, %180 : vector<8x128xf32>
    %182 = arith.addf %165, %181 : vector<8x128xf32>
    %c0_151 = arith.constant 0 : index
    %c0_152 = arith.constant 0 : index
    %c0_153 = arith.constant 0 : index
    %183 = vector.load %arg15[%c0_151, %c0_152, %c0_153] : memref<2x1x128xf32, #tpu.memory_space<vmem>>, vector<1x1x128xf32>
    %184 = vector.shape_cast %183 : vector<1x1x128xf32> to vector<1x128xf32>
    %c0_154 = arith.constant 0 : index
    %c0_155 = arith.constant 0 : index
    %c0_156 = arith.constant 0 : index
    %185 = vector.load %arg16[%c0_154, %c0_155, %c0_156] : memref<2x1x128xf32, #tpu.memory_space<vmem>>, vector<1x1x128xf32>
    %186 = vector.shape_cast %185 : vector<1x1x128xf32> to vector<1x128xf32>
    %cst_157 = arith.constant dense<0.000000e+00> : vector<8xf32>
    %187 = vector.multi_reduction <add>, %182, %cst_157 [1] : vector<8x128xf32> to vector<8xf32>
    %188 = vector.shape_cast %187 : vector<8xf32> to vector<8x1xf32>
    %cst_158 = arith.constant 3.125000e-02 : f32
    %189 = vector.broadcast %cst_158 : f32 to vector<8x1xf32>
    %190 = arith.mulf %188, %189 : vector<8x1xf32>
    %191 = arith.mulf %182, %182 : vector<8x128xf32>
    %cst_159 = arith.constant dense<0.000000e+00> : vector<8xf32>
    %192 = vector.multi_reduction <add>, %191, %cst_159 [1] : vector<8x128xf32> to vector<8xf32>
    %193 = vector.shape_cast %192 : vector<8xf32> to vector<8x1xf32>
    %cst_160 = arith.constant 3.125000e-02 : f32
    %194 = vector.broadcast %cst_160 : f32 to vector<8x1xf32>
    %195 = arith.mulf %193, %194 : vector<8x1xf32>
    %196 = arith.mulf %190, %190 : vector<8x1xf32>
    %197 = arith.subf %195, %196 : vector<8x1xf32>
    %198 = vector.broadcast %190 : vector<8x1xf32> to vector<8x128xf32>
    %199 = arith.subf %182, %198 : vector<8x128xf32>
    %cst_161 = arith.constant 9.99999974E-6 : f32
    %200 = vector.broadcast %cst_161 : f32 to vector<8x1xf32>
    %201 = arith.addf %197, %200 : vector<8x1xf32>
    %202 = math.rsqrt %201 : vector<8x1xf32>
    %203 = vector.broadcast %202 : vector<8x1xf32> to vector<8x128xf32>
    %204 = arith.mulf %199, %203 : vector<8x128xf32>
    %205 = vector.broadcast %184 : vector<1x128xf32> to vector<8x128xf32>
    %206 = arith.mulf %204, %205 : vector<8x128xf32>
    %207 = vector.broadcast %186 : vector<1x128xf32> to vector<8x128xf32>
    %208 = arith.addf %206, %207 : vector<8x128xf32>
    %c1_162 = arith.constant 1 : index
    %c0_163 = arith.constant 0 : index
    %c0_164 = arith.constant 0 : index
    %c0_165 = arith.constant 0 : index
    %209 = vector.load %arg3[%c1_162, %c0_163, %c0_164, %c0_165] : memref<2x4x128x128xf32, #tpu.memory_space<vmem>>, vector<1x1x128x128xf32>
    %210 = vector.shape_cast %209 : vector<1x1x128x128xf32> to vector<128x128xf32>
    %cst_166 = arith.constant dense<0.000000e+00> : vector<8x128xf32>
    %211 = tpu.matmul %208, %210, %cst_166 {dimension_numbers = #tpu.dot_dimension_numbers<[1], [0], [0], [1], [0, 0, 1, 1], [], []>} : vector<8x128xf32>, vector<128x128xf32>, vector<8x128xf32> -> vector<8x128xf32>
    %c1_167 = arith.constant 1 : index
    %c0_168 = arith.constant 0 : index
    %c0_169 = arith.constant 0 : index
    %c0_170 = arith.constant 0 : index
    %212 = vector.load %arg4[%c1_167, %c0_168, %c0_169, %c0_170] : memref<2x4x1x128xf32, #tpu.memory_space<vmem>>, vector<1x1x1x128xf32>
    %213 = vector.shape_cast %212 : vector<1x1x1x128xf32> to vector<1x128xf32>
    %214 = vector.broadcast %213 : vector<1x128xf32> to vector<8x128xf32>
    %215 = arith.addf %211, %214 : vector<8x128xf32>
    %c1_171 = arith.constant 1 : index
    %c0_172 = arith.constant 0 : index
    %c0_173 = arith.constant 0 : index
    %c0_174 = arith.constant 0 : index
    %216 = vector.load %arg5[%c1_171, %c0_172, %c0_173, %c0_174] : memref<2x4x128x128xf32, #tpu.memory_space<vmem>>, vector<1x1x128x128xf32>
    %217 = vector.shape_cast %216 : vector<1x1x128x128xf32> to vector<128x128xf32>
    %cst_175 = arith.constant dense<0.000000e+00> : vector<16x128xf32>
    %218 = tpu.matmul %3, %217, %cst_175 {dimension_numbers = #tpu.dot_dimension_numbers<[1], [0], [0], [1], [0, 0, 1, 1], [], []>} : vector<16x128xf32>, vector<128x128xf32>, vector<16x128xf32> -> vector<16x128xf32>
    %c1_176 = arith.constant 1 : index
    %c0_177 = arith.constant 0 : index
    %c0_178 = arith.constant 0 : index
    %c0_179 = arith.constant 0 : index
    %219 = vector.load %arg6[%c1_176, %c0_177, %c0_178, %c0_179] : memref<2x4x1x128xf32, #tpu.memory_space<vmem>>, vector<1x1x1x128xf32>
    %220 = vector.shape_cast %219 : vector<1x1x1x128xf32> to vector<1x128xf32>
    %221 = vector.broadcast %220 : vector<1x128xf32> to vector<16x128xf32>
    %222 = arith.addf %218, %221 : vector<16x128xf32>
    %c1_180 = arith.constant 1 : index
    %c0_181 = arith.constant 0 : index
    %c0_182 = arith.constant 0 : index
    %c0_183 = arith.constant 0 : index
    %223 = vector.load %arg7[%c1_180, %c0_181, %c0_182, %c0_183] : memref<2x4x128x128xf32, #tpu.memory_space<vmem>>, vector<1x1x128x128xf32>
    %224 = vector.shape_cast %223 : vector<1x1x128x128xf32> to vector<128x128xf32>
    %cst_184 = arith.constant dense<0.000000e+00> : vector<16x128xf32>
    %225 = tpu.matmul %3, %224, %cst_184 {dimension_numbers = #tpu.dot_dimension_numbers<[1], [0], [0], [1], [0, 0, 1, 1], [], []>} : vector<16x128xf32>, vector<128x128xf32>, vector<16x128xf32> -> vector<16x128xf32>
    %c1_185 = arith.constant 1 : index
    %c0_186 = arith.constant 0 : index
    %c0_187 = arith.constant 0 : index
    %c0_188 = arith.constant 0 : index
    %226 = vector.load %arg8[%c1_185, %c0_186, %c0_187, %c0_188] : memref<2x4x1x128xf32, #tpu.memory_space<vmem>>, vector<1x1x1x128xf32>
    %227 = vector.shape_cast %226 : vector<1x1x1x128xf32> to vector<1x128xf32>
    %228 = vector.broadcast %227 : vector<1x128xf32> to vector<16x128xf32>
    %229 = arith.addf %225, %228 : vector<16x128xf32>
    %cst_189 = arith.constant dense<0.000000e+00> : vector<8x16xf32>
    %230 = tpu.matmul %215, %222, %cst_189 {dimension_numbers = #tpu.dot_dimension_numbers<[1], [1], [0], [0], [0, 0, 1, 0], [], []>} : vector<8x128xf32>, vector<16x128xf32>, vector<8x16xf32> -> vector<8x16xf32>
    %cst_190 = arith.constant dense<0xFF800000> : vector<8xf32>
    %231 = vector.multi_reduction <maximumf>, %230, %cst_190 [1] : vector<8x16xf32> to vector<8xf32>
    %232 = vector.shape_cast %231 : vector<8xf32> to vector<8x1xf32>
    %233 = vector.broadcast %232 : vector<8x1xf32> to vector<8x16xf32>
    %234 = arith.subf %230, %233 : vector<8x16xf32>
    %235 = math.exp %234 : vector<8x16xf32>
    %cst_191 = arith.constant dense<0.000000e+00> : vector<8xf32>
    %236 = vector.multi_reduction <add>, %235, %cst_191 [1] : vector<8x16xf32> to vector<8xf32>
    %237 = vector.shape_cast %236 : vector<8xf32> to vector<8x1xf32>
    %238 = tpu.reciprocal %237 : vector<8x1xf32> -> vector<8x1xf32>
    %239 = vector.broadcast %238 : vector<8x1xf32> to vector<8x16xf32>
    %240 = arith.mulf %235, %239 : vector<8x16xf32>
    %cst_192 = arith.constant dense<0.000000e+00> : vector<8x128xf32>
    %241 = tpu.matmul %240, %229, %cst_192 {dimension_numbers = #tpu.dot_dimension_numbers<[1], [0], [0], [1], [0, 0, 1, 1], [], []>} : vector<8x16xf32>, vector<16x128xf32>, vector<8x128xf32> -> vector<8x128xf32>
    %c1_193 = arith.constant 1 : index
    %c1_194 = arith.constant 1 : index
    %c0_195 = arith.constant 0 : index
    %c0_196 = arith.constant 0 : index
    %242 = vector.load %arg3[%c1_193, %c1_194, %c0_195, %c0_196] : memref<2x4x128x128xf32, #tpu.memory_space<vmem>>, vector<1x1x128x128xf32>
    %243 = vector.shape_cast %242 : vector<1x1x128x128xf32> to vector<128x128xf32>
    %cst_197 = arith.constant dense<0.000000e+00> : vector<8x128xf32>
    %244 = tpu.matmul %208, %243, %cst_197 {dimension_numbers = #tpu.dot_dimension_numbers<[1], [0], [0], [1], [0, 0, 1, 1], [], []>} : vector<8x128xf32>, vector<128x128xf32>, vector<8x128xf32> -> vector<8x128xf32>
    %c1_198 = arith.constant 1 : index
    %c1_199 = arith.constant 1 : index
    %c0_200 = arith.constant 0 : index
    %c0_201 = arith.constant 0 : index
    %245 = vector.load %arg4[%c1_198, %c1_199, %c0_200, %c0_201] : memref<2x4x1x128xf32, #tpu.memory_space<vmem>>, vector<1x1x1x128xf32>
    %246 = vector.shape_cast %245 : vector<1x1x1x128xf32> to vector<1x128xf32>
    %247 = vector.broadcast %246 : vector<1x128xf32> to vector<8x128xf32>
    %248 = arith.addf %244, %247 : vector<8x128xf32>
    %c1_202 = arith.constant 1 : index
    %c1_203 = arith.constant 1 : index
    %c0_204 = arith.constant 0 : index
    %c0_205 = arith.constant 0 : index
    %249 = vector.load %arg5[%c1_202, %c1_203, %c0_204, %c0_205] : memref<2x4x128x128xf32, #tpu.memory_space<vmem>>, vector<1x1x128x128xf32>
    %250 = vector.shape_cast %249 : vector<1x1x128x128xf32> to vector<128x128xf32>
    %cst_206 = arith.constant dense<0.000000e+00> : vector<16x128xf32>
    %251 = tpu.matmul %3, %250, %cst_206 {dimension_numbers = #tpu.dot_dimension_numbers<[1], [0], [0], [1], [0, 0, 1, 1], [], []>} : vector<16x128xf32>, vector<128x128xf32>, vector<16x128xf32> -> vector<16x128xf32>
    %c1_207 = arith.constant 1 : index
    %c1_208 = arith.constant 1 : index
    %c0_209 = arith.constant 0 : index
    %c0_210 = arith.constant 0 : index
    %252 = vector.load %arg6[%c1_207, %c1_208, %c0_209, %c0_210] : memref<2x4x1x128xf32, #tpu.memory_space<vmem>>, vector<1x1x1x128xf32>
    %253 = vector.shape_cast %252 : vector<1x1x1x128xf32> to vector<1x128xf32>
    %254 = vector.broadcast %253 : vector<1x128xf32> to vector<16x128xf32>
    %255 = arith.addf %251, %254 : vector<16x128xf32>
    %c1_211 = arith.constant 1 : index
    %c1_212 = arith.constant 1 : index
    %c0_213 = arith.constant 0 : index
    %c0_214 = arith.constant 0 : index
    %256 = vector.load %arg7[%c1_211, %c1_212, %c0_213, %c0_214] : memref<2x4x128x128xf32, #tpu.memory_space<vmem>>, vector<1x1x128x128xf32>
    %257 = vector.shape_cast %256 : vector<1x1x128x128xf32> to vector<128x128xf32>
    %cst_215 = arith.constant dense<0.000000e+00> : vector<16x128xf32>
    %258 = tpu.matmul %3, %257, %cst_215 {dimension_numbers = #tpu.dot_dimension_numbers<[1], [0], [0], [1], [0, 0, 1, 1], [], []>} : vector<16x128xf32>, vector<128x128xf32>, vector<16x128xf32> -> vector<16x128xf32>
    %c1_216 = arith.constant 1 : index
    %c1_217 = arith.constant 1 : index
    %c0_218 = arith.constant 0 : index
    %c0_219 = arith.constant 0 : index
    %259 = vector.load %arg8[%c1_216, %c1_217, %c0_218, %c0_219] : memref<2x4x1x128xf32, #tpu.memory_space<vmem>>, vector<1x1x1x128xf32>
    %260 = vector.shape_cast %259 : vector<1x1x1x128xf32> to vector<1x128xf32>
    %261 = vector.broadcast %260 : vector<1x128xf32> to vector<16x128xf32>
    %262 = arith.addf %258, %261 : vector<16x128xf32>
    %cst_220 = arith.constant dense<0.000000e+00> : vector<8x16xf32>
    %263 = tpu.matmul %248, %255, %cst_220 {dimension_numbers = #tpu.dot_dimension_numbers<[1], [1], [0], [0], [0, 0, 1, 0], [], []>} : vector<8x128xf32>, vector<16x128xf32>, vector<8x16xf32> -> vector<8x16xf32>
    %cst_221 = arith.constant dense<0xFF800000> : vector<8xf32>
    %264 = vector.multi_reduction <maximumf>, %263, %cst_221 [1] : vector<8x16xf32> to vector<8xf32>
    %265 = vector.shape_cast %264 : vector<8xf32> to vector<8x1xf32>
    %266 = vector.broadcast %265 : vector<8x1xf32> to vector<8x16xf32>
    %267 = arith.subf %263, %266 : vector<8x16xf32>
    %268 = math.exp %267 : vector<8x16xf32>
    %cst_222 = arith.constant dense<0.000000e+00> : vector<8xf32>
    %269 = vector.multi_reduction <add>, %268, %cst_222 [1] : vector<8x16xf32> to vector<8xf32>
    %270 = vector.shape_cast %269 : vector<8xf32> to vector<8x1xf32>
    %271 = tpu.reciprocal %270 : vector<8x1xf32> -> vector<8x1xf32>
    %272 = vector.broadcast %271 : vector<8x1xf32> to vector<8x16xf32>
    %273 = arith.mulf %268, %272 : vector<8x16xf32>
    %cst_223 = arith.constant dense<0.000000e+00> : vector<8x128xf32>
    %274 = tpu.matmul %273, %262, %cst_223 {dimension_numbers = #tpu.dot_dimension_numbers<[1], [0], [0], [1], [0, 0, 1, 1], [], []>} : vector<8x16xf32>, vector<16x128xf32>, vector<8x128xf32> -> vector<8x128xf32>
    %275 = arith.addf %241, %274 : vector<8x128xf32>
    %c1_224 = arith.constant 1 : index
    %c2_225 = arith.constant 2 : index
    %c0_226 = arith.constant 0 : index
    %c0_227 = arith.constant 0 : index
    %276 = vector.load %arg3[%c1_224, %c2_225, %c0_226, %c0_227] : memref<2x4x128x128xf32, #tpu.memory_space<vmem>>, vector<1x1x128x128xf32>
    %277 = vector.shape_cast %276 : vector<1x1x128x128xf32> to vector<128x128xf32>
    %cst_228 = arith.constant dense<0.000000e+00> : vector<8x128xf32>
    %278 = tpu.matmul %208, %277, %cst_228 {dimension_numbers = #tpu.dot_dimension_numbers<[1], [0], [0], [1], [0, 0, 1, 1], [], []>} : vector<8x128xf32>, vector<128x128xf32>, vector<8x128xf32> -> vector<8x128xf32>
    %c1_229 = arith.constant 1 : index
    %c2_230 = arith.constant 2 : index
    %c0_231 = arith.constant 0 : index
    %c0_232 = arith.constant 0 : index
    %279 = vector.load %arg4[%c1_229, %c2_230, %c0_231, %c0_232] : memref<2x4x1x128xf32, #tpu.memory_space<vmem>>, vector<1x1x1x128xf32>
    %280 = vector.shape_cast %279 : vector<1x1x1x128xf32> to vector<1x128xf32>
    %281 = vector.broadcast %280 : vector<1x128xf32> to vector<8x128xf32>
    %282 = arith.addf %278, %281 : vector<8x128xf32>
    %c1_233 = arith.constant 1 : index
    %c2_234 = arith.constant 2 : index
    %c0_235 = arith.constant 0 : index
    %c0_236 = arith.constant 0 : index
    %283 = vector.load %arg5[%c1_233, %c2_234, %c0_235, %c0_236] : memref<2x4x128x128xf32, #tpu.memory_space<vmem>>, vector<1x1x128x128xf32>
    %284 = vector.shape_cast %283 : vector<1x1x128x128xf32> to vector<128x128xf32>
    %cst_237 = arith.constant dense<0.000000e+00> : vector<16x128xf32>
    %285 = tpu.matmul %3, %284, %cst_237 {dimension_numbers = #tpu.dot_dimension_numbers<[1], [0], [0], [1], [0, 0, 1, 1], [], []>} : vector<16x128xf32>, vector<128x128xf32>, vector<16x128xf32> -> vector<16x128xf32>
    %c1_238 = arith.constant 1 : index
    %c2_239 = arith.constant 2 : index
    %c0_240 = arith.constant 0 : index
    %c0_241 = arith.constant 0 : index
    %286 = vector.load %arg6[%c1_238, %c2_239, %c0_240, %c0_241] : memref<2x4x1x128xf32, #tpu.memory_space<vmem>>, vector<1x1x1x128xf32>
    %287 = vector.shape_cast %286 : vector<1x1x1x128xf32> to vector<1x128xf32>
    %288 = vector.broadcast %287 : vector<1x128xf32> to vector<16x128xf32>
    %289 = arith.addf %285, %288 : vector<16x128xf32>
    %c1_242 = arith.constant 1 : index
    %c2_243 = arith.constant 2 : index
    %c0_244 = arith.constant 0 : index
    %c0_245 = arith.constant 0 : index
    %290 = vector.load %arg7[%c1_242, %c2_243, %c0_244, %c0_245] : memref<2x4x128x128xf32, #tpu.memory_space<vmem>>, vector<1x1x128x128xf32>
    %291 = vector.shape_cast %290 : vector<1x1x128x128xf32> to vector<128x128xf32>
    %cst_246 = arith.constant dense<0.000000e+00> : vector<16x128xf32>
    %292 = tpu.matmul %3, %291, %cst_246 {dimension_numbers = #tpu.dot_dimension_numbers<[1], [0], [0], [1], [0, 0, 1, 1], [], []>} : vector<16x128xf32>, vector<128x128xf32>, vector<16x128xf32> -> vector<16x128xf32>
    %c1_247 = arith.constant 1 : index
    %c2_248 = arith.constant 2 : index
    %c0_249 = arith.constant 0 : index
    %c0_250 = arith.constant 0 : index
    %293 = vector.load %arg8[%c1_247, %c2_248, %c0_249, %c0_250] : memref<2x4x1x128xf32, #tpu.memory_space<vmem>>, vector<1x1x1x128xf32>
    %294 = vector.shape_cast %293 : vector<1x1x1x128xf32> to vector<1x128xf32>
    %295 = vector.broadcast %294 : vector<1x128xf32> to vector<16x128xf32>
    %296 = arith.addf %292, %295 : vector<16x128xf32>
    %cst_251 = arith.constant dense<0.000000e+00> : vector<8x16xf32>
    %297 = tpu.matmul %282, %289, %cst_251 {dimension_numbers = #tpu.dot_dimension_numbers<[1], [1], [0], [0], [0, 0, 1, 0], [], []>} : vector<8x128xf32>, vector<16x128xf32>, vector<8x16xf32> -> vector<8x16xf32>
    %cst_252 = arith.constant dense<0xFF800000> : vector<8xf32>
    %298 = vector.multi_reduction <maximumf>, %297, %cst_252 [1] : vector<8x16xf32> to vector<8xf32>
    %299 = vector.shape_cast %298 : vector<8xf32> to vector<8x1xf32>
    %300 = vector.broadcast %299 : vector<8x1xf32> to vector<8x16xf32>
    %301 = arith.subf %297, %300 : vector<8x16xf32>
    %302 = math.exp %301 : vector<8x16xf32>
    %cst_253 = arith.constant dense<0.000000e+00> : vector<8xf32>
    %303 = vector.multi_reduction <add>, %302, %cst_253 [1] : vector<8x16xf32> to vector<8xf32>
    %304 = vector.shape_cast %303 : vector<8xf32> to vector<8x1xf32>
    %305 = tpu.reciprocal %304 : vector<8x1xf32> -> vector<8x1xf32>
    %306 = vector.broadcast %305 : vector<8x1xf32> to vector<8x16xf32>
    %307 = arith.mulf %302, %306 : vector<8x16xf32>
    %cst_254 = arith.constant dense<0.000000e+00> : vector<8x128xf32>
    %308 = tpu.matmul %307, %296, %cst_254 {dimension_numbers = #tpu.dot_dimension_numbers<[1], [0], [0], [1], [0, 0, 1, 1], [], []>} : vector<8x16xf32>, vector<16x128xf32>, vector<8x128xf32> -> vector<8x128xf32>
    %309 = arith.addf %275, %308 : vector<8x128xf32>
    %c1_255 = arith.constant 1 : index
    %c3_256 = arith.constant 3 : index
    %c0_257 = arith.constant 0 : index
    %c0_258 = arith.constant 0 : index
    %310 = vector.load %arg3[%c1_255, %c3_256, %c0_257, %c0_258] : memref<2x4x128x128xf32, #tpu.memory_space<vmem>>, vector<1x1x128x128xf32>
    %311 = vector.shape_cast %310 : vector<1x1x128x128xf32> to vector<128x128xf32>
    %cst_259 = arith.constant dense<0.000000e+00> : vector<8x128xf32>
    %312 = tpu.matmul %208, %311, %cst_259 {dimension_numbers = #tpu.dot_dimension_numbers<[1], [0], [0], [1], [0, 0, 1, 1], [], []>} : vector<8x128xf32>, vector<128x128xf32>, vector<8x128xf32> -> vector<8x128xf32>
    %c1_260 = arith.constant 1 : index
    %c3_261 = arith.constant 3 : index
    %c0_262 = arith.constant 0 : index
    %c0_263 = arith.constant 0 : index
    %313 = vector.load %arg4[%c1_260, %c3_261, %c0_262, %c0_263] : memref<2x4x1x128xf32, #tpu.memory_space<vmem>>, vector<1x1x1x128xf32>
    %314 = vector.shape_cast %313 : vector<1x1x1x128xf32> to vector<1x128xf32>
    %315 = vector.broadcast %314 : vector<1x128xf32> to vector<8x128xf32>
    %316 = arith.addf %312, %315 : vector<8x128xf32>
    %c1_264 = arith.constant 1 : index
    %c3_265 = arith.constant 3 : index
    %c0_266 = arith.constant 0 : index
    %c0_267 = arith.constant 0 : index
    %317 = vector.load %arg5[%c1_264, %c3_265, %c0_266, %c0_267] : memref<2x4x128x128xf32, #tpu.memory_space<vmem>>, vector<1x1x128x128xf32>
    %318 = vector.shape_cast %317 : vector<1x1x128x128xf32> to vector<128x128xf32>
    %cst_268 = arith.constant dense<0.000000e+00> : vector<16x128xf32>
    %319 = tpu.matmul %3, %318, %cst_268 {dimension_numbers = #tpu.dot_dimension_numbers<[1], [0], [0], [1], [0, 0, 1, 1], [], []>} : vector<16x128xf32>, vector<128x128xf32>, vector<16x128xf32> -> vector<16x128xf32>
    %c1_269 = arith.constant 1 : index
    %c3_270 = arith.constant 3 : index
    %c0_271 = arith.constant 0 : index
    %c0_272 = arith.constant 0 : index
    %320 = vector.load %arg6[%c1_269, %c3_270, %c0_271, %c0_272] : memref<2x4x1x128xf32, #tpu.memory_space<vmem>>, vector<1x1x1x128xf32>
    %321 = vector.shape_cast %320 : vector<1x1x1x128xf32> to vector<1x128xf32>
    %322 = vector.broadcast %321 : vector<1x128xf32> to vector<16x128xf32>
    %323 = arith.addf %319, %322 : vector<16x128xf32>
    %c1_273 = arith.constant 1 : index
    %c3_274 = arith.constant 3 : index
    %c0_275 = arith.constant 0 : index
    %c0_276 = arith.constant 0 : index
    %324 = vector.load %arg7[%c1_273, %c3_274, %c0_275, %c0_276] : memref<2x4x128x128xf32, #tpu.memory_space<vmem>>, vector<1x1x128x128xf32>
    %325 = vector.shape_cast %324 : vector<1x1x128x128xf32> to vector<128x128xf32>
    %cst_277 = arith.constant dense<0.000000e+00> : vector<16x128xf32>
    %326 = tpu.matmul %3, %325, %cst_277 {dimension_numbers = #tpu.dot_dimension_numbers<[1], [0], [0], [1], [0, 0, 1, 1], [], []>} : vector<16x128xf32>, vector<128x128xf32>, vector<16x128xf32> -> vector<16x128xf32>
    %c1_278 = arith.constant 1 : index
    %c3_279 = arith.constant 3 : index
    %c0_280 = arith.constant 0 : index
    %c0_281 = arith.constant 0 : index
    %327 = vector.load %arg8[%c1_278, %c3_279, %c0_280, %c0_281] : memref<2x4x1x128xf32, #tpu.memory_space<vmem>>, vector<1x1x1x128xf32>
    %328 = vector.shape_cast %327 : vector<1x1x1x128xf32> to vector<1x128xf32>
    %329 = vector.broadcast %328 : vector<1x128xf32> to vector<16x128xf32>
    %330 = arith.addf %326, %329 : vector<16x128xf32>
    %cst_282 = arith.constant dense<0.000000e+00> : vector<8x16xf32>
    %331 = tpu.matmul %316, %323, %cst_282 {dimension_numbers = #tpu.dot_dimension_numbers<[1], [1], [0], [0], [0, 0, 1, 0], [], []>} : vector<8x128xf32>, vector<16x128xf32>, vector<8x16xf32> -> vector<8x16xf32>
    %cst_283 = arith.constant dense<0xFF800000> : vector<8xf32>
    %332 = vector.multi_reduction <maximumf>, %331, %cst_283 [1] : vector<8x16xf32> to vector<8xf32>
    %333 = vector.shape_cast %332 : vector<8xf32> to vector<8x1xf32>
    %334 = vector.broadcast %333 : vector<8x1xf32> to vector<8x16xf32>
    %335 = arith.subf %331, %334 : vector<8x16xf32>
    %336 = math.exp %335 : vector<8x16xf32>
    %cst_284 = arith.constant dense<0.000000e+00> : vector<8xf32>
    %337 = vector.multi_reduction <add>, %336, %cst_284 [1] : vector<8x16xf32> to vector<8xf32>
    %338 = vector.shape_cast %337 : vector<8xf32> to vector<8x1xf32>
    %339 = tpu.reciprocal %338 : vector<8x1xf32> -> vector<8x1xf32>
    %340 = vector.broadcast %339 : vector<8x1xf32> to vector<8x16xf32>
    %341 = arith.mulf %336, %340 : vector<8x16xf32>
    %cst_285 = arith.constant dense<0.000000e+00> : vector<8x128xf32>
    %342 = tpu.matmul %341, %330, %cst_285 {dimension_numbers = #tpu.dot_dimension_numbers<[1], [0], [0], [1], [0, 0, 1, 1], [], []>} : vector<8x16xf32>, vector<16x128xf32>, vector<8x128xf32> -> vector<8x128xf32>
    %343 = arith.addf %309, %342 : vector<8x128xf32>
    %344 = arith.addf %208, %343 : vector<8x128xf32>
    %c1_286 = arith.constant 1 : index
    %c0_287 = arith.constant 0 : index
    %c0_288 = arith.constant 0 : index
    %345 = vector.load %arg9[%c1_286, %c0_287, %c0_288] : memref<2x1x128xf32, #tpu.memory_space<vmem>>, vector<1x1x128xf32>
    %346 = vector.shape_cast %345 : vector<1x1x128xf32> to vector<1x128xf32>
    %c1_289 = arith.constant 1 : index
    %c0_290 = arith.constant 0 : index
    %c0_291 = arith.constant 0 : index
    %347 = vector.load %arg10[%c1_289, %c0_290, %c0_291] : memref<2x1x128xf32, #tpu.memory_space<vmem>>, vector<1x1x128xf32>
    %348 = vector.shape_cast %347 : vector<1x1x128xf32> to vector<1x128xf32>
    %cst_292 = arith.constant dense<0.000000e+00> : vector<8xf32>
    %349 = vector.multi_reduction <add>, %344, %cst_292 [1] : vector<8x128xf32> to vector<8xf32>
    %350 = vector.shape_cast %349 : vector<8xf32> to vector<8x1xf32>
    %cst_293 = arith.constant 3.125000e-02 : f32
    %351 = vector.broadcast %cst_293 : f32 to vector<8x1xf32>
    %352 = arith.mulf %350, %351 : vector<8x1xf32>
    %353 = arith.mulf %344, %344 : vector<8x128xf32>
    %cst_294 = arith.constant dense<0.000000e+00> : vector<8xf32>
    %354 = vector.multi_reduction <add>, %353, %cst_294 [1] : vector<8x128xf32> to vector<8xf32>
    %355 = vector.shape_cast %354 : vector<8xf32> to vector<8x1xf32>
    %cst_295 = arith.constant 3.125000e-02 : f32
    %356 = vector.broadcast %cst_295 : f32 to vector<8x1xf32>
    %357 = arith.mulf %355, %356 : vector<8x1xf32>
    %358 = arith.mulf %352, %352 : vector<8x1xf32>
    %359 = arith.subf %357, %358 : vector<8x1xf32>
    %360 = vector.broadcast %352 : vector<8x1xf32> to vector<8x128xf32>
    %361 = arith.subf %344, %360 : vector<8x128xf32>
    %cst_296 = arith.constant 9.99999974E-6 : f32
    %362 = vector.broadcast %cst_296 : f32 to vector<8x1xf32>
    %363 = arith.addf %359, %362 : vector<8x1xf32>
    %364 = math.rsqrt %363 : vector<8x1xf32>
    %365 = vector.broadcast %364 : vector<8x1xf32> to vector<8x128xf32>
    %366 = arith.mulf %361, %365 : vector<8x128xf32>
    %367 = vector.broadcast %346 : vector<1x128xf32> to vector<8x128xf32>
    %368 = arith.mulf %366, %367 : vector<8x128xf32>
    %369 = vector.broadcast %348 : vector<1x128xf32> to vector<8x128xf32>
    %370 = arith.addf %368, %369 : vector<8x128xf32>
    %c1_297 = arith.constant 1 : index
    %c0_298 = arith.constant 0 : index
    %c0_299 = arith.constant 0 : index
    %371 = vector.load %arg11[%c1_297, %c0_298, %c0_299] : memref<2x128x256xf32, #tpu.memory_space<vmem>>, vector<1x128x256xf32>
    %372 = vector.shape_cast %371 : vector<1x128x256xf32> to vector<128x256xf32>
    %cst_300 = arith.constant dense<0.000000e+00> : vector<8x256xf32>
    %373 = tpu.matmul %370, %372, %cst_300 {dimension_numbers = #tpu.dot_dimension_numbers<[1], [0], [0], [1], [0, 0, 1, 1], [], []>} : vector<8x128xf32>, vector<128x256xf32>, vector<8x256xf32> -> vector<8x256xf32>
    %c1_301 = arith.constant 1 : index
    %c0_302 = arith.constant 0 : index
    %c0_303 = arith.constant 0 : index
    %374 = vector.load %arg12[%c1_301, %c0_302, %c0_303] : memref<2x1x256xf32, #tpu.memory_space<vmem>>, vector<1x1x256xf32>
    %375 = vector.shape_cast %374 : vector<1x1x256xf32> to vector<1x256xf32>
    %376 = vector.broadcast %375 : vector<1x256xf32> to vector<8x256xf32>
    %377 = arith.addf %373, %376 : vector<8x256xf32>
    %cst_304 = arith.constant 0.000000e+00 : f32
    %378 = vector.broadcast %cst_304 : f32 to vector<8x256xf32>
    %379 = arith.maximumf %377, %378 : vector<8x256xf32>
    %c1_305 = arith.constant 1 : index
    %c0_306 = arith.constant 0 : index
    %c0_307 = arith.constant 0 : index
    %380 = vector.load %arg13[%c1_305, %c0_306, %c0_307] : memref<2x256x128xf32, #tpu.memory_space<vmem>>, vector<1x256x128xf32>
    %381 = vector.shape_cast %380 : vector<1x256x128xf32> to vector<256x128xf32>
    %cst_308 = arith.constant dense<0.000000e+00> : vector<8x128xf32>
    %382 = tpu.matmul %379, %381, %cst_308 {dimension_numbers = #tpu.dot_dimension_numbers<[1], [0], [0], [1], [0, 0, 1, 1], [], []>} : vector<8x256xf32>, vector<256x128xf32>, vector<8x128xf32> -> vector<8x128xf32>
    %c1_309 = arith.constant 1 : index
    %c0_310 = arith.constant 0 : index
    %c0_311 = arith.constant 0 : index
    %383 = vector.load %arg14[%c1_309, %c0_310, %c0_311] : memref<2x1x128xf32, #tpu.memory_space<vmem>>, vector<1x1x128xf32>
    %384 = vector.shape_cast %383 : vector<1x1x128xf32> to vector<1x128xf32>
    %385 = vector.broadcast %384 : vector<1x128xf32> to vector<8x128xf32>
    %386 = arith.addf %382, %385 : vector<8x128xf32>
    %387 = arith.addf %370, %386 : vector<8x128xf32>
    %c1_312 = arith.constant 1 : index
    %c0_313 = arith.constant 0 : index
    %c0_314 = arith.constant 0 : index
    %388 = vector.load %arg15[%c1_312, %c0_313, %c0_314] : memref<2x1x128xf32, #tpu.memory_space<vmem>>, vector<1x1x128xf32>
    %389 = vector.shape_cast %388 : vector<1x1x128xf32> to vector<1x128xf32>
    %c1_315 = arith.constant 1 : index
    %c0_316 = arith.constant 0 : index
    %c0_317 = arith.constant 0 : index
    %390 = vector.load %arg16[%c1_315, %c0_316, %c0_317] : memref<2x1x128xf32, #tpu.memory_space<vmem>>, vector<1x1x128xf32>
    %391 = vector.shape_cast %390 : vector<1x1x128xf32> to vector<1x128xf32>
    %cst_318 = arith.constant dense<0.000000e+00> : vector<8xf32>
    %392 = vector.multi_reduction <add>, %387, %cst_318 [1] : vector<8x128xf32> to vector<8xf32>
    %393 = vector.shape_cast %392 : vector<8xf32> to vector<8x1xf32>
    %cst_319 = arith.constant 3.125000e-02 : f32
    %394 = vector.broadcast %cst_319 : f32 to vector<8x1xf32>
    %395 = arith.mulf %393, %394 : vector<8x1xf32>
    %396 = arith.mulf %387, %387 : vector<8x128xf32>
    %cst_320 = arith.constant dense<0.000000e+00> : vector<8xf32>
    %397 = vector.multi_reduction <add>, %396, %cst_320 [1] : vector<8x128xf32> to vector<8xf32>
    %398 = vector.shape_cast %397 : vector<8xf32> to vector<8x1xf32>
    %cst_321 = arith.constant 3.125000e-02 : f32
    %399 = vector.broadcast %cst_321 : f32 to vector<8x1xf32>
    %400 = arith.mulf %398, %399 : vector<8x1xf32>
    %401 = arith.mulf %395, %395 : vector<8x1xf32>
    %402 = arith.subf %400, %401 : vector<8x1xf32>
    %403 = vector.broadcast %395 : vector<8x1xf32> to vector<8x128xf32>
    %404 = arith.subf %387, %403 : vector<8x128xf32>
    %cst_322 = arith.constant 9.99999974E-6 : f32
    %405 = vector.broadcast %cst_322 : f32 to vector<8x1xf32>
    %406 = arith.addf %402, %405 : vector<8x1xf32>
    %407 = math.rsqrt %406 : vector<8x1xf32>
    %408 = vector.broadcast %407 : vector<8x1xf32> to vector<8x128xf32>
    %409 = arith.mulf %404, %408 : vector<8x128xf32>
    %410 = vector.broadcast %389 : vector<1x128xf32> to vector<8x128xf32>
    %411 = arith.mulf %409, %410 : vector<8x128xf32>
    %412 = vector.broadcast %391 : vector<1x128xf32> to vector<8x128xf32>
    %413 = arith.addf %411, %412 : vector<8x128xf32>
    %c0_323 = arith.constant 0 : index
    %c0_324 = arith.constant 0 : index
    %c0_325 = arith.constant 0 : index
    %414 = vector.load %arg17[%c0_323, %c0_324, %c0_325] : memref<1x8x128xf32, #tpu.memory_space<vmem>>, vector<1x8x128xf32>
    %415 = vector.shape_cast %414 : vector<1x8x128xf32> to vector<8x128xf32>
    %416 = vector.shape_cast %413 : vector<8x128xf32> to vector<1x8x128xf32>
    tpu.vector_store %arg17[%c0_323, %c0_324, %c0_325], %416 {strides = array<i32>} : memref<1x8x128xf32, #tpu.memory_space<vmem>>, vector<1x8x128xf32>,
    return
  }
  func.func @transform_0(%arg0: i32) -> (i32, i32, i32) {
    %c0_i32 = arith.constant 0 : i32
    %c0_i32_0 = arith.constant 0 : i32
    %c0_i32_1 = arith.constant 0 : i32
    return %arg0, %c0_i32, %c0_i32_0 : i32, i32, i32
  }
  func.func @transform_1(%arg0: i32) -> (i32, i32, i32) {
    %c0_i32 = arith.constant 0 : i32
    %c0_i32_0 = arith.constant 0 : i32
    %c0_i32_1 = arith.constant 0 : i32
    return %arg0, %c0_i32, %c0_i32_0 : i32, i32, i32
  }
  func.func @transform_2(%arg0: i32) -> (i32, i32, i32, i32) {
    %c0_i32 = arith.constant 0 : i32
    %c0_i32_0 = arith.constant 0 : i32
    %c0_i32_1 = arith.constant 0 : i32
    %c0_i32_2 = arith.constant 0 : i32
    %c0_i32_3 = arith.constant 0 : i32
    return %c0_i32, %c0_i32_0, %c0_i32_1, %c0_i32_2 : i32, i32, i32, i32
  }
  func.func @transform_3(%arg0: i32) -> (i32, i32, i32, i32) {
    %c0_i32 = arith.constant 0 : i32
    %c0_i32_0 = arith.constant 0 : i32
    %c0_i32_1 = arith.constant 0 : i32
    %c0_i32_2 = arith.constant 0 : i32
    %c0_i32_3 = arith.constant 0 : i32
    return %c0_i32, %c0_i32_0, %c0_i32_1, %c0_i32_2 : i32, i32, i32, i32
  }
  func.func @transform_4(%arg0: i32) -> (i32, i32, i32, i32) {
    %c0_i32 = arith.constant 0 : i32
    %c0_i32_0 = arith.constant 0 : i32
    %c0_i32_1 = arith.constant 0 : i32
    %c0_i32_2 = arith.constant 0 : i32
    %c0_i32_3 = arith.constant 0 : i32
    return %c0_i32, %c0_i32_0, %c0_i32_1, %c0_i32_2 : i32, i32, i32, i32
  }
  func.func @transform_5(%arg0: i32) -> (i32, i32, i32, i32) {
    %c0_i32 = arith.constant 0 : i32
    %c0_i32_0 = arith.constant 0 : i32
    %c0_i32_1 = arith.constant 0 : i32
    %c0_i32_2 = arith.constant 0 : i32
    %c0_i32_3 = arith.constant 0 : i32
    return %c0_i32, %c0_i32_0, %c0_i32_1, %c0_i32_2 : i32, i32, i32, i32
  }
  func.func @transform_6(%arg0: i32) -> (i32, i32, i32, i32) {
    %c0_i32 = arith.constant 0 : i32
    %c0_i32_0 = arith.constant 0 : i32
    %c0_i32_1 = arith.constant 0 : i32
    %c0_i32_2 = arith.constant 0 : i32
    %c0_i32_3 = arith.constant 0 : i32
    return %c0_i32, %c0_i32_0, %c0_i32_1, %c0_i32_2 : i32, i32, i32, i32
  }
  func.func @transform_7(%arg0: i32) -> (i32, i32, i32, i32) {
    %c0_i32 = arith.constant 0 : i32
    %c0_i32_0 = arith.constant 0 : i32
    %c0_i32_1 = arith.constant 0 : i32
    %c0_i32_2 = arith.constant 0 : i32
    %c0_i32_3 = arith.constant 0 : i32
    return %c0_i32, %c0_i32_0, %c0_i32_1, %c0_i32_2 : i32, i32, i32, i32
  }
  func.func @transform_8(%arg0: i32) -> (i32, i32, i32) {
    %c0_i32 = arith.constant 0 : i32
    %c0_i32_0 = arith.constant 0 : i32
    %c0_i32_1 = arith.constant 0 : i32
    %c0_i32_2 = arith.constant 0 : i32
    return %c0_i32, %c0_i32_0, %c0_i32_1 : i32, i32, i32
  }
  func.func @transform_9(%arg0: i32) -> (i32, i32, i32) {
    %c0_i32 = arith.constant 0 : i32
    %c0_i32_0 = arith.constant 0 : i32
    %c0_i32_1 = arith.constant 0 : i32
    %c0_i32_2 = arith.constant 0 : i32
    return %c0_i32, %c0_i32_0, %c0_i32_1 : i32, i32, i32
  }
  func.func @transform_10(%arg0: i32) -> (i32, i32, i32) {
    %c0_i32 = arith.constant 0 : i32
    %c0_i32_0 = arith.constant 0 : i32
    %c0_i32_1 = arith.constant 0 : i32
    %c0_i32_2 = arith.constant 0 : i32
    return %c0_i32, %c0_i32_0, %c0_i32_1 : i32, i32, i32
  }
  func.func @transform_11(%arg0: i32) -> (i32, i32, i32) {
    %c0_i32 = arith.constant 0 : i32
    %c0_i32_0 = arith.constant 0 : i32
    %c0_i32_1 = arith.constant 0 : i32
    %c0_i32_2 = arith.constant 0 : i32
    return %c0_i32, %c0_i32_0, %c0_i32_1 : i32, i32, i32
  }
  func.func @transform_12(%arg0: i32) -> (i32, i32, i32) {
    %c0_i32 = arith.constant 0 : i32
    %c0_i32_0 = arith.constant 0 : i32
    %c0_i32_1 = arith.constant 0 : i32
    %c0_i32_2 = arith.constant 0 : i32
    return %c0_i32, %c0_i32_0, %c0_i32_1 : i32, i32, i32
  }
  func.func @transform_13(%arg0: i32) -> (i32, i32, i32) {
    %c0_i32 = arith.constant 0 : i32
    %c0_i32_0 = arith.constant 0 : i32
    %c0_i32_1 = arith.constant 0 : i32
    %c0_i32_2 = arith.constant 0 : i32
    return %c0_i32, %c0_i32_0, %c0_i32_1 : i32, i32, i32
  }
  func.func @transform_14(%arg0: i32) -> (i32, i32, i32) {
    %c0_i32 = arith.constant 0 : i32
    %c0_i32_0 = arith.constant 0 : i32
    %c0_i32_1 = arith.constant 0 : i32
    %c0_i32_2 = arith.constant 0 : i32
    return %c0_i32, %c0_i32_0, %c0_i32_1 : i32, i32, i32
  }
  func.func @transform_15(%arg0: i32) -> (i32, i32, i32) {
    %c0_i32 = arith.constant 0 : i32
    %c0_i32_0 = arith.constant 0 : i32
    %c0_i32_1 = arith.constant 0 : i32
    %c0_i32_2 = arith.constant 0 : i32
    return %c0_i32, %c0_i32_0, %c0_i32_1 : i32, i32, i32
  }
  func.func @transform_16(%arg0: i32) -> (i32, i32, i32) {
    %c0_i32 = arith.constant 0 : i32
    %c0_i32_0 = arith.constant 0 : i32
    %c0_i32_1 = arith.constant 0 : i32
    return %arg0, %c0_i32, %c0_i32_0 : i32, i32, i32
  }
}

</mosaic_0001>

<bundles_post_ra>
// kernel: tpu_custom_call.1
= control target key start
LH: loop header
LB: loop body
LE: loop exit
PB: predicated region body
PF: predicated region fallthrough
CT: control target
= control target key end

     0   :  { %s4137_s0 = inlined_call_operand.hbm [shape: f32[2,8,128], index: 0, kind: input, shape index: {}]   ;;  %s4138_s1 = inlined_call_operand.hbm [shape: f32[2,16,128], index: 1, kind: input, shape index: {}]   ;;  %s4139_s2 = inlined_call_operand.hbm [shape: f32[2,4,128,128], index: 2, kind: input, shape index: {}]   ;;  %s4140_s3 = inlined_call_operand.hbm [shape: f32[2,4,1,128], index: 3, kind: input, shape index: {}]   ;;  %s4141_s4 = inlined_call_operand.hbm [shape: f32[2,4,128,128], index: 4, kind: input, shape index: {}]   ;;  %s4142_s5 = inlined_call_operand.hbm [shape: f32[2,4,1,128], index: 5, kind: input, shape index: {}]   ;;  %s4143_s6 = inlined_call_operand.hbm [shape: f32[2,4,128,128], index: 6, kind: input, shape index: {}]   ;;  %s4144_s7 = inlined_call_operand.hbm [shape: f32[2,4,1,128], index: 7, kind: input, shape index: {}]   ;;  %s4145_s8 = inlined_call_operand.vmem [shape: f32[2,1,128], index: 8, kind: input, shape index: {}]   ;;  %s4146_s9 = inlined_call_operand.vmem [shape: f32[2,1,128], index: 9, kind: input, shape index: {}]   ;;  %s4147_s10 = inlined_call_operand.hbm [shape: f32[2,128,256], index: 10, kind: input, shape index: {}]   ;;  %s4148_s11 = inlined_call_operand.vmem [shape: f32[2,1,256], index: 11, kind: input, shape index: {}]   ;;  %s4149_s12 = inlined_call_operand.hbm [shape: f32[2,256,128], index: 12, kind: input, shape index: {}]   ;;  %s4150_s13 = inlined_call_operand.vmem [shape: f32[2,1,128], index: 13, kind: input, shape index: {}]   ;;  %s4151_s14 = inlined_call_operand.vmem [shape: f32[2,1,128], index: 14, kind: input, shape index: {}]   ;;  %s4152_s15 = inlined_call_operand.vmem [shape: f32[2,1,128], index: 15, kind: input, shape index: {}]   ;;  %s4153_s16 = inlined_call_operand.hbm [shape: f32[2,8,128], index: 16, kind: output, shape index: {}]  }
   0x1   :  { %4164 = sst [smem:[#allocation30_spill]] %s4137_s0 }
   0x2   :  { %4165 = sst [smem:[#allocation31_spill]] %s4139_s2 }
   0x3   :  { %4166 = sst [smem:[#allocation32_spill]] %s4140_s3 }
   0x4   :  { %4167 = sst [smem:[#allocation33_spill]] %s4141_s4 }
   0x5   :  { %4168 = sst [smem:[#allocation34_spill]] %s4142_s5 }
   0x6   :  { %4169 = sst [smem:[#allocation35_spill]] %s4143_s6 }
   0x7   :  { %4170 = sst [smem:[#allocation36_spill]] %s4144_s7 }
   0x8   :  { %4171 = sst [smem:[#allocation37_spill]] %s4147_s10 }
   0x9   :  { %4172 = sst [smem:[#allocation38_spill]] %s4148_s11 }
   0xa   :  { %4173 = sst [smem:[#allocation39_spill]] %s4149_s12 }
   0xb   :  { %4174 = sst [smem:[#allocation40_spill]] %s4150_s13 }
   0xc   :  { %4175 = sst [smem:[#allocation41_spill]] %s4151_s14 }
   0xd   :  { %4176 = sst [smem:[#allocation42_spill]] %s4152_s15 }
   0xe   :  { %4177 = sst [smem:[#allocation43_spill]] %s4153_s16 }
   0xf   :  { %21 = vsyncpa [#allocation3], 0 }
  0x10   :  { %23 = vsyncpa [#allocation3 + $0x1], 0 }
  0x11   :  { %24 = vsyncpa [#allocation6], 0 }
  0x12   :  { %26 = vsyncpa [#allocation6 + $0x1], 0 }
  0x13   :  { %27 = vsyncpa [#allocation9], 0 }
  0x14   :  { %28 = vsyncpa [#allocation12], 0 }
  0x15   :  { %29 = vsyncpa [#allocation15], 0 }
  0x16   :  { %30 = vsyncpa [#allocation18], 0 }
  0x17   :  { %31 = vsyncpa [#allocation4], 0 }
  0x18   :  { %33 = vsyncpa [#allocation4 + $0x1], 0  ;;  %s3698_s21 = smov 0   ;;  %s3700_s22 = smov 0  }
  0x19   :  { %s3702_s23 = smov 0   ;;  %s3704_s24 = smov 0  }
  0x1a LB: > { %4178 = sst [smem:[#allocation28_spill]] %s3594_s23  ;;  %s3722_s28 = sadd.s32 4294967295, %s3598_s24   ;;  %s3598_s24 = sphi %s3704_s24, %s4208_s24   ;;  %s3594_s23 = sphi %s3702_s23, %s4205_s23   ;;  %s3590_s22 = sphi %s3700_s22, %s4207_s22   ;;  %s3586_s21 = sphi %s3698_s21, %s4206_s21  }
  0x1b   : > { %s4179_s2 = sld [smem:[#allocation31_spill]]  ;;  %p2946_p0 = scmp.ge.s32.totalorder %s3598_s24, 1 }
  0x1c   : > { %p60_p1 = scmp.eq.s32.totalorder %s3722_s28, 0  ;;  %p416_p2 = scmp.lt.s32.totalorder %s3598_s24, 3 }
  0x1d   : > { %s3600_s30 = smov [#allocation7]   ;;  %s4181_s3 = sld [smem:[#allocation32_spill]] }
  0x1e   : > { %p3727_p3 = pnand %p2946_p0, %p416_p2  ;;  %s429_s0 = sshll.u32 %s3600_s30, 4  ;;  %s430_s0 = int_to_ptr.vmem [resolvable:$true] %s429_s0 }
  0x1f   : > { %s3601_s25 = smov [#allocation8]   ;;  %s4160_s30 = smov 128  }
  0x20   : > { %p3030_p4 = pneg %p3727_p3  ;;  %s443_s26 = sshll.u32 %s3601_s25, 4  ;;  %s444_s26 = int_to_ptr.vmem [resolvable:$true] %s443_s26 }
  0x21   : > { %s427_s27 = sshll.u32 %s4179_s2, 4  ;;  %s4162_s2 = smov 8   ;;  %s428_s27 = int_to_ptr.hbm [resolvable:$true] %s427_s27 }
  0x22   : > { %p3739_p6 = pnand %p3030_p4, %p60_p1  ;;  %s3604_s17 = smov 16  }
  0x23   : > { %s441_s19 = sshll.u32 %s4181_s3, 4  ;;  %s3605_s18 = smov 1   ;;  %s442_s19 = int_to_ptr.hbm [resolvable:$true] %s441_s19 }
  0x24   : > { %3033 = dma.hbm_to_vmem [thread:$0]  (!%p3739_p6), %s428_s27, 16384, %s430_s0, [#allocation6], %s4160_s30, %s4160_s30, %s4162_s2  }
  0x25   : > { %3036 = dma.hbm_to_vmem [thread:$0]  (!%p3739_p6), %s442_s19, 128, %s444_s26, [#allocation9], %s3604_s17, %s3604_s17, %s3605_s18  }
  0x26   : > { %s4183_s5 = sld [smem:[#allocation34_spill]]  ;;  %s3606_s25 = smov [#allocation11]  }
  0x27   : > { %s471_s14 = sshll.u32 %s3606_s25, 4  ;;  %s4184_s7 = sld [smem:[#allocation36_spill]]  ;;  %s472_s14 = int_to_ptr.vmem [resolvable:$true] %s471_s14 }
  0x28   : > { %s3607_s0 = smov [#allocation14]   ;;  %s4185_s4 = sld [smem:[#allocation33_spill]] }
  0x29   : > { %s499_s19 = sshll.u32 %s3607_s0, 4  ;;  %s4186_s6 = sld [smem:[#allocation35_spill]]  ;;  %s500_s19 = int_to_ptr.vmem [resolvable:$true] %s499_s19 }
  0x2a   : > { %s3608_s25 = smov [#allocation10]   ;;  %s3609_s30 = smov [#allocation13]  }
  0x2b   : > { %s485_s0 = sshll.u32 %s3609_s30, 4  ;;  %s4188_s10 = sld [smem:[#allocation37_spill]]  ;;  %s486_s0 = int_to_ptr.vmem [resolvable:$true] %s485_s0 }
  0x2c   : > { %s469_s15 = sshll.u32 %s4183_s5, 4  ;;  %s4189_s12 = sld [smem:[#allocation39_spill]]  ;;  %s470_s15 = int_to_ptr.hbm [resolvable:$true] %s469_s15 }
  0x2d   : > { %s497_s27 = sshll.u32 %s4184_s7, 4  ;;  %s3611_s13 = smov 256   ;;  %s498_s27 = int_to_ptr.hbm [resolvable:$true] %s497_s27 }
  0x2e   : > { %3042 = dma.hbm_to_vmem [thread:$0]  (!%p3739_p6), %s470_s15, 128, %s472_s14, [#allocation12], %s3604_s17, %s3604_s17, %s3605_s18  }
  0x2f   : > { %s455_s3 = sshll.u32 %s4185_s4, 4  ;;  %s483_s16 = sshll.u32 %s4186_s6, 4  ;;  %s456_s3 = int_to_ptr.hbm [resolvable:$true] %s455_s3  ;;  %s484_s16 = int_to_ptr.hbm [resolvable:$true] %s483_s16 }
  0x30   : > { %3048 = dma.hbm_to_vmem [thread:$0]  (!%p3739_p6), %s498_s27, 128, %s500_s19, [#allocation15], %s3604_s17, %s3604_s17, %s3605_s18  }
  0x31   : > { %s457_s14 = sshll.u32 %s3608_s25, 4  ;;  %s4187_s15 = smov 128   ;;  %s458_s14 = int_to_ptr.vmem [resolvable:$true] %s457_s14 }
  0x32   : > { %3039 = dma.hbm_to_vmem [thread:$0]  (!%p3739_p6), %s456_s3, 16384, %s458_s14, [#allocation9], %s4187_s15, %s4187_s15, %s4162_s2  }
  0x33   : > { %s517_s18 = sshll.u32 %s4188_s10, 4  ;;  %s3610_s27 = smov [#allocation16]   ;;  %s518_s18 = int_to_ptr.hbm [resolvable:$true] %s517_s18 }
  0x34   : > { %3045 = dma.hbm_to_vmem [thread:$0]  (!%p3739_p6), %s484_s16, 16384, %s486_s0, [#allocation12], %s4187_s15, %s4187_s15, %s4162_s2  }
  0x35   : > { %s519_s19 = sshll.u32 %s3610_s27, 4  ;;  %s534_s4 = sshll.u32 %s4189_s12, 4  ;;  %s520_s19 = int_to_ptr.vmem [resolvable:$true] %s519_s19  ;;  %s535_s4 = int_to_ptr.hbm [resolvable:$true] %s534_s4 }
  0x36   : > { %3051 = dma.hbm_to_vmem [thread:$0]  (!%p3739_p6), %s518_s18, 8192, %s520_s19, [#allocation15], %s3611_s13, %s3611_s13, %s3604_s17  }
  0x37   : > { %s3612_s16 = smov [#allocation17]   ;;  %s2945_s14 = sadd.s32 4294967294, %s3598_s24  }
  0x38   : > { %s536_s25 = sshll.u32 %s3612_s16, 4  ;;  %s3798_s30 = sadd.s32 1, %s3598_s24   ;;  %s537_s25 = int_to_ptr.vmem [resolvable:$true] %s536_s25 }
  0x39   : > { %3054 = dma.hbm_to_vmem [thread:$0]  (!%p3739_p6), %s535_s4, 8192, %s537_s25, [#allocation18], %s4187_s15, %s4187_s15, %s4162_s2  }
  0x3a   : > { %s46_s0 = sadd.s32 1, %s3594_s23  ;;  %s43_s26 = ssub.s32 %s3598_s24, %s3798_s30 }
  0x3b   : > { %p53_p7 = scmp.ne.s32.totalorder %s3594_s23, %s3590_s22  ;;  %p44_p8 = scmp.eq.s32.totalorder %s43_s26, 0 }
  0x3c   : > { %p54_p9 = scmp.eq.s32.totalorder %s3598_s24, 0  ;;  %p59_p10 = scmp.ne.s32.totalorder %s3590_s22, %s3586_s21 }
  0x3d   : > { %p403_p11 = scmp.eq.s32.totalorder %s3722_s28, 1  ;;  %p409_p2 = scmp.eq.s32.totalorder %s2945_s14, 1 }
  0x3e   : > { %s3810_s17 = scalar_select %p44_p8, %s3594_s23, %s46_s0  }
  0x3f   : > { %p3812_p12 = por %p54_p9, %p53_p7  ;;  %p3818_p13 = por %p60_p1, %p59_p10 }
  0x40   : > { %4190 = sst [smem:[#allocation29_spill]] %s3810_s17  ;;  %p3822_p0 = por %p403_p11, %p53_p7 }
  0x41   : > { %p3074_p4 = scmp.lt.s32.totalorder %s3598_s24, 2  ;;  %s3828_s19 = sand.u32 1, %s3594_s23  }
  0x42   : > { %p3830_p6 = por %p409_p2, %p59_p10  ;;  %s2956_s11 = sshll.u32 %s3828_s19, 3 }
  0x43   : > { %s2957_s4 = sshll.u32 %s3598_s24, 3  ;;  %s4195_s25 = sld [smem:[#allocation30_spill]] }
  0x44   : > { %s563_s2 = scalar_lea.vmem [#allocation2], %s2956_s11  ;;  %p3841_p7 = pnand %p3074_p4, %p3812_p12 }
  0x45   : > { %s571_s5 = sshll.u32 %s563_s2, 4  ;;  %s2958_s6 = sshll.u32 %s3828_s19, 4  ;;  %s572_s5 = int_to_ptr.vmem [resolvable:$true] %s571_s5 }
  0x46   : > { %s578_s7 = sand.u32 1, %s3598_s24   ;;  %s582_s10 = scalar_lea.vmem [#allocation5], %s2958_s6 }
  0x47   : > { %s590_s12 = sshll.u32 %s582_s10, 4  ;;  %s560_s17 = scalar_lea.sflag [#allocation3], %s3828_s19  ;;  %s591_s12 = int_to_ptr.vmem [resolvable:$true] %s590_s12 }
  0x48   : > { %p3452_p9 = pneg %p3841_p7 }
  0x49   : > { %s567_s0 = scalar_lea.hbm %s4195_s25, %s2957_s4  ;;  %s3455_s11 = scalar_lea.hbm %s4195_s25, 16 }
  0x4a   : > { %s569_s26 = sshll.u32 %s567_s0, 4  ;;  %s570_s26 = int_to_ptr.hbm [resolvable:$true] %s569_s26 }
  0x4b   : > { %s3448_s23 = sshra.s32 %s570_s26, 4  ;;  %s3449_s23 = int_to_ptr.hbm [resolvable:$true] %s3448_s23 }
  0x4c   : > { %s3450_s4 = scalar_lea.hbm %s3449_s23, 8  ;;  %p3456_p12 = scmp.lt.s32.totalorder %s3449_s23, %s4195_s25 }
  0x4d   : > { %p3451_p8 = scmp.ne.s32.totalorder %s3449_s23, %s3450_s4  ;;  %p3457_p2 = scmp.lt.s32.totalorder %s3455_s11, %s3450_s4 }
  0x4f   : > { %p3453_p10 = pnand %p3452_p9, %p3451_p8  ;;  %p3458_p4 = por %p3457_p2, %p3456_p12 }
  0x51   : > { %p3454_p11 = pneg %p3453_p10 }
  0x53   : > { %p3459_p5 = pnand %p3458_p4, %p3454_p11 }
  0x55   : > { %3462 = shalt.err (!%p3459_p5)
}
  0x56   : > { %3058 = dma.hbm_to_vmem [thread:$0]  (!%p3841_p7), %s570_s26, 128, %s572_s5, %s560_s17  }
  0x57   : > { %s2991_s6 = sshll.u32 %s3598_s24, 4  ;;  %s579_s20 = scalar_lea.sflag [#allocation6], %s578_s7 }
  0x58   : > { %s587_s0 = scalar_lea.hbm %s4138_s1, %s2991_s6  ;;  %s3485_s5 = scalar_lea.hbm %s4138_s1, 32 }
  0x59   : > { %s588_s2 = sshll.u32 %s587_s0, 4  ;;  %s589_s2 = int_to_ptr.hbm [resolvable:$true] %s588_s2 }
  0x5a   : > { %s3478_s13 = sshra.s32 %s589_s2, 4  ;;  %s3479_s13 = int_to_ptr.hbm [resolvable:$true] %s3478_s13 }
  0x5b   : > { %s3480_s23 = scalar_lea.hbm %s3479_s13, 16  ;;  %p3486_p11 = scmp.lt.s32.totalorder %s3479_s13, %s4138_s1 }
  0x5c   : > { %p3481_p8 = scmp.ne.s32.totalorder %s3479_s13, %s3480_s23  ;;  %p3487_p12 = scmp.lt.s32.totalorder %s3485_s5, %s3480_s23 }
  0x5e   : > { %p3483_p5 = pnand %p3481_p8, %p3452_p9  ;;  %p3488_p2 = por %p3487_p12, %p3486_p11 }
  0x60   : > { %p3484_p10 = pneg %p3483_p5 }
  0x62   : > { %p3489_p4 = pnand %p3488_p2, %p3484_p10 }
  0x64   : > { %3492 = shalt.err (!%p3489_p4)
}
  0x65   : > { %s4197_s7 = smov 8   ;;  %602 = sbr.rel (%p3727_p3) target bundleno = 5072 (0x13d0), region = 84 }
  0x66   : > { %3061 = dma.hbm_to_vmem [thread:$0]  (!%p3841_p7), %s589_s2, 256, %s591_s12, %s579_s20, %s4187_s15, %s4187_s15, %s4197_s7  }
  0x67   : > { %s3882_s16 = sand.u32 (!%p3727_p3), 1, %s3590_s22  }
  0x68   : > { %s2962_s6 = sshll.u32 (!%p3727_p3), %s3882_s16, 3  ;;  %s605_s10 = scalar_lea.sflag (!%p3727_p3), [#allocation3], %s3882_s16 }
  0x69   : > { %s3888_s19 = scalar_lea.vmem (!%p3727_p3), [#allocation2], %s2962_s6 }
  0x6a   : > { %3553 = dma.done.wait (%p3818_p13), %s605_s10, 128  }
  0x6b   : > { %3555 = vsyncadd (%p3818_p13), %s605_s10, 4294967168  ;;  %s614_s12 = sand.u32 1, %s3722_s28   ;;  %s2963_s29 = sshll.u32 %s3882_s16, 4 }
  0x6c   : > { %s615_s15 = scalar_lea.sflag [#allocation6], %s614_s12  ;;  %s3896_s14 = scalar_lea.vmem [#allocation5], %s2963_s29 }
  0x6d   : > { %3557 = dma.done.wait (%p3818_p13), %s615_s15, 256  }
  0x6e   : > { %3559 = vsyncadd (%p3818_p13), %s615_s15, 4294967040 }
  0x6f   : > { %3561 = dma.done.wait (%p60_p1), [#allocation6], 16384  }
  0x70   : > { %3563 = vsyncadd (%p60_p1), [#allocation6], 4294950912 }
  0x71   : > { %3565 = dma.done.wait (%p60_p1), [#allocation9], 16512  }
  0x72   : > { %3567 = vsyncadd (%p60_p1), [#allocation9], 4294950784 }
  0x73   : > { %3569 = dma.done.wait (%p60_p1), [#allocation12], 16512  }
  0x74   : > { %3571 = vsyncadd (%p60_p1), [#allocation12], 4294950784 }
  0x75   : > { %3573 = dma.done.wait (%p60_p1), [#allocation15], 8320  }
  0x76   : > { %3575 = vsyncadd (%p60_p1), [#allocation15], 4294958976 }
  0x77   : > { %3577 = dma.done.wait (%p60_p1), [#allocation18], 8192  }
  0x78   : > { %3579 = vsyncadd (%p60_p1), [#allocation18], 4294959104  ;;  %v771_v0 = vld [vmem:[#allocation10 + $0x78] sm:$0xff]  ;;  %v770_v1 = vld [vmem:[#allocation10 + $0x70] sm:$0xff]  ;;  %vm862_vm0 = vcmask 130048   ;;  %s4198_s4 = sld [smem:[#allocation38_spill]] }
  0x79   : > { %776 = vmatpush.msra.mxu1 %v771_v0  ;;  %v769_v2 = vld [vmem:[#allocation10 + $0x68] sm:$0xff]  ;;  %v731_v3 = vld [vmem:[#allocation7 + $0x78] sm:$0xff]  ;;  %v768_v5 = vld [vmem:[#allocation10 + $0x60] sm:$0xff]  ;;  %s4199_s17 = sld [smem:[#allocation40_spill]]  ;;  %s2988_s11 = sshll.u32 %s3722_s28, 3 }
  0x7a   : > { %736 = vmatpush.msra.mxu0 %v731_v3  ;;  %v730_v4 = vld [vmem:[#allocation7 + $0x70] sm:$0xff]  ;;  %v729_v6 = vld [vmem:[#allocation7 + $0x68] sm:$0xff]  ;;  %v767_v7 = vld [vmem:[#allocation10 + $0x58] sm:$0xff]  ;;  %s4200_s10 = sld [smem:[#allocation41_spill]]  ;;  %s712_s28 = scalar_lea.vmem [#allocation19], %s2962_s6 }
  0x7b   : > { %777 = vmatpush.msra.mxu1 %v770_v1  ;;  %v728_v8 = vld [vmem:[#allocation7 + $0x60] sm:$0xff]  ;;  %v766_v9 = vld [vmem:[#allocation10 + $0x50] sm:$0xff]  ;;  %v765_v11 = vld [vmem:[#allocation10 + $0x48] sm:$0xff]  ;;  %s4201_s29 = sld [smem:[#allocation42_spill]]  ;;  %s2773_s0 = sshll.u32 %s712_s28, 4  ;;  %s2774_s0 = int_to_ptr.vmem [resolvable:$true] %s2773_s0 }
  0x7c   : > { %737 = vmatpush.msra.mxu0 %v730_v4  ;;  %v727_v10 = vld [vmem:[#allocation7 + $0x58] sm:$0xff]  ;;  %v726_v12 = vld [vmem:[#allocation7 + $0x50] sm:$0xff]  ;;  %v764_v13 = vld [vmem:[#allocation10 + $0x40] sm:$0xff]  ;;  %s4202_s12 = sld [smem:[#allocation43_spill]]  ;;  %s2761_s20 = scalar_lea.sflag [#allocation4], %s3882_s16 }
  0x7d   : > { %778 = vmatpush.msra.mxu1 %v769_v2  ;;  %v763_v14 = vld [vmem:[#allocation10 + $0x38] sm:$0xff]  ;;  %v725_v15 = vld [vmem:[#allocation7 + $0x48] sm:$0xff]  ;;  %v762_v17 = vld [vmem:[#allocation10 + $0x30] sm:$0xff] }
  0x7e   : > { %738 = vmatpush.msra.mxu0 %v729_v6  ;;  %v724_v16 = vld [vmem:[#allocation7 + $0x40] sm:$0xff]  ;;  %v723_v18 = vld [vmem:[#allocation7 + $0x38] sm:$0xff]  ;;  %v761_v19 = vld [vmem:[#allocation10 + $0x28] sm:$0xff] }
  0x7f   : > { %779 = vmatpush.msra.mxu1 %v768_v5  ;;  %v722_v20 = vld [vmem:[#allocation7 + $0x30] sm:$0xff]  ;;  %v760_v21 = vld [vmem:[#allocation10 + $0x20] sm:$0xff]  ;;  %v759_v23 = vld [vmem:[#allocation10 + $0x18] sm:$0xff] }
  0x80   : > { %739 = vmatpush.msra.mxu0 %v728_v8  ;;  %v721_v22 = vld [vmem:[#allocation7 + $0x28] sm:$0xff]  ;;  %v720_v24 = vld [vmem:[#allocation7 + $0x20] sm:$0xff]  ;;  %v758_v25 = vld [vmem:[#allocation10 + $0x10] sm:$0xff] }
  0x81   : > { %780 = vmatpush.msra.mxu1 %v767_v7  ;;  %v719_v26 = vld [vmem:[#allocation7 + $0x18] sm:$0xff]  ;;  %v757_v27 = vld [vmem:[#allocation10 + $0x8] sm:$0xff]  ;;  %v756_v29 = vld [vmem:[#allocation10] sm:$0xff] }
  0x82   : > { %740 = vmatpush.msra.mxu0 %v727_v10  ;;  %v718_v28 = vld [vmem:[#allocation7 + $0x10] sm:$0xff]  ;;  %v717_v30 = vld [vmem:[#allocation7 + $0x8] sm:$0xff]  ;;  %v716_v32 = vld [vmem:[#allocation7] sm:$0xff]  ;;  %s2771_s15 = scalar_lea.hbm %s4202_s12, %s2988_s11  ;;  %s3528_s26 = scalar_lea.hbm %s4202_s12, 16 }
  0x83   : > { %781 = vmatpush.msra.mxu1 %v766_v9  ;;  %v3923_v31 = vld [vmem:[%s3896_s14] sm:$0xff]  ;;  %v3926_v33 = vld [vmem:[%s3888_s19] sm:$0xff]  ;;  %v942_v38 = vld [vmem:[#allocation10 + $0xe0] sm:$0xff]  ;;  %s2775_s2 = sshll.u32 %s2771_s15, 4  ;;  %s2776_s2 = int_to_ptr.hbm [resolvable:$true] %s2775_s2 }
  0x84   : > { %741 = vmatpush.msra.mxu0 %v726_v12  ;;  %v945_v34 = vld [vmem:[#allocation10 + $0xf8] sm:$0xff]  ;;  %v944_v35 = vld [vmem:[#allocation10 + $0xf0] sm:$0xff]  ;;  %v943_v36 = vld [vmem:[#allocation10 + $0xe8] sm:$0xff]  ;;  %s3522_s13 = sshra.s32 %s2776_s2, 4  ;;  %s3523_s13 = int_to_ptr.hbm [resolvable:$true] %s3522_s13 }
  0x85   : > { %782 = vmatpush.msra.mxu1 %v765_v11  ;;  %v3931_v37 = vld [vmem:[%s3896_s14 + $0x8] sm:$0xff]  ;;  %v941_v39 = vld [vmem:[#allocation10 + $0xd8] sm:$0xff]  ;;  %v939_v41 = vld [vmem:[#allocation10 + $0xc8] sm:$0xff]  ;;  %s3524_s23 = scalar_lea.hbm %s3523_s13, 8  ;;  %p3529_p7 = scmp.lt.s32.totalorder %s3523_s13, %s4202_s12 }
  0x86   : > { %742 = vmatpush.msra.mxu0 %v725_v15  ;;  %v940_v40 = vld [vmem:[#allocation10 + $0xd0] sm:$0xff]  ;;  %v938_v42 = vld [vmem:[#allocation10 + $0xc0] sm:$0xff]  ;;  %v937_v43 = vld [vmem:[#allocation10 + $0xb8] sm:$0xff]  ;;  %p3525_p1 = scmp.ne.s32.totalorder %s3523_s13, %s3524_s23  ;;  %p3530_p9 = scmp.lt.s32.totalorder %s3528_s26, %s3524_s23 }
  0x87   : > { %783 = vmatpush.msra.mxu1 %v764_v13  ;;  %v936_v44 = vld [vmem:[#allocation10 + $0xb0] sm:$0xff]  ;;  %v935_v45 = vld [vmem:[#allocation10 + $0xa8] sm:$0xff]  ;;  %v934_v46 = vld [vmem:[#allocation10 + $0xa0] sm:$0xff] }
  0x88   : > { %743 = vmatpush.msra.mxu0 %v724_v16  ;;  %v933_v47 = vld [vmem:[#allocation10 + $0x98] sm:$0xff]  ;;  %v932_v48 = vld [vmem:[#allocation10 + $0x90] sm:$0xff]  ;;  %v931_v49 = vld [vmem:[#allocation10 + $0x88] sm:$0xff]  ;;  %p3526_p3 = pnand %p3525_p1, %p3822_p0  ;;  %p3531_p8 = por %p3530_p9, %p3529_p7 }
  0x89   : > { %784 = vmatpush.msra.mxu1 %v763_v14  ;;  %v930_v50 = vld [vmem:[#allocation10 + $0x80] sm:$0xff]  ;;  %v3130_v55 = vld [vmem:[#allocation8] ss:$0 sm:$0xff]  ;;  %v903_v58 = vld [vmem:[#allocation7 + $0xf8] sm:$0xff] }
  0x8a   : > { %744 = vmatpush.msra.mxu0 %v723_v18  ;;  %v3129_v52 = vld [vmem:[#allocation11] ss:$0 sm:$0xff]  ;;  %v902_v60 = vld [vmem:[#allocation7 + $0xf0] sm:$0xff]  ;;  %v813_v62 = vld [vmem:[#allocation13 + $0x70] sm:$0xff]  ;;  %p3527_p13 = pneg %p3526_p3 }
  0x8b   : > { %785 = vmatpush.msra.mxu1 %v762_v17  ;;  %v814_v61 = vld [vmem:[#allocation13 + $0x78] sm:$0xff]  ;;  %v812_v0 = vld [vmem:[#allocation13 + $0x68] sm:$0xff]  ;;  %v900_v1 = vld [vmem:[#allocation7 + $0xe0] sm:$0xff] }
  0x8c   : > { %745 = vmatpush.msra.mxu0 %v722_v20  ;;  %819 = vmatpush.msra.mxu2 %v814_v61  ;;  %v901_v63 = vld [vmem:[#allocation7 + $0xe8] sm:$0xff]  ;;  %v811_v2 = vld [vmem:[#allocation13 + $0x60] sm:$0xff]  ;;  %v899_v3 = vld [vmem:[#allocation7 + $0xd8] sm:$0xff]  ;;  %p3532_p5 = pnand %p3531_p8, %p3527_p13 }
  0x8d   : > { %786 = vmatpush.msra.mxu1 %v761_v19  ;;  %v810_v4 = vld [vmem:[#allocation13 + $0x58] sm:$0xff]  ;;  %v898_v5 = vld [vmem:[#allocation7 + $0xd0] sm:$0xff]  ;;  %v809_v6 = vld [vmem:[#allocation13 + $0x50] sm:$0xff] }
  0x8e   : > { %746 = vmatpush.msra.mxu0 %v721_v22  ;;  %820 = vmatpush.msra.mxu2 %v813_v62  ;;  %v897_v7 = vld [vmem:[#allocation7 + $0xc8] sm:$0xff]  ;;  %v808_v8 = vld [vmem:[#allocation13 + $0x48] sm:$0xff]  ;;  %v896_v9 = vld [vmem:[#allocation7 + $0xc0] sm:$0xff] }
  0x8f   : > { %787 = vmatpush.msra.mxu1 %v760_v21  ;;  %v807_v10 = vld [vmem:[#allocation13 + $0x40] sm:$0xff]  ;;  %v895_v11 = vld [vmem:[#allocation7 + $0xb8] sm:$0xff]  ;;  %v806_v12 = vld [vmem:[#allocation13 + $0x38] sm:$0xff] }
  0x90   : > { %747 = vmatpush.msra.mxu0 %v720_v24  ;;  %821 = vmatpush.msra.mxu2 %v812_v0  ;;  %v894_v13 = vld [vmem:[#allocation7 + $0xb0] sm:$0xff]  ;;  %v805_v14 = vld [vmem:[#allocation13 + $0x30] sm:$0xff]  ;;  %v893_v15 = vld [vmem:[#allocation7 + $0xa8] sm:$0xff] }
  0x91   : > { %788 = vmatpush.msra.mxu1 %v759_v23  ;;  %v804_v16 = vld [vmem:[#allocation13 + $0x28] sm:$0xff]  ;;  %v892_v17 = vld [vmem:[#allocation7 + $0xa0] sm:$0xff]  ;;  %v803_v18 = vld [vmem:[#allocation13 + $0x20] sm:$0xff] }
  0x92   : > { %748 = vmatpush.msra.mxu0 %v719_v26  ;;  %822 = vmatpush.msra.mxu2 %v811_v2  ;;  %v891_v19 = vld [vmem:[#allocation7 + $0x98] sm:$0xff]  ;;  %v802_v20 = vld [vmem:[#allocation13 + $0x18] sm:$0xff]  ;;  %v890_v21 = vld [vmem:[#allocation7 + $0x90] sm:$0xff] }
  0x93   : > { %789 = vmatpush.msra.mxu1 %v758_v25  ;;  %v889_v22 = vld [vmem:[#allocation7 + $0x88] sm:$0xff]  ;;  %v888_v23 = vld [vmem:[#allocation7 + $0x80] sm:$0xff]  ;;  %v800_v25 = vld [vmem:[#allocation13 + $0x8] sm:$0xff] }
  0x94   : > { %749 = vmatpush.msra.mxu0 %v718_v28  ;;  %823 = vmatpush.msra.mxu2 %v810_v4  ;;  %v801_v24 = vld [vmem:[#allocation13 + $0x10] sm:$0xff]  ;;  %v799_v26 = vld [vmem:[#allocation13] sm:$0xff]  ;;  %v3131_v28 = vld [vmem:[#allocation11 + $0x1] ss:$0 sm:$0xff] }
  0x95   : > { %790 = vmatpush.msra.mxu1 %v757_v27  ;;  %v978_v0 = vld [vmem:[#allocation13 + $0x98] sm:$0xff]  ;;  %v976_v2 = vld [vmem:[#allocation13 + $0x88] sm:$0xff] }
  0x96   : > { %750 = vmatpush.msra.mxu0 %v717_v30  ;;  %824 = vmatpush.msra.mxu2 %v809_v6 }
  0x97   : > { %791 = vmatpush.msra.mxu1 %v756_v29 }
  0x98   : > { %792 = vmatmul.f32.vlgmr.msra.gmra.mxu1 %v3923_v31  ;;  %751 = vmatpush.msra.mxu0 %v716_v32 }
  0x99   : > { %752 = vmatmul.f32.vlgmr.msra.gmra.mxu0 %v3926_v33  ;;  %825 = vmatpush.msra.mxu2 %v808_v8 }
  0x9a   : > { %951 = vmatpush.msrb.mxu0 %v945_v34 }
  0x9b   : > { %826 = vmatpush.msra.mxu2 %v807_v10 }
  0x9c   : > { %952 = vmatpush.msrb.mxu0 %v944_v35 }
  0x9d   : > { %827 = vmatpush.msra.mxu2 %v806_v12 }
  0x9e   : > { %953 = vmatpush.msrb.mxu0 %v943_v36  ;;  %v3132_v36 = vld [vmem:[#allocation8 + $0x1] ss:$0 sm:$0xff] }
  0x9f   : > { %828 = vmatpush.msra.mxu2 %v805_v14 }
  0xa0   : > { %795 = vmatmul.f32.gmra.mxu1 %v3931_v37  ;;  %954 = vmatpush.msrb.mxu0 %v942_v38 }
  0xa1   : > { %829 = vmatpush.msra.mxu2 %v804_v16 }
  0xa2   : > { %955 = vmatpush.msrb.mxu0 %v941_v39 }
  0xa3   : > { %830 = vmatpush.msra.mxu2 %v803_v18 }
  0xa4   : > { %956 = vmatpush.msrb.mxu0 %v940_v40 }
  0xa5   : > { %831 = vmatpush.msra.mxu2 %v802_v20 }
  0xa6   : > { %957 = vmatpush.msrb.mxu0 %v939_v41  ;;  %v3133_v41 = vld [vmem:[#allocation14] ss:$0 sm:$0xff] }
  0xa7   : > { %832 = vmatpush.msra.mxu2 %v801_v24  ;;  %v1164_v24 = vld [vmem:[#allocation10 + $0x160] sm:$0xff] }
  0xa8   : > { %958 = vmatpush.msrb.mxu0 %v938_v42 }
  0xa9   : > { %833 = vmatpush.msra.mxu2 %v800_v25  ;;  %v1163_v25 = vld [vmem:[#allocation10 + $0x158] sm:$0xff] }
  0xaa   : > { %959 = vmatpush.msrb.mxu0 %v937_v43 }
  0xab   : > { %834 = vmatpush.msra.mxu2 %v799_v26  ;;  %v1162_v26 = vld [vmem:[#allocation10 + $0x150] sm:$0xff] }
  0xac   : > { %960 = vmatpush.msrb.mxu0 %v936_v44  ;;  %835 = vmatmul.f32.vlgmr.msra.gmra.mxu2 %v3923_v31 }
  0xae   : > { %961 = vmatpush.msrb.mxu0 %v935_v45 }
  0xb0   : > { %962 = vmatpush.msrb.mxu0 %v934_v46 }
  0xb2   : > { %963 = vmatpush.msrb.mxu0 %v933_v47 }
  0xb4   : > { %964 = vmatpush.msrb.mxu0 %v932_v48  ;;  %838 = vmatmul.f32.gmra.mxu2 %v3931_v37 }
  0xb6   : > { %965 = vmatpush.msrb.mxu0 %v931_v49 }
  0xb8   : > { %966 = vmatpush.msrb.mxu0 %v930_v50  ;;  %v990_v50 = vld [vmem:[#allocation13 + $0xf8] sm:$0xff] }
  0xb9   : > { %967 = vmatmul.f32.vlgmr.msrb.gmra.mxu0 %v3923_v31  ;;  %996 = vmatpush.msrb.mxu1 %v990_v50  ;;  %v1120_v50 = vld [vmem:[#allocation7 + $0x150] sm:$0xff] }
  0xc1   : > { %970 = vmatmul.f32.gmra.mxu0 %v3931_v37 }
 0x115   : > { %v793_v51 = vpop.f32.mrf.mxu1 }
 0x116   : > { %v753_v56 = vpop.f32.mrf.mxu0  ;;  %v794_v57 = vadd.f32 %v3129_v52, %v793_v51  ;;  %v989_v51 = vld [vmem:[#allocation13 + $0xf0] sm:$0xff] }
 0x117   : > { %v754_v59 = vadd.f32 %v3130_v55, %v753_v56  ;;  %997 = vmatpush.msrb.mxu1 %v989_v51  ;;  %v985_v55 = vld [vmem:[#allocation13 + $0xd0] sm:$0xff]  ;;  %v984_v56 = vld [vmem:[#allocation13 + $0xc8] sm:$0xff]  ;;  %v1119_v51 = vld [vmem:[#allocation7 + $0x148] sm:$0xff] }
 0x11d   : > { %v796_v53 = vpop.f32.mrf.mxu1 }
 0x11e   : > { %v797_v54 = vadd.f32 %v3129_v52, %v796_v53  ;;  %v988_v52 = vld [vmem:[#allocation13 + $0xe8] sm:$0xff]  ;;  %v987_v53 = vld [vmem:[#allocation13 + $0xe0] sm:$0xff] }
 0x11f   : > { %998 = vmatpush.msrb.mxu1 %v988_v52  ;;  %v1118_v52 = vld [vmem:[#allocation7 + $0x140] sm:$0xff] }
 0x120   : > { %856 = vmatpush.xpose.msra.mxu3 %v797_v54  ;;  %v986_v54 = vld [vmem:[#allocation13 + $0xd8] sm:$0xff] }
 0x121   : > { %999 = vmatpush.msrb.mxu1 %v987_v53  ;;  %v1117_v53 = vld [vmem:[#allocation7 + $0x138] sm:$0xff] }
 0x123   : > { %1000 = vmatpush.msrb.mxu1 %v986_v54  ;;  %v1116_v54 = vld [vmem:[#allocation7 + $0x130] sm:$0xff] }
 0x124   : > { %857 = vmatpush.xpose.msra.mxu3 %v794_v57  ;;  %v983_v57 = vld [vmem:[#allocation13 + $0xc0] sm:$0xff] }
 0x125   : > { %1001 = vmatpush.msrb.mxu1 %v985_v55  ;;  %v1115_v55 = vld [vmem:[#allocation7 + $0x128] sm:$0xff] }
 0x127   : > { %858 = vmatmul.f32.vlgmr.msra.gmra.mxu3 %v754_v59  ;;  %1002 = vmatpush.msrb.mxu1 %v984_v56  ;;  %v981_v59 = vld [vmem:[#allocation13 + $0xb0] sm:$0xff] }
 0x128   : > { %909 = vmatpush.msrb.mxu3 %v903_v58  ;;  %v982_v58 = vld [vmem:[#allocation13 + $0xb8] sm:$0xff]  ;;  %v1114_v56 = vld [vmem:[#allocation7 + $0x120] sm:$0xff] }
 0x129   : > { %1003 = vmatpush.msrb.mxu1 %v983_v57  ;;  %v1113_v57 = vld [vmem:[#allocation7 + $0x118] sm:$0xff] }
 0x12a   : > { %910 = vmatpush.msrb.mxu3 %v902_v60  ;;  %v980_v60 = vld [vmem:[#allocation13 + $0xa8] sm:$0xff] }
 0x12b   : > { %1004 = vmatpush.msrb.mxu1 %v982_v58  ;;  %v1112_v58 = vld [vmem:[#allocation7 + $0x110] sm:$0xff] }
 0x12c   : > { %911 = vmatpush.msrb.mxu3 %v901_v63  ;;  %v979_v63 = vld [vmem:[#allocation13 + $0xa0] sm:$0xff] }
 0x12d   : > { %1005 = vmatpush.msrb.mxu1 %v981_v59  ;;  %v1111_v59 = vld [vmem:[#allocation7 + $0x108] sm:$0xff] }
 0x12e   : > { %912 = vmatpush.msrb.mxu3 %v900_v1  ;;  %v977_v1 = vld [vmem:[#allocation13 + $0x90] sm:$0xff] }
 0x12f   : > { %v836_v40 = vpop.f32.mrf.mxu2  ;;  %1006 = vmatpush.msrb.mxu1 %v980_v60  ;;  %v1110_v60 = vld [vmem:[#allocation7 + $0x100] sm:$0xff] }
 0x130   : > { %913 = vmatpush.msrb.mxu3 %v899_v3  ;;  %v837_v43 = vadd.f32 %v3133_v41, %v836_v40  ;;  %v975_v3 = vld [vmem:[#allocation13 + $0x80] sm:$0xff]  ;;  %v1125_v40 = vld [vmem:[#allocation7 + $0x178] sm:$0xff] }
 0x131   : > { %1007 = vmatpush.msrb.mxu1 %v979_v63 }
 0x132   : > { %914 = vmatpush.msrb.mxu3 %v898_v5 }
 0x133   : > { %1008 = vmatpush.msrb.mxu1 %v978_v0 }
 0x134   : > { %915 = vmatpush.msrb.mxu3 %v897_v7 }
 0x135   : > { %1009 = vmatpush.msrb.mxu1 %v977_v1 }
 0x136   : > { %916 = vmatpush.msrb.mxu3 %v896_v9  ;;  %v968_v27 = vpop.f32.mrf.mxu0 }
 0x137   : > { %v969_v32 = vadd.f32 %v3131_v28, %v968_v27  ;;  %v839_v42 = vpop.f32.mrf.mxu2  ;;  %1010 = vmatpush.msrb.mxu1 %v976_v2  ;;  %v1161_v27 = vld [vmem:[#allocation10 + $0x148] sm:$0xff] }
 0x138   : > { %917 = vmatpush.msrb.mxu3 %v895_v11  ;;  %v840_v44 = vadd.f32 %v3133_v41, %v839_v42  ;;  %v1156_v41 = vld [vmem:[#allocation10 + $0x120] sm:$0xff]  ;;  %v1124_v42 = vld [vmem:[#allocation7 + $0x170] sm:$0xff] }
 0x139   : > { %1011 = vmatpush.msrb.mxu1 %v975_v3 }
 0x13a   : > { %918 = vmatpush.msrb.mxu3 %v894_v13  ;;  %1012 = vmatmul.f32.vlgmr.msrb.gmra.mxu1 %v3923_v31 }
 0x13c   : > { %919 = vmatpush.msrb.mxu3 %v893_v15  ;;  %v1167_v15 = vld [vmem:[#allocation10 + $0x178] sm:$0xff] }
 0x13e   : > { %920 = vmatpush.msrb.mxu3 %v892_v17  ;;  %v971_v29 = vpop.f32.mrf.mxu0  ;;  %v1166_v17 = vld [vmem:[#allocation10 + $0x170] sm:$0xff] }
 0x13f   : > { %v972_v30 = vadd.f32 %v3131_v28, %v971_v29  ;;  %v1160_v28 = vld [vmem:[#allocation10 + $0x140] sm:$0xff]  ;;  %v1159_v29 = vld [vmem:[#allocation10 + $0x138] sm:$0xff] }
 0x140   : > { %921 = vmatpush.msrb.mxu3 %v891_v19 }
 0x141   : > { %1033 = vmatpush.xpose.msrb.mxu2 %v972_v30 }
 0x142   : > { %922 = vmatpush.msrb.mxu3 %v890_v21  ;;  %1015 = vmatmul.f32.gmra.mxu1 %v3931_v37 }
 0x144   : > { %923 = vmatpush.msrb.mxu3 %v889_v22 }
 0x145   : > { %1034 = vmatpush.xpose.msrb.mxu2 %v969_v32  ;;  %v3134_v32 = vld [vmem:[#allocation14 + $0x1] ss:$0 sm:$0xff] }
 0x146   : > { %924 = vmatpush.msrb.mxu3 %v888_v23  ;;  %v1165_v23 = vld [vmem:[#allocation10 + $0x168] sm:$0xff] }
 0x147   : > { %925 = vmatmul.f32.vlgmr.msrb.gmra.mxu3 %v3926_v33 }
 0x149   : > { %1103 = vmatpush.msra.mxu2 %v840_v44  ;;  %v1154_v44 = vld [vmem:[#allocation10 + $0x110] sm:$0xff] }
 0x14b   : > { %1104 = vmatpush.msra.mxu2 %v837_v43  ;;  %v1155_v43 = vld [vmem:[#allocation10 + $0x118] sm:$0xff] }
 0x1aa   : > { %v859_v34 = vpop.f32.mrf.mxu3 }
 0x1ab   : > { %v863_v35 = vsel %vm862_vm0, %v859_v34, -inf }
 0x1ac   : > { %864 = vmax.xlane.f32.xlu0 %v863_v35 }
 0x1b7   : > { %v1013_v30 = vpop.f32.mrf.mxu1 }
 0x1b8   : > { %v1014_v35 = vadd.f32 %v3134_v32, %v1013_v30  ;;  %v1202_v30 = vld [vmem:[#allocation13 + $0x128] sm:$0xff] }
 0x1ca   : > { %v926_v38 = vpop.f32.mrf.mxu3 }
 0x1cb   : > { %v927_v39 = vadd.f32 %v3132_v36, %v926_v38  ;;  %v1158_v38 = vld [vmem:[#allocation10 + $0x130] sm:$0xff] }
 0x1cd   : > { %1035 = vmatmul.f32.vlgmr.msrb.gmra.mxu2 %v927_v39  ;;  %v1157_v39 = vld [vmem:[#allocation10 + $0x128] sm:$0xff] }
 0x1ce   : > { %1173 = vmatpush.msrb.mxu2 %v1167_v15 }
 0x1d0   : > { %1174 = vmatpush.msrb.mxu2 %v1166_v17  ;;  %v3136_v17 = vld [vmem:[#allocation8 + $0x2] ss:$0 sm:$0xff] }
 0x1d2   : > { %1175 = vmatpush.msrb.mxu2 %v1165_v23  ;;  %v1209_v23 = vld [vmem:[#allocation13 + $0x160] sm:$0xff] }
 0x1d4   : > { %1176 = vmatpush.msrb.mxu2 %v1164_v24  ;;  %v1208_v24 = vld [vmem:[#allocation13 + $0x158] sm:$0xff] }
 0x1d6   : > { %1177 = vmatpush.msrb.mxu2 %v1163_v25  ;;  %v1207_v25 = vld [vmem:[#allocation13 + $0x150] sm:$0xff] }
 0x1d8   : > { %1178 = vmatpush.msrb.mxu2 %v1162_v26  ;;  %v1206_v26 = vld [vmem:[#allocation13 + $0x148] sm:$0xff] }
 0x1da   : > { %1179 = vmatpush.msrb.mxu2 %v1161_v27  ;;  %v1205_v27 = vld [vmem:[#allocation13 + $0x140] sm:$0xff] }
 0x1dc   : > { %1180 = vmatpush.msrb.mxu2 %v1160_v28  ;;  %v1204_v28 = vld [vmem:[#allocation13 + $0x138] sm:$0xff] }
 0x1de   : > { %1181 = vmatpush.msrb.mxu2 %v1159_v29  ;;  %v1203_v29 = vld [vmem:[#allocation13 + $0x130] sm:$0xff] }
 0x1e0   : > { %1182 = vmatpush.msrb.mxu2 %v1158_v38  ;;  %v1197_v38 = vld [vmem:[#allocation13 + $0x100] sm:$0xff] }
 0x1e2   : > { %1183 = vmatpush.msrb.mxu2 %v1157_v39 }
 0x1e4   : > { %1184 = vmatpush.msrb.mxu2 %v1156_v41 }
 0x1e6   : > { %1185 = vmatpush.msrb.mxu2 %v1155_v43 }
 0x1e8   : > { %1186 = vmatpush.msrb.mxu2 %v1154_v44 }
 0x21f   : > { %v865_v45 = vpop.xlane.xlu0 %864 }
 0x220   : > { %v866_v46 = vsub.f32 %v859_v34, %v865_v45  ;;  %v1016_v34 = vpop.f32.mrf.mxu1  ;;  %v1153_v45 = vld [vmem:[#allocation10 + $0x108] sm:$0xff] }
 0x221   : > { %v1017_v36 = vadd.f32 %v3134_v32, %v1016_v34  ;;  %1187 = vmatpush.msrb.mxu2 %v1153_v45  ;;  %v1201_v32 = vld [vmem:[#allocation13 + $0x120] sm:$0xff]  ;;  %v1200_v34 = vld [vmem:[#allocation13 + $0x118] sm:$0xff] }
 0x222   : > { %v867_v47 = vmul.f32 1.442695, %v866_v46  ;;  %v1152_v46 = vld [vmem:[#allocation10 + $0x100] sm:$0xff] }
 0x223   : > { %1080 = vmatpush.msra.mxu3 %v1017_v36  ;;  %1188 = vmatpush.msrb.mxu2 %v1152_v46  ;;  %v1198_v36 = vld [vmem:[#allocation13 + $0x108] sm:$0xff] }
 0x224   : > { %3163 = vpow2.f32 %v867_v47  ;;  %v1123_v47 = vld [vmem:[#allocation7 + $0x168] sm:$0xff] }
 0x225   : > { %1081 = vmatpush.msra.mxu3 %v1014_v35  ;;  %v1199_v35 = vld [vmem:[#allocation13 + $0x110] sm:$0xff] }
 0x227   : > { %1131 = vmatpush.msrb.mxu3 %v1125_v40 }
 0x229   : > { %1132 = vmatpush.msrb.mxu3 %v1124_v42 }
 0x22a   : > { %v3164_v48 = vpop.eup %3163 }
 0x22b   : > { %v869_v49 = vsel %vm862_vm0, %v3164_v48, 0.0  ;;  %1133 = vmatpush.msrb.mxu3 %v1123_v47  ;;  %v3137_v47 = vld [vmem:[#allocation14 + $0x2] ss:$0 sm:$0xff] }
 0x22c   : > { %870 = vadd.xlane.f32.xlu1 %v869_v49  ;;  %v1121_v49 = vld [vmem:[#allocation7 + $0x158] sm:$0xff] }
 0x250   : > { %v1036_v61 = vpop.f32.mrf.mxu2 }
 0x251   : > { %v1039_v62 = vsel %vm862_vm0, %v1036_v61, -inf }
 0x252   : > { %1040 = vmax.xlane.f32.xlu0 %v1039_v62 }
 0x29f   : > { %v871_v4 = vpop.xlane.xlu1 %870 }
 0x2a0   : > { %3165 = vrcp.f32 %v871_v4  ;;  %v883_v8 = vand.u32 2147483648, %v871_v4  ;;  %v881_v10 = vand.u32 2147483647, %v871_v4  ;;  %vm877_vm2 = vweird.f32 %v871_v4 }
 0x2a2   : > { %v884_v12 = vor.u32 1.1754944e-38, %v883_v8  ;;  %vm882_vm4 = vcmp.eq.f32.partialorder %v881_v10, 8.507059e+37 }
 0x2a6   : > { %v3166_v5 = vpop.eup %3165 }
 0x2a7   : > { %v873_v6 = vmul.f32 %v3166_v5, %v871_v4  ;;  %vm878_vm1 = vweird.f32 %v3166_v5 }
 0x2a8   : > { %vm879_vm3 = vmor %vm877_vm2, %vm878_vm1 }
 0x2a9   : > { %v874_v7 = vsub.f32 1.0, %v873_v6 }
 0x2ab   : > { %v875_v9 = vmul.f32 %v3166_v5, %v874_v7 }
 0x2ad   : > { %v876_v11 = vadd.f32 %v3166_v5, %v875_v9 }
 0x2af   : > { %v880_v13 = vsel %vm879_vm3, %v3166_v5, %v876_v11  ;;  %v3135_v11 = vld [vmem:[#allocation11 + $0x2] ss:$0 sm:$0xff] }
 0x2b0   : > { %v885_v14 = vsel %vm882_vm4, %v884_v12, %v880_v13 }
 0x2b1   : > { %v886_v16 = vmul.f32 %v3164_v48, %v885_v14  ;;  %v1122_v48 = vld [vmem:[#allocation7 + $0x160] sm:$0xff] }
 0x2b2   : > { %1134 = vmatpush.msrb.mxu3 %v1122_v48 }
 0x2b3   : > { %2974 = vmatmul.msk.f32.vlgmr.msra.gmra.mxu2 %vm862_vm0, %v886_v16 }
 0x2b4   : > { %1135 = vmatpush.msrb.mxu3 %v1121_v49 }
 0x2b6   : > { %1136 = vmatpush.msrb.mxu3 %v1120_v50 }
 0x2b8   : > { %1137 = vmatpush.msrb.mxu3 %v1119_v51  ;;  %v1367_v51 = vld [vmem:[#allocation10 + $0x1f8] sm:$0xff] }
 0x2ba   : > { %1138 = vmatpush.msrb.mxu3 %v1118_v52  ;;  %v1366_v52 = vld [vmem:[#allocation10 + $0x1f0] sm:$0xff] }
 0x2bb   : > { %1189 = vmatmul.f32.vlgmr.msrb.gmra.mxu2 %v3923_v31 }
 0x2bc   : > { %1139 = vmatpush.msrb.mxu3 %v1117_v53  ;;  %v1365_v53 = vld [vmem:[#allocation10 + $0x1e8] sm:$0xff] }
 0x2be   : > { %1140 = vmatpush.msrb.mxu3 %v1116_v54  ;;  %v1364_v54 = vld [vmem:[#allocation10 + $0x1e0] sm:$0xff] }
 0x2c0   : > { %1141 = vmatpush.msrb.mxu3 %v1115_v55  ;;  %v1363_v55 = vld [vmem:[#allocation10 + $0x1d8] sm:$0xff] }
 0x2c2   : > { %1142 = vmatpush.msrb.mxu3 %v1114_v56  ;;  %v1325_v56 = vld [vmem:[#allocation7 + $0x1f8] sm:$0xff] }
 0x2c3   : > { %1192 = vmatmul.f32.gmra.mxu2 %v3931_v37 }
 0x2c4   : > { %1143 = vmatpush.msrb.mxu3 %v1113_v57  ;;  %v1362_v57 = vld [vmem:[#allocation10 + $0x1d0] sm:$0xff] }
 0x2c5   : > { %v1041_v18 = vpop.xlane.xlu0 %1040 }
 0x2c6   : > { %v1042_v19 = vsub.f32 %v1036_v61, %v1041_v18  ;;  %1144 = vmatpush.msrb.mxu3 %v1112_v58  ;;  %v1324_v58 = vld [vmem:[#allocation7 + $0x1f0] sm:$0xff] }
 0x2c8   : > { %v1043_v20 = vmul.f32 1.442695, %v1042_v19  ;;  %1145 = vmatpush.msrb.mxu3 %v1111_v59  ;;  %v1361_v59 = vld [vmem:[#allocation10 + $0x1c8] sm:$0xff] }
 0x2ca   : > { %3167 = vpow2.f32 %v1043_v20  ;;  %1146 = vmatpush.msrb.mxu3 %v1110_v60  ;;  %v1212_v20 = vld [vmem:[#allocation13 + $0x178] sm:$0xff] }
 0x2cb   : > { %1218 = vmatpush.msra.mxu0 %v1212_v20  ;;  %v1323_v60 = vld [vmem:[#allocation7 + $0x1e8] sm:$0xff]  ;;  %v1310_v20 = vld [vmem:[#allocation7 + $0x180] sm:$0xff] }
 0x2d0   : > { %v3945_v21 = vpop.eup %3167 }
 0x2d1   : > { %v1045_v22 = vsel %vm862_vm0, %v3945_v21, 0.0 }
 0x2d2   : > { %1046 = vadd.xlane.f32.xlu1 %v1045_v22  ;;  %v1210_v22 = vld [vmem:[#allocation13 + $0x168] sm:$0xff] }
 0x336   : > { %v1106_v9 = vpop.f32.mrf.mxu2 }
 0x33e   : > { %v1190_v10 = vpop.f32.mrf.mxu2 }
 0x33f   : > { %v1191_v14 = vadd.f32 %v3135_v11, %v1190_v10  ;;  %v1316_v10 = vld [vmem:[#allocation7 + $0x1b0] sm:$0xff] }
 0x345   : > { %v1047_v61 = vpop.xlane.xlu1 %1046 }
 0x346   : > { %3169 = vrcp.f32 %v1047_v61  ;;  %v1059_v1 = vand.u32 2147483648, %v1047_v61  ;;  %v1057_v3 = vand.u32 2147483647, %v1047_v61  ;;  %vm1053_vm6 = vweird.f32 %v1047_v61  ;;  %v1193_v12 = vpop.f32.mrf.mxu2 }
 0x347   : > { %v1194_v13 = vadd.f32 %v3135_v11, %v1193_v12  ;;  %v1353_v11 = vld [vmem:[#allocation10 + $0x188] sm:$0xff]  ;;  %v1315_v12 = vld [vmem:[#allocation7 + $0x1a8] sm:$0xff] }
 0x348   : > { %v1060_v5 = vor.u32 1.1754944e-38, %v1059_v1  ;;  %vm1058_vm8 = vcmp.eq.f32.partialorder %v1057_v3, 8.507059e+37  ;;  %v1358_v1 = vld [vmem:[#allocation10 + $0x1b0] sm:$0xff]  ;;  %v1357_v3 = vld [vmem:[#allocation10 + $0x1a8] sm:$0xff] }
 0x349   : > { %1255 = vmatpush.xpose.msra.mxu1 %v1194_v13  ;;  %v1352_v13 = vld [vmem:[#allocation10 + $0x180] sm:$0xff] }
 0x34c   : > { %v3170_v62 = vpop.eup %3169 }
 0x34d   : > { %v1049_v63 = vmul.f32 %v3170_v62, %v1047_v61  ;;  %vm1054_vm5 = vweird.f32 %v3170_v62  ;;  %1256 = vmatpush.xpose.msra.mxu1 %v1191_v14  ;;  %v1360_v61 = vld [vmem:[#allocation10 + $0x1c0] sm:$0xff]  ;;  %v1314_v14 = vld [vmem:[#allocation7 + $0x1a0] sm:$0xff] }
 0x34e   : > { %vm1055_vm7 = vmor %vm1053_vm6, %vm1054_vm5 }
 0x34f   : > { %v1050_v0 = vsub.f32 1.0, %v1049_v63  ;;  %v1359_v63 = vld [vmem:[#allocation10 + $0x1b8] sm:$0xff] }
 0x351   : > { %v1051_v2 = vmul.f32 %v3170_v62, %v1050_v0  ;;  %v1321_v0 = vld [vmem:[#allocation7 + $0x1d8] sm:$0xff] }
 0x353   : > { %v1052_v4 = vadd.f32 %v3170_v62, %v1051_v2  ;;  %v1320_v2 = vld [vmem:[#allocation7 + $0x1d0] sm:$0xff] }
 0x355   : > { %v1056_v6 = vsel %vm1055_vm7, %v3170_v62, %v1052_v4  ;;  %v1322_v62 = vld [vmem:[#allocation7 + $0x1e0] sm:$0xff]  ;;  %v1319_v4 = vld [vmem:[#allocation7 + $0x1c8] sm:$0xff] }
 0x356   : > { %v1061_v7 = vsel %vm1058_vm8, %v1060_v5, %v1056_v6  ;;  %v1356_v5 = vld [vmem:[#allocation10 + $0x1a0] sm:$0xff]  ;;  %v1318_v6 = vld [vmem:[#allocation7 + $0x1c0] sm:$0xff] }
 0x357   : > { %v1062_v8 = vmul.f32 %v3945_v21, %v1061_v7  ;;  %v1211_v21 = vld [vmem:[#allocation13 + $0x170] sm:$0xff] }
 0x358   : > { %1219 = vmatpush.msra.mxu0 %v1211_v21  ;;  %v1355_v7 = vld [vmem:[#allocation10 + $0x198] sm:$0xff] }
 0x359   : > { %2973 = vmatmul.msk.f32.vlgmr.msra.gmra.mxu3 %vm862_vm0, %v1062_v8  ;;  %v1317_v8 = vld [vmem:[#allocation7 + $0x1b8] sm:$0xff] }
 0x35a   : > { %1220 = vmatpush.msra.mxu0 %v1210_v22  ;;  %1331 = vmatpush.msra.mxu3 %v1325_v56  ;;  %v1399_v56 = vld [vmem:[#allocation13 + $0x190] sm:$0xff] }
 0x35c   : > { %1221 = vmatpush.msra.mxu0 %v1209_v23  ;;  %1332 = vmatpush.msra.mxu3 %v1324_v58  ;;  %v1397_v58 = vld [vmem:[#allocation13 + $0x180] sm:$0xff] }
 0x35e   : > { %1222 = vmatpush.msra.mxu0 %v1208_v24  ;;  %1333 = vmatpush.msra.mxu3 %v1323_v60 }
 0x360   : > { %1223 = vmatpush.msra.mxu0 %v1207_v25  ;;  %1334 = vmatpush.msra.mxu3 %v1322_v62 }
 0x361   : > { %1147 = vmatmul.f32.vlgmr.msrb.gmra.mxu3 %v3926_v33 }
 0x362   : > { %1224 = vmatpush.msra.mxu0 %v1206_v26  ;;  %1335 = vmatpush.msra.mxu3 %v1321_v0 }
 0x364   : > { %1225 = vmatpush.msra.mxu0 %v1205_v27  ;;  %1336 = vmatpush.msra.mxu3 %v1320_v2 }
 0x366   : > { %1226 = vmatpush.msra.mxu0 %v1204_v28  ;;  %1337 = vmatpush.msra.mxu3 %v1319_v4 }
 0x368   : > { %1227 = vmatpush.msra.mxu0 %v1203_v29  ;;  %1338 = vmatpush.msra.mxu3 %v1318_v6 }
 0x36a   : > { %1228 = vmatpush.msra.mxu0 %v1202_v30  ;;  %1339 = vmatpush.msra.mxu3 %v1317_v8 }
 0x36c   : > { %1229 = vmatpush.msra.mxu0 %v1201_v32  ;;  %1340 = vmatpush.msra.mxu3 %v1316_v10 }
 0x36e   : > { %1230 = vmatpush.msra.mxu0 %v1200_v34  ;;  %1341 = vmatpush.msra.mxu3 %v1315_v12 }
 0x370   : > { %1231 = vmatpush.msra.mxu0 %v1199_v35  ;;  %1342 = vmatpush.msra.mxu3 %v1314_v14 }
 0x372   : > { %1232 = vmatpush.msra.mxu0 %v1198_v36  ;;  %v3138_v36 = vld [vmem:[#allocation11 + $0x3] ss:$0 sm:$0xff] }
 0x374   : > { %1233 = vmatpush.msra.mxu0 %v1197_v38 }
 0x375   : > { %1234 = vmatmul.f32.vlgmr.msra.gmra.mxu0 %v3923_v31 }
 0x37d   : > { %1237 = vmatmul.f32.gmra.mxu0 %v3931_v37 }
 0x3dc   : > { %v1083_v15 = vpop.f32.mrf.mxu3 }
 0x3dd   : > { %v3954_v16 = vadd.f32 %v1106_v9, %v1083_v15  ;;  %v1354_v9 = vld [vmem:[#allocation10 + $0x190] sm:$0xff] }
 0x3de   : > { %v1313_v15 = vld [vmem:[#allocation7 + $0x198] sm:$0xff] }
 0x3df   : > { %1343 = vmatpush.msra.mxu3 %v1313_v15 }
 0x3e4   : > { %v1148_v18 = vpop.f32.mrf.mxu3 }
 0x3e5   : > { %v1149_v19 = vadd.f32 %v3136_v17, %v1148_v18  ;;  %v1312_v17 = vld [vmem:[#allocation7 + $0x190] sm:$0xff]  ;;  %v1311_v18 = vld [vmem:[#allocation7 + $0x188] sm:$0xff] }
 0x3e6   : > { %1344 = vmatpush.msra.mxu3 %v1312_v17 }
 0x3e7   : > { %1257 = vmatmul.f32.vlgmr.msra.gmra.mxu1 %v1149_v19 }
 0x3e8   : > { %1345 = vmatpush.msra.mxu3 %v1311_v18 }
 0x3ea   : > { %1346 = vmatpush.msra.mxu3 %v1310_v20  ;;  %v3203_v20 = vld [vmem:[%s3888_s19] sm:$0xff] }
 0x3eb   : > { %1347 = vmatmul.f32.vlgmr.msra.gmra.mxu3 %v3926_v33 }
 0x3f2   : > { %v1235_v44 = vpop.f32.mrf.mxu0 }
 0x3f3   : > { %v1236_v49 = vadd.f32 %v3137_v47, %v1235_v44  ;;  %v1412_v44 = vld [vmem:[#allocation13 + $0x1f8] sm:$0xff] }
 0x3f4   : > { %1418 = vmatpush.msra.mxu2 %v1412_v44  ;;  %v1555_v44 = vld [vmem:[#allocation16 + $0x68] sm:$0xff] }
 0x3fa   : > { %v1238_v48 = vpop.f32.mrf.mxu0 }
 0x3fb   : > { %v1239_v50 = vadd.f32 %v3137_v47, %v1238_v48  ;;  %v1409_v47 = vld [vmem:[#allocation13 + $0x1e0] sm:$0xff]  ;;  %v1407_v48 = vld [vmem:[#allocation13 + $0x1d0] sm:$0xff] }
 0x3fd   : > { %1302 = vmatpush.msrb.mxu1 %v1239_v50  ;;  %v1405_v50 = vld [vmem:[#allocation13 + $0x1c0] sm:$0xff] }
 0x3ff   : > { %1303 = vmatpush.msrb.mxu1 %v1236_v49  ;;  %v1406_v49 = vld [vmem:[#allocation13 + $0x1c8] sm:$0xff] }
 0x401   : > { %1373 = vmatpush.msra.mxu1 %v1367_v51  ;;  %v1404_v51 = vld [vmem:[#allocation13 + $0x1b8] sm:$0xff] }
 0x403   : > { %1374 = vmatpush.msra.mxu1 %v1366_v52  ;;  %v1403_v52 = vld [vmem:[#allocation13 + $0x1b0] sm:$0xff] }
 0x405   : > { %1375 = vmatpush.msra.mxu1 %v1365_v53  ;;  %v1402_v53 = vld [vmem:[#allocation13 + $0x1a8] sm:$0xff] }
 0x407   : > { %1376 = vmatpush.msra.mxu1 %v1364_v54  ;;  %v1401_v54 = vld [vmem:[#allocation13 + $0x1a0] sm:$0xff] }
 0x409   : > { %1377 = vmatpush.msra.mxu1 %v1363_v55  ;;  %v1400_v55 = vld [vmem:[#allocation13 + $0x198] sm:$0xff] }
 0x40b   : > { %1378 = vmatpush.msra.mxu1 %v1362_v57  ;;  %v1398_v57 = vld [vmem:[#allocation13 + $0x188] sm:$0xff] }
 0x40d   : > { %1379 = vmatpush.msra.mxu1 %v1361_v59 }
 0x40f   : > { %1380 = vmatpush.msra.mxu1 %v1360_v61 }
 0x411   : > { %1381 = vmatpush.msra.mxu1 %v1359_v63 }
 0x413   : > { %1382 = vmatpush.msra.mxu1 %v1358_v1 }
 0x415   : > { %1383 = vmatpush.msra.mxu1 %v1357_v3  ;;  %v3140_v3 = vld [vmem:[#allocation14 + $0x3] ss:$0 sm:$0xff] }
 0x417   : > { %1384 = vmatpush.msra.mxu1 %v1356_v5 }
 0x419   : > { %1385 = vmatpush.msra.mxu1 %v1355_v7 }
 0x41b   : > { %1386 = vmatpush.msra.mxu1 %v1354_v9 }
 0x41d   : > { %1387 = vmatpush.msra.mxu1 %v1353_v11 }
 0x41f   : > { %1388 = vmatpush.msra.mxu1 %v1352_v13 }
 0x464   : > { %v1258_v39 = vpop.f32.mrf.mxu1 }
 0x465   : > { %v1261_v40 = vsel %vm862_vm0, %v1258_v39, -inf }
 0x466   : > { %1262 = vmax.xlane.f32.xlu2 %v1261_v40  ;;  %v3139_v40 = vld [vmem:[#allocation8 + $0x3] ss:$0 sm:$0xff] }
 0x4d9   : > { %v1263_v41 = vpop.xlane.xlu2 %1262 }
 0x4da   : > { %v1264_v42 = vsub.f32 %v1258_v39, %v1263_v41  ;;  %v1348_v41 = vpop.f32.mrf.mxu3 }
 0x4dc   : > { %v1265_v43 = vmul.f32 1.442695, %v1264_v42 }
 0x4de   : > { %3171 = vpow2.f32 %v1265_v43  ;;  %v1349_v43 = vadd.f32 %v3139_v40, %v1348_v41  ;;  %v1559_v40 = vld [vmem:[#allocation16 + $0x88] sm:$0xff]  ;;  %v1556_v41 = vld [vmem:[#allocation16 + $0x70] sm:$0xff] }
 0x4e4   : > { %v3959_v45 = vpop.eup %3171 }
 0x4e5   : > { %v1267_v46 = vsel %vm862_vm0, %v3959_v45, 0.0 }
 0x4e6   : > { %1268 = vadd.xlane.f32.xlu2 %v1267_v46  ;;  %v1410_v46 = vld [vmem:[#allocation13 + $0x1e8] sm:$0xff] }
 0x559   : > { %v1269_v19 = vpop.xlane.xlu2 %1268 }
 0x55a   : > { %3173 = vrcp.f32 %v1269_v19  ;;  %v1281_v24 = vand.u32 2147483648, %v1269_v19  ;;  %v1279_v26 = vand.u32 2147483647, %v1269_v19  ;;  %vm1275_vm10 = vweird.f32 %v1269_v19 }
 0x55c   : > { %v1282_v28 = vor.u32 1.1754944e-38, %v1281_v24  ;;  %vm1280_vm12 = vcmp.eq.f32.partialorder %v1279_v26, 8.507059e+37  ;;  %v1573_v24 = vld [vmem:[#allocation16 + $0xf8] sm:$0xff]  ;;  %v1571_v26 = vld [vmem:[#allocation16 + $0xe8] sm:$0xff] }
 0x560   : > { %v3174_v21 = vpop.eup %3173 }
 0x561   : > { %v1271_v22 = vmul.f32 %v3174_v21, %v1269_v19  ;;  %vm1276_vm9 = vweird.f32 %v3174_v21 }
 0x562   : > { %vm1277_vm11 = vmor %vm1275_vm10, %vm1276_vm9 }
 0x563   : > { %v1272_v23 = vsub.f32 1.0, %v1271_v22 }
 0x565   : > { %v1273_v25 = vmul.f32 %v3174_v21, %v1272_v23  ;;  %v1572_v23 = vld [vmem:[#allocation16 + $0xf0] sm:$0xff] }
 0x566   : > { %1580 = vmatpush.msrb.mxu3 %v1572_v23 }
 0x567   : > { %v1274_v27 = vadd.f32 %v3174_v21, %v1273_v25  ;;  %v1570_v25 = vld [vmem:[#allocation16 + $0xe0] sm:$0xff] }
 0x568   : > { %1581 = vmatpush.msrb.mxu3 %v1570_v25 }
 0x569   : > { %v1278_v29 = vsel %vm1277_vm11, %v3174_v21, %v1274_v27  ;;  %v1568_v27 = vld [vmem:[#allocation16 + $0xd0] sm:$0xff] }
 0x56a   : > { %v1283_v30 = vsel %vm1280_vm12, %v1282_v28, %v1278_v29  ;;  %v1569_v28 = vld [vmem:[#allocation16 + $0xd8] sm:$0xff]  ;;  %1582 = vmatpush.msrb.mxu3 %v1568_v27  ;;  %v1566_v29 = vld [vmem:[#allocation16 + $0xc0] sm:$0xff] }
 0x56b   : > { %v1284_v32 = vmul.f32 %v3959_v45, %v1283_v30  ;;  %v1411_v45 = vld [vmem:[#allocation13 + $0x1f0] sm:$0xff] }
 0x56c   : > { %1419 = vmatpush.msra.mxu2 %v1411_v45  ;;  %v1567_v30 = vld [vmem:[#allocation16 + $0xc8] sm:$0xff]  ;;  %1583 = vmatpush.msrb.mxu3 %v1566_v29  ;;  %v1552_v45 = vld [vmem:[#allocation16 + $0x50] sm:$0xff]  ;;  %v3141_v29 = vld [vmem:[%s4145_s8] ss:$0 sm:$0xff] }
 0x56d   : > { %2975 = vmatmul.msk.f32.vlgmr.msrb.gmra.mxu1 %vm862_vm0, %v1284_v32  ;;  %v1564_v32 = vld [vmem:[#allocation16 + $0xb0] sm:$0xff] }
 0x56e   : > { %1420 = vmatpush.msra.mxu2 %v1410_v46  ;;  %1584 = vmatpush.msrb.mxu3 %v1564_v32  ;;  %v1553_v46 = vld [vmem:[#allocation16 + $0x58] sm:$0xff] }
 0x570   : > { %1421 = vmatpush.msra.mxu2 %v1409_v47  ;;  %v1550_v47 = vld [vmem:[#allocation16 + $0x40] sm:$0xff] }
 0x575   : > { %1389 = vmatmul.f32.vlgmr.msra.gmra.mxu1 %v3923_v31 }
 0x57d   : > { %1392 = vmatmul.f32.gmra.mxu1 %v3931_v37 }
 0x5ea   : > { %v1305_v33 = vpop.f32.mrf.mxu1 }
 0x5eb   : > { %v3969_v34 = vadd.f32 %v1305_v33, %v3954_v16  ;;  %v1408_v16 = vld [vmem:[#allocation13 + $0x1d8] sm:$0xff]  ;;  %v1565_v33 = vld [vmem:[#allocation16 + $0xb8] sm:$0xff] }
 0x5ec   : > { %1422 = vmatpush.msra.mxu2 %v1408_v16  ;;  %v1551_v16 = vld [vmem:[#allocation16 + $0x48] sm:$0xff] }
 0x5ee   : > { %1423 = vmatpush.msra.mxu2 %v1407_v48  ;;  %v1548_v48 = vld [vmem:[#allocation16 + $0x30] sm:$0xff] }
 0x5f0   : > { %1424 = vmatpush.msra.mxu2 %v1406_v49  ;;  %v1549_v49 = vld [vmem:[#allocation16 + $0x38] sm:$0xff] }
 0x5f2   : > { %v1390_v35 = vpop.f32.mrf.mxu1  ;;  %1425 = vmatpush.msra.mxu2 %v1405_v50  ;;  %v1546_v50 = vld [vmem:[#allocation16 + $0x20] sm:$0xff] }
 0x5f3   : > { %v1391_v42 = vadd.f32 %v3138_v36, %v1390_v35  ;;  %v1563_v35 = vld [vmem:[#allocation16 + $0xa8] sm:$0xff] }
 0x5f4   : > { %1426 = vmatpush.msra.mxu2 %v1404_v51  ;;  %v1547_v51 = vld [vmem:[#allocation16 + $0x28] sm:$0xff] }
 0x5f6   : > { %1427 = vmatpush.msra.mxu2 %v1403_v52  ;;  %v1544_v52 = vld [vmem:[#allocation16 + $0x10] sm:$0xff] }
 0x5f8   : > { %1428 = vmatpush.msra.mxu2 %v1402_v53  ;;  %v1545_v53 = vld [vmem:[#allocation16 + $0x18] sm:$0xff] }
 0x5fa   : > { %v1393_v38 = vpop.f32.mrf.mxu1  ;;  %1429 = vmatpush.msra.mxu2 %v1401_v54  ;;  %v1542_v54 = vld [vmem:[#allocation16] sm:$0xff] }
 0x5fb   : > { %v1394_v39 = vadd.f32 %v3138_v36, %v1393_v38  ;;  %v1560_v36 = vld [vmem:[#allocation16 + $0x90] sm:$0xff]  ;;  %v1561_v38 = vld [vmem:[#allocation16 + $0x98] sm:$0xff] }
 0x5fc   : > { %1430 = vmatpush.msra.mxu2 %v1400_v55  ;;  %v1543_v55 = vld [vmem:[#allocation16 + $0x8] sm:$0xff] }
 0x5fd   : > { %1455 = vmatpush.xpose.msrb.mxu0 %v1394_v39  ;;  %v1558_v39 = vld [vmem:[#allocation16 + $0x80] sm:$0xff] }
 0x5fe   : > { %1431 = vmatpush.msra.mxu2 %v1399_v56 }
 0x600   : > { %1432 = vmatpush.msra.mxu2 %v1398_v57 }
 0x601   : > { %1456 = vmatpush.xpose.msrb.mxu0 %v1391_v42  ;;  %v1557_v42 = vld [vmem:[#allocation16 + $0x78] sm:$0xff] }
 0x602   : > { %1433 = vmatpush.msra.mxu2 %v1397_v58  ;;  %v1653_v58 = vld [vmem:[#allocation17 + $0xf8] sm:$0xff] }
 0x603   : > { %1434 = vmatmul.f32.vlgmr.msra.gmra.mxu2 %v3923_v31 }
 0x604   : > { %1457 = vmatmul.f32.vlgmr.msrb.gmra.mxu0 %v1349_v43  ;;  %v1554_v43 = vld [vmem:[#allocation16 + $0x60] sm:$0xff]  ;;  %1678 = vmatpush.msrb.mxu2 %v1653_v58 }
 0x605   : > { %v1784_v58 = vld [vmem:[#allocation10 + $0x250] sm:$0xff] }
 0x60b   : > { %1437 = vmatmul.f32.gmra.mxu2 %v3931_v37 }
 0x681   : > { %v1458_v59 = vpop.f32.mrf.mxu0 }
 0x682   : > { %v1461_v60 = vsel %vm862_vm0, %v1458_v59, -inf }
 0x683   : > { %1462 = vmax.xlane.f32.xlu0 %v1461_v60 }
 0x686   : > { %v1435_v2 = vpop.f32.mrf.mxu2 }
 0x687   : > { %v1436_v5 = vadd.f32 %v3140_v3, %v1435_v2  ;;  %v1635_v2 = vld [vmem:[#allocation17 + $0x68] sm:$0xff] }
 0x68e   : > { %v1438_v4 = vpop.f32.mrf.mxu2 }
 0x68f   : > { %v1439_v6 = vadd.f32 %v3140_v3, %v1438_v4  ;;  %v1650_v4 = vld [vmem:[#allocation17 + $0xe0] sm:$0xff] }
 0x691   : > { %1502 = vmatpush.msra.mxu0 %v1439_v6 }
 0x693   : > { %1503 = vmatpush.msra.mxu0 %v1436_v5  ;;  %v1634_v5 = vld [vmem:[#allocation17 + $0x60] sm:$0xff] }
 0x695   : > { %1600 = vmatpush.msrb.mxu0 %v1573_v24  ;;  %v1642_v24 = vld [vmem:[#allocation17 + $0xa0] sm:$0xff] }
 0x697   : > { %1601 = vmatpush.msrb.mxu0 %v1571_v26  ;;  %v1641_v26 = vld [vmem:[#allocation17 + $0x98] sm:$0xff] }
 0x699   : > { %1602 = vmatpush.msrb.mxu0 %v1569_v28 }
 0x69b   : > { %1603 = vmatpush.msrb.mxu0 %v1567_v30 }
 0x69d   : > { %1604 = vmatpush.msrb.mxu0 %v1565_v33  ;;  %v3142_v33 = vld [vmem:[%s4146_s9] ss:$0 sm:$0xff] }
 0x69f   : > { %1605 = vmatpush.msrb.mxu0 %v1563_v35 }
 0x6a1   : > { %1606 = vmatpush.msrb.mxu0 %v1561_v38  ;;  %v1626_v38 = vld [vmem:[#allocation17 + $0x20] sm:$0xff] }
 0x6a3   : > { %1607 = vmatpush.msrb.mxu0 %v1559_v40  ;;  %v1625_v40 = vld [vmem:[#allocation17 + $0x18] sm:$0xff] }
 0x6a5   : > { %1608 = vmatpush.msrb.mxu0 %v1557_v42  ;;  %v1624_v42 = vld [vmem:[#allocation17 + $0x10] sm:$0xff] }
 0x6a7   : > { %1609 = vmatpush.msrb.mxu0 %v1555_v44  ;;  %v1622_v44 = vld [vmem:[#allocation17] sm:$0xff] }
 0x6a9   : > { %1610 = vmatpush.msrb.mxu0 %v1553_v46 }
 0x6ab   : > { %1611 = vmatpush.msrb.mxu0 %v1551_v16 }
 0x6ad   : > { %1612 = vmatpush.msrb.mxu0 %v1549_v49 }
 0x6af   : > { %1613 = vmatpush.msrb.mxu0 %v1547_v51 }
 0x6b1   : > { %1614 = vmatpush.msrb.mxu0 %v1545_v53  ;;  %v1789_v53 = vld [vmem:[#allocation10 + $0x278] sm:$0xff] }
 0x6b3   : > { %1615 = vmatpush.msrb.mxu0 %v1543_v55  ;;  %v1787_v55 = vld [vmem:[#allocation10 + $0x268] sm:$0xff] }
 0x6f6   : > { %v1463_v61 = vpop.xlane.xlu0 %1462 }
 0x6f7   : > { %v1464_v62 = vsub.f32 %v1458_v59, %v1463_v61  ;;  %v1652_v59 = vld [vmem:[#allocation17 + $0xf0] sm:$0xff]  ;;  %v1637_v61 = vld [vmem:[#allocation17 + $0x78] sm:$0xff] }
 0x6f8   : > { %1658 = vmatpush.msrb.mxu1 %v1637_v61  ;;  %1679 = vmatpush.msrb.mxu2 %v1652_v59  ;;  %v1783_v59 = vld [vmem:[#allocation10 + $0x248] sm:$0xff]  ;;  %v1781_v61 = vld [vmem:[#allocation10 + $0x238] sm:$0xff] }
 0x6f9   : > { %v1465_v63 = vmul.f32 1.442695, %v1464_v62  ;;  %v1636_v62 = vld [vmem:[#allocation17 + $0x70] sm:$0xff] }
 0x6fa   : > { %1659 = vmatpush.msrb.mxu1 %v1636_v62  ;;  %v1780_v62 = vld [vmem:[#allocation10 + $0x230] sm:$0xff] }
 0x6fb   : > { %3175 = vpow2.f32 %v1465_v63 }
 0x6fc   : > { %1660 = vmatpush.msrb.mxu1 %v1635_v2  ;;  %v1777_v2 = vld [vmem:[#allocation10 + $0x218] sm:$0xff] }
 0x6fe   : > { %1661 = vmatpush.msrb.mxu1 %v1634_v5  ;;  %v1776_v5 = vld [vmem:[#allocation10 + $0x210] sm:$0xff] }
 0x701   : > { %v3176_v0 = vpop.eup %3175 }
 0x702   : > { %v1467_v1 = vsel %vm862_vm0, %v3176_v0, 0.0 }
 0x703   : > { %1468 = vadd.xlane.f32.xlu1 %v1467_v1  ;;  %v1651_v1 = vld [vmem:[#allocation17 + $0xe8] sm:$0xff] }
 0x704   : > { %1680 = vmatpush.msrb.mxu2 %v1651_v1  ;;  %v1778_v1 = vld [vmem:[#allocation10 + $0x220] sm:$0xff] }
 0x706   : > { %1681 = vmatpush.msrb.mxu2 %v1650_v4 }
 0x776   : > { %v1469_v7 = vpop.xlane.xlu1 %1468 }
 0x777   : > { %3177 = vrcp.f32 %v1469_v7  ;;  %v1481_v9 = vand.u32 2147483648, %v1469_v7  ;;  %v1479_v11 = vand.u32 2147483647, %v1469_v7  ;;  %vm1475_vm14 = vweird.f32 %v1469_v7 }
 0x779   : > { %v1482_v13 = vor.u32 1.1754944e-38, %v1481_v9  ;;  %vm1480_vm1 = vcmp.eq.f32.partialorder %v1479_v11, 8.507059e+37  ;;  %v1647_v9 = vld [vmem:[#allocation17 + $0xc8] sm:$0xff]  ;;  %v1646_v11 = vld [vmem:[#allocation17 + $0xc0] sm:$0xff] }
 0x77d   : > { %v3178_v31 = vpop.eup %3177 }
 0x77e   : > { %v1471_v8 = vmul.f32 %v3178_v31, %v1469_v7  ;;  %vm1476_vm13 = vweird.f32 %v3178_v31  ;;  %v1649_v7 = vld [vmem:[#allocation17 + $0xd8] sm:$0xff] }
 0x77f   : > { %vm1477_vm15 = vmor %vm1475_vm14, %vm1476_vm13  ;;  %1682 = vmatpush.msrb.mxu2 %v1649_v7 }
 0x780   : > { %v1472_v37 = vsub.f32 1.0, %v1471_v8  ;;  %v1648_v8 = vld [vmem:[#allocation17 + $0xd0] sm:$0xff] }
 0x781   : > { %1683 = vmatpush.msrb.mxu2 %v1648_v8 }
 0x782   : > { %v1473_v10 = vmul.f32 %v3178_v31, %v1472_v37  ;;  %v1632_v37 = vld [vmem:[#allocation17 + $0x50] sm:$0xff] }
 0x783   : > { %1684 = vmatpush.msrb.mxu2 %v1647_v9 }
 0x784   : > { %v1474_v12 = vadd.f32 %v3178_v31, %v1473_v10  ;;  %v1631_v10 = vld [vmem:[#allocation17 + $0x48] sm:$0xff] }
 0x785   : > { %1685 = vmatpush.msrb.mxu2 %v1646_v11  ;;  %v4016_v11 = vld [vmem:[%s3896_s14 + $0x8] sm:$0xff] }
 0x786   : > { %v1478_v14 = vsel %vm1477_vm15, %v3178_v31, %v1474_v12  ;;  %v1633_v31 = vld [vmem:[#allocation17 + $0x58] sm:$0xff]  ;;  %v1630_v12 = vld [vmem:[#allocation17 + $0x40] sm:$0xff] }
 0x787   : > { %v1483_v15 = vsel %vm1480_vm1, %v1482_v13, %v1478_v14  ;;  %1662 = vmatpush.msrb.mxu1 %v1633_v31  ;;  %v1645_v14 = vld [vmem:[#allocation17 + $0xb8] sm:$0xff] }
 0x788   : > { %v1484_v17 = vmul.f32 %v3176_v0, %v1483_v15  ;;  %1686 = vmatpush.msrb.mxu2 %v1645_v14  ;;  %v1775_v31 = vld [vmem:[#allocation10 + $0x208] sm:$0xff]  ;;  %v1745_v14 = vld [vmem:[#allocation7 + $0x268] sm:$0xff] }
 0x789   : > { %1663 = vmatpush.msrb.mxu1 %v1632_v37  ;;  %v1774_v37 = vld [vmem:[#allocation10 + $0x200] sm:$0xff] }
 0x78a   : > { %2976 = vmatmul.msk.f32.vlgmr.msra.gmra.mxu0 %vm862_vm0, %v1484_v17  ;;  %v1629_v17 = vld [vmem:[#allocation17 + $0x38] sm:$0xff] }
 0x78b   : > { %1664 = vmatpush.msrb.mxu1 %v1631_v10  ;;  %1795 = vmatpush.msra.mxu0 %v1789_v53  ;;  %v4012_v10 = vld [vmem:[%s3896_s14] sm:$0xff] }
 0x78d   : > { %1665 = vmatpush.msrb.mxu1 %v1630_v12  ;;  %v1747_v12 = vld [vmem:[#allocation7 + $0x278] sm:$0xff] }
 0x78f   : > { %1666 = vmatpush.msrb.mxu1 %v1629_v17  ;;  %v1743_v17 = vld [vmem:[#allocation7 + $0x258] sm:$0xff] }
 0x807   : > { %v1505_v18 = vpop.f32.mrf.mxu0 }
 0x808   : > { %v1508_v19 = vadd.f32 %v1505_v18, %v3969_v34  ;;  %v1562_v34 = vld [vmem:[#allocation16 + $0xa0] sm:$0xff]  ;;  %v1644_v18 = vld [vmem:[#allocation17 + $0xb0] sm:$0xff] }
 0x809   : > { %1585 = vmatpush.msrb.mxu3 %v1562_v34  ;;  %1687 = vmatpush.msrb.mxu2 %v1644_v18  ;;  %v1742_v18 = vld [vmem:[#allocation7 + $0x250] sm:$0xff] }
 0x80a   : > { %v3978_v21 = vadd.f32 %v3203_v20, %v1508_v19  ;;  %v1628_v20 = vld [vmem:[#allocation17 + $0x30] sm:$0xff] }
 0x80b   : > { %1586 = vmatpush.msrb.mxu3 %v1560_v36  ;;  %1667 = vmatpush.msrb.mxu1 %v1628_v20  ;;  %v1640_v36 = vld [vmem:[#allocation17 + $0x90] sm:$0xff]  ;;  %v1740_v20 = vld [vmem:[#allocation7 + $0x240] sm:$0xff] }
 0x80c   : > { %1512 = vadd.xlane.f32.xlu2 %v3978_v21  ;;  %v1515_v22 = vmul.f32 %v3978_v21, %v3978_v21 }
 0x80d   : > { %1587 = vmatpush.msrb.mxu3 %v1558_v39  ;;  %v1639_v39 = vld [vmem:[#allocation17 + $0x88] sm:$0xff] }
 0x80e   : > { %1516 = vadd.xlane.f32.xlu0 %v1515_v22  ;;  %v1643_v22 = vld [vmem:[#allocation17 + $0xa8] sm:$0xff] }
 0x80f   : > { %1588 = vmatpush.msrb.mxu3 %v1556_v41  ;;  %1688 = vmatpush.msrb.mxu2 %v1643_v22  ;;  %v1638_v41 = vld [vmem:[#allocation17 + $0x80] sm:$0xff] }
 0x810   : > { %v1739_v22 = vld [vmem:[#allocation7 + $0x238] sm:$0xff] }
 0x811   : > { %1589 = vmatpush.msrb.mxu3 %v1554_v43  ;;  %1689 = vmatpush.msrb.mxu2 %v1642_v24  ;;  %v1623_v43 = vld [vmem:[#allocation17 + $0x8] sm:$0xff]  ;;  %v1737_v24 = vld [vmem:[#allocation7 + $0x228] sm:$0xff] }
 0x813   : > { %1590 = vmatpush.msrb.mxu3 %v1552_v45  ;;  %1690 = vmatpush.msrb.mxu2 %v1641_v26  ;;  %v1574_v45 = vld [vmem:[%s4198_s4] sm:$0x3]  ;;  %v1735_v26 = vld [vmem:[#allocation7 + $0x218] sm:$0xff] }
 0x814   : > { %v1577_v46 = vperm.slane %v1574_v45, 1  ;;  %v1576_v49 = vperm.slane %v1574_v45, 0 }
 0x815   : > { %1591 = vmatpush.msrb.mxu3 %v1550_v47  ;;  %1691 = vmatpush.msrb.mxu2 %v1640_v36 }
 0x817   : > { %1592 = vmatpush.msrb.mxu3 %v1548_v48  ;;  %1692 = vmatpush.msrb.mxu2 %v1639_v39 }
 0x819   : > { %1593 = vmatpush.msrb.mxu3 %v1546_v50  ;;  %1693 = vmatpush.msrb.mxu2 %v1638_v41 }
 0x81b   : > { %1594 = vmatpush.msrb.mxu3 %v1544_v52 }
 0x81d   : > { %1595 = vmatpush.msrb.mxu3 %v1542_v54  ;;  %v1788_v54 = vld [vmem:[#allocation10 + $0x270] sm:$0xff] }
 0x81e   : > { %1796 = vmatpush.msra.mxu0 %v1788_v54 }
 0x81f   : > { %1753 = vmatpush.msra.mxu3 %v1747_v12  ;;  %v1918_v12 = vld [vmem:[#allocation7 + $0x2d0] sm:$0xff] }
 0x820   : > { %1797 = vmatpush.msra.mxu0 %v1787_v55 }
 0x87f   : > { %v1513_v56 = vpop.xlane.xlu2 %1512 }
 0x880   : > { %v3983_v57 = vmul.f32 0.03125, %v1513_v56  ;;  %v1786_v56 = vld [vmem:[#allocation10 + $0x260] sm:$0xff] }
 0x881   : > { %v1517_v60 = vpop.xlane.xlu0 %1516  ;;  %1798 = vmatpush.msra.mxu0 %v1786_v56  ;;  %v1954_v56 = vld [vmem:[#allocation10 + $0x2a0] sm:$0xff] }
 0x882   : > { %v1519_v63 = vmul.f32 %v3983_v57, %v3983_v57  ;;  %v1518_v0 = vmul.f32 0.03125, %v1517_v60  ;;  %v1521_v28 = vsub.f32 %v3978_v21, %v3983_v57  ;;  %v1627_v21 = vld [vmem:[#allocation17 + $0x28] sm:$0xff]  ;;  %v1782_v60 = vld [vmem:[#allocation10 + $0x240] sm:$0xff] }
 0x883   : > { %1668 = vmatpush.msrb.mxu1 %v1627_v21  ;;  %v1785_v57 = vld [vmem:[#allocation10 + $0x258] sm:$0xff] }
 0x884   : > { %v1520_v3 = vsub.f32 %v1518_v0, %v1519_v63  ;;  %1799 = vmatpush.msra.mxu0 %v1785_v57  ;;  %v1779_v63 = vld [vmem:[#allocation10 + $0x228] sm:$0xff] }
 0x885   : > { %1669 = vmatpush.msrb.mxu1 %v1626_v38  ;;  %v3143_v0 = vld [vmem:[%s4199_s17] ss:$0 sm:$0xff] }
 0x886   : > { %v1522_v6 = vadd.f32 1e-05, %v1520_v3  ;;  %1800 = vmatpush.msra.mxu0 %v1784_v58  ;;  %v1963_v38 = vld [vmem:[#allocation10 + $0x2e8] sm:$0xff] }
 0x887   : > { %1670 = vmatpush.msrb.mxu1 %v1625_v40  ;;  %v1962_v40 = vld [vmem:[#allocation10 + $0x2e0] sm:$0xff] }
 0x888   : > { %3179 = vrsqrt.f32 %v1522_v6  ;;  %vm1529_vm3 = vweird.f32 %v1522_v6  ;;  %1801 = vmatpush.msra.mxu0 %v1783_v59  ;;  %v1953_v59 = vld [vmem:[#allocation10 + $0x298] sm:$0xff] }
 0x889   : > { %1671 = vmatpush.msrb.mxu1 %v1624_v42  ;;  %v1961_v42 = vld [vmem:[#allocation10 + $0x2d8] sm:$0xff] }
 0x88a   : > { %1802 = vmatpush.msra.mxu0 %v1782_v60  ;;  %v3144_v60 = vld [vmem:[%s4200_s10] ss:$0 sm:$0xff] }
 0x88b   : > { %1672 = vmatpush.msrb.mxu1 %v1623_v43  ;;  %v1960_v43 = vld [vmem:[#allocation10 + $0x2d0] sm:$0xff] }
 0x88c   : > { %1803 = vmatpush.msra.mxu0 %v1781_v61 }
 0x88d   : > { %1673 = vmatpush.msrb.mxu1 %v1622_v44  ;;  %v1959_v44 = vld [vmem:[#allocation10 + $0x2c8] sm:$0xff] }
 0x88e   : > { %v3180_v13 = vpop.eup %3179  ;;  %1804 = vmatpush.msra.mxu0 %v1780_v62 }
 0x88f   : > { %v1524_v15 = vmul.f32 %v3180_v13, %v1522_v6  ;;  %vm1530_vm2 = vweird.f32 %v3180_v13 }
 0x890   : > { %vm1531_vm4 = vmor %vm1529_vm3, %vm1530_vm2  ;;  %1805 = vmatpush.msra.mxu0 %v1779_v63  ;;  %v1952_v63 = vld [vmem:[#allocation10 + $0x290] sm:$0xff] }
 0x891   : > { %v1525_v19 = vmul.f32 %v3180_v13, %v1524_v15  ;;  %v1744_v15 = vld [vmem:[#allocation7 + $0x260] sm:$0xff] }
 0x892   : > { %1806 = vmatpush.msra.mxu0 %v1778_v1 }
 0x893   : > { %v1526_v23 = vmul.f32 0.5, %v1525_v19  ;;  %v1741_v19 = vld [vmem:[#allocation7 + $0x248] sm:$0xff] }
 0x894   : > { %1807 = vmatpush.msra.mxu0 %v1777_v2 }
 0x895   : > { %v1527_v25 = vsub.f32 1.5, %v1526_v23  ;;  %v1738_v23 = vld [vmem:[#allocation7 + $0x230] sm:$0xff] }
 0x896   : > { %1808 = vmatpush.msra.mxu0 %v1776_v5  ;;  %v1922_v5 = vld [vmem:[#allocation7 + $0x2f0] sm:$0xff] }
 0x897   : > { %v1528_v27 = vmul.f32 %v3180_v13, %v1527_v25  ;;  %v1736_v25 = vld [vmem:[#allocation7 + $0x220] sm:$0xff] }
 0x898   : > { %1809 = vmatpush.msra.mxu0 %v1775_v31  ;;  %v1921_v31 = vld [vmem:[#allocation7 + $0x2e8] sm:$0xff] }
 0x899   : > { %v1532_v30 = vsel %vm1531_vm4, %v3180_v13, %v1528_v27  ;;  %v1746_v13 = vld [vmem:[#allocation7 + $0x270] sm:$0xff] }
 0x89a   : > { %v1533_v32 = vmul.f32 %v1532_v30, %v1521_v28  ;;  %1810 = vmatpush.msra.mxu0 %v1774_v37  ;;  %1754 = vmatpush.msra.mxu3 %v1746_v13  ;;  %v1734_v27 = vld [vmem:[#allocation7 + $0x210] sm:$0xff]  ;;  %v1733_v28 = vld [vmem:[#allocation7 + $0x208] sm:$0xff]  ;;  %v1920_v37 = vld [vmem:[#allocation7 + $0x2e0] sm:$0xff] }
 0x89b   : > { %v1917_v13 = vld [vmem:[#allocation7 + $0x2c8] sm:$0xff] }
 0x89c   : > { %v1537_v34 = vmul.f32 %v3141_v29, %v1533_v32  ;;  %1755 = vmatpush.msra.mxu3 %v1745_v14  ;;  %v1732_v29 = vld [vmem:[#allocation7 + $0x200] sm:$0xff] }
 0x89d   : > { %v1916_v14 = vld [vmem:[#allocation7 + $0x2c0] sm:$0xff] }
 0x89e   : > { %v3995_v35 = vadd.f32 %v3142_v33, %v1537_v34  ;;  %1756 = vmatpush.msra.mxu3 %v1744_v15  ;;  %v1965_v33 = vld [vmem:[#allocation10 + $0x2f8] sm:$0xff]  ;;  %v1964_v34 = vld [vmem:[#allocation10 + $0x2f0] sm:$0xff] }
 0x89f   : > { %v1915_v15 = vld [vmem:[#allocation7 + $0x2b8] sm:$0xff] }
 0x8a0   : > { %1596 = vmatmul.f32.vlgmr.msrb.gmra.mxu3 %v3995_v35  ;;  %1616 = vmatmul.f32.vlgmr.msrb.gmra.mxu0 %v3995_v35 }
 0x8a1   : > { %1757 = vmatpush.msra.mxu3 %v1743_v17  ;;  %v1914_v17 = vld [vmem:[#allocation7 + $0x2b0] sm:$0xff] }
 0x8a3   : > { %1758 = vmatpush.msra.mxu3 %v1742_v18  ;;  %v1913_v18 = vld [vmem:[#allocation7 + $0x2a8] sm:$0xff] }
 0x8a5   : > { %1759 = vmatpush.msra.mxu3 %v1741_v19  ;;  %v1912_v19 = vld [vmem:[#allocation7 + $0x2a0] sm:$0xff] }
 0x8a7   : > { %1760 = vmatpush.msra.mxu3 %v1740_v20  ;;  %v1911_v20 = vld [vmem:[#allocation7 + $0x298] sm:$0xff] }
 0x8a8   : > { %1811 = vmatmul.f32.vlgmr.msra.gmra.mxu0 %v4012_v10 }
 0x8a9   : > { %1761 = vmatpush.msra.mxu3 %v1739_v22  ;;  %v1910_v22 = vld [vmem:[#allocation7 + $0x290] sm:$0xff] }
 0x8ab   : > { %1762 = vmatpush.msra.mxu3 %v1738_v23  ;;  %v1909_v23 = vld [vmem:[#allocation7 + $0x288] sm:$0xff] }
 0x8ad   : > { %1763 = vmatpush.msra.mxu3 %v1737_v24  ;;  %v1908_v24 = vld [vmem:[#allocation7 + $0x280] sm:$0xff] }
 0x8af   : > { %1764 = vmatpush.msra.mxu3 %v1736_v25  ;;  %v1834_v25 = vld [vmem:[#allocation13 + $0x278] sm:$0xff] }
 0x8b0   : > { %1814 = vmatmul.f32.gmra.mxu0 %v4016_v11  ;;  %1840 = vmatpush.msra.mxu1 %v1834_v25  ;;  %v2183_v25 = vld [vmem:[#allocation10 + $0x358] sm:$0xff] }
 0x8b1   : > { %1765 = vmatpush.msra.mxu3 %v1735_v26  ;;  %v1833_v26 = vld [vmem:[#allocation13 + $0x270] sm:$0xff] }
 0x8b2   : > { %1841 = vmatpush.msra.mxu1 %v1833_v26  ;;  %v2182_v26 = vld [vmem:[#allocation10 + $0x350] sm:$0xff] }
 0x8b3   : > { %1766 = vmatpush.msra.mxu3 %v1734_v27  ;;  %v1832_v27 = vld [vmem:[#allocation13 + $0x268] sm:$0xff] }
 0x8b4   : > { %1842 = vmatpush.msra.mxu1 %v1832_v27  ;;  %v2181_v27 = vld [vmem:[#allocation10 + $0x348] sm:$0xff] }
 0x8b5   : > { %1767 = vmatpush.msra.mxu3 %v1733_v28  ;;  %v1831_v28 = vld [vmem:[#allocation13 + $0x260] sm:$0xff] }
 0x8b6   : > { %1843 = vmatpush.msra.mxu1 %v1831_v28 }
 0x8b7   : > { %1768 = vmatpush.msra.mxu3 %v1732_v29  ;;  %v1830_v29 = vld [vmem:[#allocation13 + $0x258] sm:$0xff] }
 0x8b8   : > { %1844 = vmatpush.msra.mxu1 %v1830_v29  ;;  %v2180_v29 = vld [vmem:[#allocation10 + $0x340] sm:$0xff] }
 0x8b9   : > { %1971 = vmatpush.msrb.mxu3 %v1965_v33  ;;  %v1827_v33 = vld [vmem:[#allocation13 + $0x240] sm:$0xff] }
 0x8bb   : > { %1972 = vmatpush.msrb.mxu3 %v1964_v34  ;;  %v1826_v34 = vld [vmem:[#allocation13 + $0x238] sm:$0xff] }
 0x8bd   : > { %1973 = vmatpush.msrb.mxu3 %v1963_v38  ;;  %v1823_v38 = vld [vmem:[#allocation13 + $0x220] sm:$0xff] }
 0x8bf   : > { %1974 = vmatpush.msrb.mxu3 %v1962_v40 }
 0x8c1   : > { %1975 = vmatpush.msrb.mxu3 %v1961_v42  ;;  %v1821_v42 = vld [vmem:[#allocation13 + $0x210] sm:$0xff] }
 0x8c3   : > { %1976 = vmatpush.msrb.mxu3 %v1960_v43  ;;  %v1820_v43 = vld [vmem:[#allocation13 + $0x208] sm:$0xff] }
 0x8c5   : > { %1977 = vmatpush.msrb.mxu3 %v1959_v44  ;;  %v1819_v44 = vld [vmem:[#allocation13 + $0x200] sm:$0xff] }
 0x91d   : > { %v1617_v47 = vpop.f32.mrf.mxu0 }
 0x91e   : > { %v1618_v16 = vadd.f32 %v1617_v47, %v1577_v46  ;;  %v1958_v46 = vld [vmem:[#allocation10 + $0x2c0] sm:$0xff] }
 0x91f   : > { %1978 = vmatpush.msrb.mxu3 %v1958_v46  ;;  %v3148_v46 = vld [vmem:[#allocation11 + $0x5] ss:$0 sm:$0xff] }
 0x920   : > { %v1621_v48 = vmax.f32 %v1618_v16, 0.0  ;;  %v1957_v16 = vld [vmem:[#allocation10 + $0x2b8] sm:$0xff] }
 0x921   : > { %1979 = vmatpush.msrb.mxu3 %v1957_v16 }
 0x922   : > { %1694 = vmatmul.f32.vlgmr.msrb.gmra.mxu2 %v1621_v48 }
 0x923   : > { %v1597_v50 = vpop.f32.mrf.mxu3 }
 0x924   : > { %v1598_v51 = vadd.f32 %v1597_v50, %v1576_v49  ;;  %v3146_v49 = vld [vmem:[#allocation11 + $0x4] ss:$0 sm:$0xff]  ;;  %v1956_v50 = vld [vmem:[#allocation10 + $0x2b0] sm:$0xff] }
 0x925   : > { %v1812_v45 = vpop.f32.mrf.mxu0  ;;  %1980 = vmatpush.msrb.mxu3 %v1956_v50 }
 0x926   : > { %v1620_v52 = vmax.f32 %v1598_v51, 0.0  ;;  %v1813_v58 = vadd.f32 %v3146_v49, %v1812_v45 }
 0x928   : > { %1674 = vmatmul.f32.vlgmr.msrb.gmra.mxu1 %v1620_v52  ;;  %v1955_v52 = vld [vmem:[#allocation10 + $0x2a8] sm:$0xff] }
 0x929   : > { %1981 = vmatpush.msrb.mxu3 %v1955_v52 }
 0x92b   : > { %1982 = vmatpush.msrb.mxu3 %v1954_v56 }
 0x92d   : > { %v1815_v54 = vpop.f32.mrf.mxu0  ;;  %1983 = vmatpush.msrb.mxu3 %v1953_v59  ;;  %v2010_v59 = vld [vmem:[#allocation13 + $0x2f8] sm:$0xff] }
 0x92e   : > { %v1816_v55 = vadd.f32 %v3146_v49, %v1815_v54  ;;  %2016 = vmatpush.msrb.mxu0 %v2010_v59  ;;  %v2142_v59 = vld [vmem:[#allocation7 + $0x360] sm:$0xff] }
 0x92f   : > { %1984 = vmatpush.msrb.mxu3 %v1952_v63  ;;  %v2006_v63 = vld [vmem:[#allocation13 + $0x2d8] sm:$0xff] }
 0x930   : > { %1877 = vmatpush.xpose.msra.mxu2 %v1816_v55  ;;  %v3150_v55 = vld [vmem:[#allocation14 + $0x4] ss:$0 sm:$0xff] }
 0x934   : > { %1878 = vmatpush.xpose.msra.mxu2 %v1813_v58 }
 0x9a5   : > { %v1675_v3 = vpop.f32.mrf.mxu1  ;;  %v1695_v6 = vpop.f32.mrf.mxu2 }
 0x9a6   : > { %v1676_v4 = vadd.f32 %v3143_v0, %v1675_v3  ;;  %v1923_v0 = vld [vmem:[#allocation7 + $0x2f8] sm:$0xff]  ;;  %v3145_v3 = vld [vmem:[%s4201_s29] ss:$0 sm:$0xff] }
 0x9a7   : > { %1929 = vmatpush.msrb.mxu2 %v1923_v0  ;;  %v2005_v0 = vld [vmem:[#allocation13 + $0x2d0] sm:$0xff] }
 0x9a8   : > { %v1696_v7 = vadd.f32 %v1695_v6, %v1676_v4  ;;  %v1951_v4 = vld [vmem:[#allocation10 + $0x288] sm:$0xff] }
 0x9a9   : > { %1985 = vmatpush.msrb.mxu3 %v1951_v4  ;;  %1930 = vmatpush.msrb.mxu2 %v1922_v5  ;;  %v2003_v4 = vld [vmem:[#allocation13 + $0x2c0] sm:$0xff] }
 0x9aa   : > { %v4006_v8 = vadd.f32 %v1696_v7, %v3995_v35  ;;  %v1950_v7 = vld [vmem:[#allocation10 + $0x280] sm:$0xff] }
 0x9ab   : > { %1986 = vmatpush.msrb.mxu3 %v1950_v7  ;;  %1931 = vmatpush.msrb.mxu2 %v1921_v31  ;;  %v2001_v7 = vld [vmem:[#allocation13 + $0x2b0] sm:$0xff]  ;;  %v2000_v31 = vld [vmem:[#allocation13 + $0x2a8] sm:$0xff] }
 0x9ac   : > { %1701 = vadd.xlane.f32.xlu1 %v4006_v8  ;;  %v1704_v9 = vmul.f32 %v4006_v8, %v4006_v8 }
 0x9ad   : > { %1932 = vmatpush.msrb.mxu2 %v1920_v37  ;;  %v1999_v37 = vld [vmem:[#allocation13 + $0x2a0] sm:$0xff] }
 0x9ae   : > { %1705 = vadd.xlane.f32.xlu2 %v1704_v9  ;;  %v1919_v9 = vld [vmem:[#allocation7 + $0x2d8] sm:$0xff] }
 0x9af   : > { %1933 = vmatpush.msrb.mxu2 %v1919_v9 }
 0x9b1   : > { %1934 = vmatpush.msrb.mxu2 %v1918_v12  ;;  %v1998_v12 = vld [vmem:[#allocation13 + $0x298] sm:$0xff] }
 0x9b3   : > { %1935 = vmatpush.msrb.mxu2 %v1917_v13 }
 0x9b5   : > { %1936 = vmatpush.msrb.mxu2 %v1916_v14  ;;  %v1997_v14 = vld [vmem:[#allocation13 + $0x290] sm:$0xff] }
 0x9b7   : > { %1937 = vmatpush.msrb.mxu2 %v1915_v15  ;;  %v1996_v15 = vld [vmem:[#allocation13 + $0x288] sm:$0xff] }
 0x9b9   : > { %1938 = vmatpush.msrb.mxu2 %v1914_v17  ;;  %v1995_v17 = vld [vmem:[#allocation13 + $0x280] sm:$0xff] }
 0x9bb   : > { %1939 = vmatpush.msrb.mxu2 %v1913_v18 }
 0x9bd   : > { %1940 = vmatpush.msrb.mxu2 %v1912_v19 }
 0x9bf   : > { %1941 = vmatpush.msrb.mxu2 %v1911_v20  ;;  %v2187_v20 = vld [vmem:[#allocation10 + $0x378] sm:$0xff] }
 0x9c1   : > { %1942 = vmatpush.msrb.mxu2 %v1910_v22  ;;  %v2186_v22 = vld [vmem:[#allocation10 + $0x370] sm:$0xff] }
 0x9c3   : > { %1943 = vmatpush.msrb.mxu2 %v1909_v23  ;;  %v2185_v23 = vld [vmem:[#allocation10 + $0x368] sm:$0xff] }
 0x9c5   : > { %1944 = vmatpush.msrb.mxu2 %v1908_v24  ;;  %v2184_v24 = vld [vmem:[#allocation10 + $0x360] sm:$0xff] }
 0xa1f   : > { %v1702_v30 = vpop.xlane.xlu1 %1701 }
 0xa20   : > { %v1703_v32 = vmul.f32 0.03125, %v1702_v30  ;;  %v1829_v30 = vld [vmem:[#allocation13 + $0x250] sm:$0xff] }
 0xa21   : > { %v1706_v35 = vpop.xlane.xlu2 %1705  ;;  %1845 = vmatpush.msra.mxu1 %v1829_v30  ;;  %v2179_v30 = vld [vmem:[#allocation10 + $0x338] sm:$0xff] }
 0xa22   : > { %v1708_v21 = vmul.f32 %v1703_v32, %v1703_v32  ;;  %v1707_v36 = vmul.f32 0.03125, %v1706_v35  ;;  %v1710_v62 = vsub.f32 %v4006_v8, %v1703_v32  ;;  %v1828_v32 = vld [vmem:[#allocation13 + $0x248] sm:$0xff]  ;;  %v1825_v35 = vld [vmem:[#allocation13 + $0x230] sm:$0xff] }
 0xa23   : > { %1846 = vmatpush.msra.mxu1 %v1828_v32  ;;  %v2178_v32 = vld [vmem:[#allocation10 + $0x330] sm:$0xff] }
 0xa24   : > { %v1709_v39 = vsub.f32 %v1707_v36, %v1708_v21  ;;  %v3147_v21 = vld [vmem:[#allocation8 + $0x4] ss:$0 sm:$0xff]  ;;  %v1824_v36 = vld [vmem:[#allocation13 + $0x228] sm:$0xff] }
 0xa25   : > { %1847 = vmatpush.msra.mxu1 %v1827_v33 }
 0xa26   : > { %v1711_v41 = vadd.f32 1e-05, %v1709_v39 }
 0xa27   : > { %1848 = vmatpush.msra.mxu1 %v1826_v34  ;;  %v2177_v34 = vld [vmem:[#allocation10 + $0x328] sm:$0xff] }
 0xa28   : > { %3181 = vrsqrt.f32 %v1711_v41  ;;  %vm1718_vm6 = vweird.f32 %v1711_v41 }
 0xa29   : > { %1849 = vmatpush.msra.mxu1 %v1825_v35 }
 0xa2b   : > { %1850 = vmatpush.msra.mxu1 %v1824_v36 }
 0xa2d   : > { %1851 = vmatpush.msra.mxu1 %v1823_v38  ;;  %v2176_v38 = vld [vmem:[#allocation10 + $0x320] sm:$0xff] }
 0xa2e   : > { %v3182_v47 = vpop.eup %3181 }
 0xa2f   : > { %v1713_v48 = vmul.f32 %v3182_v47, %v1711_v41  ;;  %vm1719_vm5 = vweird.f32 %v3182_v47  ;;  %v1822_v41 = vld [vmem:[#allocation13 + $0x218] sm:$0xff] }
 0xa30   : > { %vm1720_vm7 = vmor %vm1718_vm6, %vm1719_vm5  ;;  %1852 = vmatpush.msra.mxu1 %v1822_v41 }
 0xa31   : > { %v1714_v51 = vmul.f32 %v3182_v47, %v1713_v48 }
 0xa32   : > { %1853 = vmatpush.msra.mxu1 %v1821_v42  ;;  %v2175_v42 = vld [vmem:[#allocation10 + $0x318] sm:$0xff] }
 0xa33   : > { %v1715_v53 = vmul.f32 0.5, %v1714_v51  ;;  %v3149_v51 = vld [vmem:[#allocation8 + $0x5] ss:$0 sm:$0xff] }
 0xa34   : > { %1854 = vmatpush.msra.mxu1 %v1820_v43 }
 0xa35   : > { %v1716_v57 = vsub.f32 1.5, %v1715_v53 }
 0xa36   : > { %1855 = vmatpush.msra.mxu1 %v1819_v44 }
 0xa37   : > { %v1717_v61 = vmul.f32 %v3182_v47, %v1716_v57  ;;  %1856 = vmatmul.f32.vlgmr.msra.gmra.mxu1 %v4012_v10 }
 0xa39   : > { %v1721_v1 = vsel %vm1720_vm7, %v3182_v47, %v1717_v61  ;;  %v2008_v61 = vld [vmem:[#allocation13 + $0x2e8] sm:$0xff] }
 0xa3a   : > { %v1722_v2 = vmul.f32 %v1721_v1, %v1710_v62  ;;  %v2007_v62 = vld [vmem:[#allocation13 + $0x2e0] sm:$0xff]  ;;  %v2004_v1 = vld [vmem:[#allocation13 + $0x2c8] sm:$0xff] }
 0xa3c   : > { %v1726_v6 = vmul.f32 %v3144_v60, %v1722_v2  ;;  %v2009_v60 = vld [vmem:[#allocation13 + $0x2f0] sm:$0xff] }
 0xa3d   : > { %2017 = vmatpush.msrb.mxu0 %v2009_v60  ;;  %v2141_v60 = vld [vmem:[#allocation7 + $0x358] sm:$0xff] }
 0xa3e   : > { %v4026_v8 = vadd.f32 %v3145_v3, %v1726_v6  ;;  %v2002_v6 = vld [vmem:[#allocation13 + $0x2b8] sm:$0xff] }
 0xa3f   : > { %1859 = vmatmul.f32.gmra.mxu1 %v4016_v11  ;;  %2018 = vmatpush.msrb.mxu0 %v2008_v61  ;;  %v2140_v61 = vld [vmem:[#allocation7 + $0x350] sm:$0xff] }
 0xa40   : > { %1769 = vmatmul.f32.vlgmr.msra.gmra.mxu3 %v4026_v8 }
 0xa41   : > { %2019 = vmatpush.msrb.mxu0 %v2007_v62  ;;  %v2139_v62 = vld [vmem:[#allocation7 + $0x348] sm:$0xff] }
 0xa43   : > { %2020 = vmatpush.msrb.mxu0 %v2006_v63  ;;  %v2174_v63 = vld [vmem:[#allocation10 + $0x310] sm:$0xff] }
 0xa45   : > { %2021 = vmatpush.msrb.mxu0 %v2005_v0  ;;  %v2138_v0 = vld [vmem:[#allocation7 + $0x340] sm:$0xff] }
 0xa47   : > { %2022 = vmatpush.msrb.mxu0 %v2004_v1  ;;  %v2173_v1 = vld [vmem:[#allocation10 + $0x308] sm:$0xff] }
 0xa48   : > { %1987 = vmatmul.f32.vlgmr.msrb.gmra.mxu3 %v4012_v10 }
 0xa49   : > { %2023 = vmatpush.msrb.mxu0 %v2003_v4  ;;  %v2136_v4 = vld [vmem:[#allocation7 + $0x330] sm:$0xff] }
 0xa4b   : > { %2024 = vmatpush.msrb.mxu0 %v2002_v6  ;;  %v2134_v6 = vld [vmem:[#allocation7 + $0x320] sm:$0xff] }
 0xa4d   : > { %2025 = vmatpush.msrb.mxu0 %v2001_v7  ;;  %v2133_v7 = vld [vmem:[#allocation7 + $0x318] sm:$0xff] }
 0xa4f   : > { %2026 = vmatpush.msrb.mxu0 %v2000_v31  ;;  %v2132_v31 = vld [vmem:[#allocation7 + $0x310] sm:$0xff] }
 0xa50   : > { %1990 = vmatmul.f32.gmra.mxu3 %v4016_v11 }
 0xa51   : > { %2027 = vmatpush.msrb.mxu0 %v1999_v37  ;;  %v2131_v37 = vld [vmem:[#allocation7 + $0x308] sm:$0xff] }
 0xa53   : > { %2028 = vmatpush.msrb.mxu0 %v1998_v12 }
 0xa55   : > { %2029 = vmatpush.msrb.mxu0 %v1997_v14 }
 0xa57   : > { %2030 = vmatpush.msrb.mxu0 %v1996_v15 }
 0xa59   : > { %2031 = vmatpush.msrb.mxu0 %v1995_v17 }
 0xa5a   : > { %2032 = vmatmul.f32.vlgmr.msrb.gmra.mxu0 %v4012_v10 }
 0xa62   : > { %2035 = vmatmul.f32.gmra.mxu0 %v4016_v11 }
 0xab4   : > { %v1857_v54 = vpop.f32.mrf.mxu1 }
 0xab5   : > { %v1858_v57 = vadd.f32 %v3150_v55, %v1857_v54 }
 0xabc   : > { %v1860_v56 = vpop.f32.mrf.mxu1 }
 0xabd   : > { %v1861_v58 = vadd.f32 %v3150_v55, %v1860_v56  ;;  %v2145_v56 = vld [vmem:[#allocation7 + $0x378] sm:$0xff] }
 0xac3   : > { %v1770_v39 = vpop.f32.mrf.mxu3 }
 0xac4   : > { %v1771_v40 = vadd.f32 %v3147_v21, %v1770_v39 }
 0xac6   : > { %1879 = vmatmul.f32.vlgmr.msra.gmra.mxu2 %v1771_v40 }
 0xacb   : > { %v1988_v45 = vpop.f32.mrf.mxu3 }
 0xacc   : > { %v1989_v48 = vadd.f32 %v3148_v46, %v1988_v45 }
 0xace   : > { %1945 = vmatmul.f32.vlgmr.msrb.gmra.mxu2 %v4026_v8 }
 0xad3   : > { %v1991_v47 = vpop.f32.mrf.mxu3 }
 0xad4   : > { %v1992_v16 = vadd.f32 %v3148_v46, %v1991_v47 }
 0xad6   : > { %2053 = vmatpush.xpose.msrb.mxu1 %v1992_v16 }
 0xada   : > { %2054 = vmatpush.xpose.msrb.mxu1 %v1989_v48 }
 0xade   : > { %2123 = vmatpush.msra.mxu1 %v1861_v58  ;;  %v2143_v58 = vld [vmem:[#allocation7 + $0x368] sm:$0xff] }
 0xae0   : > { %2124 = vmatpush.msra.mxu1 %v1858_v57  ;;  %v2144_v57 = vld [vmem:[#allocation7 + $0x370] sm:$0xff] }
 0xb49   : > { %v1880_v49 = vpop.f32.mrf.mxu2 }
 0xb4a   : > { %v1883_v50 = vsel %vm862_vm0, %v1880_v49, -inf }
 0xb4b   : > { %1884 = vmax.xlane.f32.xlu0 %v1883_v50 }
 0xb51   : > { %v1946_v52 = vpop.f32.mrf.mxu2 }
 0xb52   : > { %v1947_v53 = vadd.f32 %v3149_v51, %v1946_v52  ;;  %v3151_v52 = vld [vmem:[#allocation14 + $0x5] ss:$0 sm:$0xff] }
 0xb54   : > { %2055 = vmatmul.f32.vlgmr.msrb.gmra.mxu1 %v1947_v53 }
 0xb55   : > { %2193 = vmatpush.msrb.mxu1 %v2187_v20 }
 0xb57   : > { %2194 = vmatpush.msrb.mxu1 %v2186_v22 }
 0xb59   : > { %2195 = vmatpush.msrb.mxu1 %v2185_v23 }
 0xb5b   : > { %2196 = vmatpush.msrb.mxu1 %v2184_v24 }
 0xb5d   : > { %2197 = vmatpush.msrb.mxu1 %v2183_v25 }
 0xb5f   : > { %2198 = vmatpush.msrb.mxu1 %v2182_v26  ;;  %v2345_v26 = vld [vmem:[#allocation7 + $0x3f8] sm:$0xff] }
 0xb61   : > { %2199 = vmatpush.msrb.mxu1 %v2181_v27  ;;  %v2344_v27 = vld [vmem:[#allocation7 + $0x3f0] sm:$0xff] }
 0xb63   : > { %2200 = vmatpush.msrb.mxu1 %v2180_v29  ;;  %v2342_v29 = vld [vmem:[#allocation7 + $0x3e0] sm:$0xff] }
 0xb65   : > { %2201 = vmatpush.msrb.mxu1 %v2179_v30  ;;  %v2341_v30 = vld [vmem:[#allocation7 + $0x3d8] sm:$0xff] }
 0xb67   : > { %2202 = vmatpush.msrb.mxu1 %v2178_v32  ;;  %v2340_v32 = vld [vmem:[#allocation7 + $0x3d0] sm:$0xff] }
 0xb69   : > { %2203 = vmatpush.msrb.mxu1 %v2177_v34  ;;  %v2338_v34 = vld [vmem:[#allocation7 + $0x3c0] sm:$0xff] }
 0xb6b   : > { %2204 = vmatpush.msrb.mxu1 %v2176_v38  ;;  %v2334_v38 = vld [vmem:[#allocation7 + $0x3a0] sm:$0xff] }
 0xb6d   : > { %2205 = vmatpush.msrb.mxu1 %v2175_v42  ;;  %v2330_v42 = vld [vmem:[#allocation7 + $0x380] sm:$0xff] }
 0xb6f   : > { %2206 = vmatpush.msrb.mxu1 %v2174_v63  ;;  %v2222_v63 = vld [vmem:[#allocation13 + $0x328] sm:$0xff] }
 0xb71   : > { %2207 = vmatpush.msrb.mxu1 %v2173_v1  ;;  %v2220_v1 = vld [vmem:[#allocation13 + $0x318] sm:$0xff] }
 0xbbe   : > { %v1885_v2 = vpop.xlane.xlu0 %1884 }
 0xbbf   : > { %v1886_v3 = vsub.f32 %v1880_v49, %v1885_v2  ;;  %v2033_v49 = vpop.f32.mrf.mxu0  ;;  %v2137_v2 = vld [vmem:[#allocation7 + $0x338] sm:$0xff] }
 0xbc0   : > { %v2034_v54 = vadd.f32 %v3151_v52, %v2033_v49 }
 0xbc1   : > { %v1887_v5 = vmul.f32 1.442695, %v1886_v3  ;;  %v2172_v3 = vld [vmem:[#allocation10 + $0x300] sm:$0xff] }
 0xbc2   : > { %2208 = vmatpush.msrb.mxu1 %v2172_v3  ;;  %v2218_v3 = vld [vmem:[#allocation13 + $0x308] sm:$0xff] }
 0xbc3   : > { %3183 = vpow2.f32 %v1887_v5  ;;  %v2135_v5 = vld [vmem:[#allocation7 + $0x328] sm:$0xff] }
 0xbc7   : > { %v2036_v53 = vpop.f32.mrf.mxu0 }
 0xbc8   : > { %v2037_v55 = vadd.f32 %v3151_v52, %v2036_v53  ;;  %v2232_v53 = vld [vmem:[#allocation13 + $0x378] sm:$0xff] }
 0xbc9   : > { %v4035_v9 = vpop.eup %3183  ;;  %2238 = vmatpush.msra.mxu3 %v2232_v53 }
 0xbca   : > { %v1889_v13 = vsel %vm862_vm0, %v4035_v9, 0.0  ;;  %2100 = vmatpush.msra.mxu2 %v2037_v55  ;;  %v2230_v55 = vld [vmem:[#allocation13 + $0x368] sm:$0xff] }
 0xbcb   : > { %1890 = vadd.xlane.f32.xlu2 %v1889_v13 }
 0xbcc   : > { %2101 = vmatpush.msra.mxu2 %v2034_v54  ;;  %v2231_v54 = vld [vmem:[#allocation13 + $0x370] sm:$0xff] }
 0xbcd   : > { %2239 = vmatpush.msra.mxu3 %v2231_v54 }
 0xbce   : > { %2151 = vmatpush.msrb.mxu2 %v2145_v56  ;;  %v2229_v56 = vld [vmem:[#allocation13 + $0x360] sm:$0xff] }
 0xbcf   : > { %2240 = vmatpush.msra.mxu3 %v2230_v55  ;;  %v3154_v55 = vld [vmem:[#allocation8 + $0x7] ss:$0 sm:$0xff] }
 0xbd0   : > { %2152 = vmatpush.msrb.mxu2 %v2144_v57  ;;  %v2228_v57 = vld [vmem:[#allocation13 + $0x358] sm:$0xff] }
 0xbd1   : > { %v2056_v18 = vpop.f32.mrf.mxu1  ;;  %2241 = vmatpush.msra.mxu3 %v2229_v56 }
 0xbd2   : > { %v2059_v19 = vsel %vm862_vm0, %v2056_v18, -inf  ;;  %2153 = vmatpush.msrb.mxu2 %v2143_v58  ;;  %v2227_v58 = vld [vmem:[#allocation13 + $0x350] sm:$0xff] }
 0xbd3   : > { %2060 = vmax.xlane.f32.xlu1 %v2059_v19  ;;  %2242 = vmatpush.msra.mxu3 %v2228_v57 }
 0xbd4   : > { %2154 = vmatpush.msrb.mxu2 %v2142_v59  ;;  %v2226_v59 = vld [vmem:[#allocation13 + $0x348] sm:$0xff] }
 0xbd5   : > { %2243 = vmatpush.msra.mxu3 %v2227_v58 }
 0xbd6   : > { %2155 = vmatpush.msrb.mxu2 %v2141_v60  ;;  %v2225_v60 = vld [vmem:[#allocation13 + $0x340] sm:$0xff] }
 0xbd7   : > { %2244 = vmatpush.msra.mxu3 %v2226_v59  ;;  %v2432_v59 = vld [vmem:[#allocation13 + $0x3f8] sm:$0xff] }
 0xbd8   : > { %2156 = vmatpush.msrb.mxu2 %v2140_v61  ;;  %v2224_v61 = vld [vmem:[#allocation13 + $0x338] sm:$0xff] }
 0xbd9   : > { %2245 = vmatpush.msra.mxu3 %v2225_v60  ;;  %v2431_v60 = vld [vmem:[#allocation13 + $0x3f0] sm:$0xff] }
 0xbda   : > { %2157 = vmatpush.msrb.mxu2 %v2139_v62  ;;  %v2223_v62 = vld [vmem:[#allocation13 + $0x330] sm:$0xff] }
 0xbdb   : > { %2246 = vmatpush.msra.mxu3 %v2224_v61  ;;  %v2427_v61 = vld [vmem:[#allocation13 + $0x3d0] sm:$0xff] }
 0xbdc   : > { %2158 = vmatpush.msrb.mxu2 %v2138_v0  ;;  %v2221_v0 = vld [vmem:[#allocation13 + $0x320] sm:$0xff] }
 0xbdd   : > { %2247 = vmatpush.msra.mxu3 %v2223_v62  ;;  %v2426_v62 = vld [vmem:[#allocation13 + $0x3c8] sm:$0xff] }
 0xbde   : > { %2159 = vmatpush.msrb.mxu2 %v2137_v2  ;;  %v2219_v2 = vld [vmem:[#allocation13 + $0x310] sm:$0xff] }
 0xbdf   : > { %2248 = vmatpush.msra.mxu3 %v2222_v63  ;;  %v2425_v63 = vld [vmem:[#allocation13 + $0x3c0] sm:$0xff] }
 0xbe0   : > { %2160 = vmatpush.msrb.mxu2 %v2136_v4  ;;  %v2217_v4 = vld [vmem:[#allocation13 + $0x300] sm:$0xff] }
 0xbe1   : > { %2249 = vmatpush.msra.mxu3 %v2221_v0  ;;  %v2424_v0 = vld [vmem:[#allocation13 + $0x3b8] sm:$0xff] }
 0xbe2   : > { %2161 = vmatpush.msrb.mxu2 %v2135_v5 }
 0xbe3   : > { %2250 = vmatpush.msra.mxu3 %v2220_v1  ;;  %v2423_v1 = vld [vmem:[#allocation13 + $0x3b0] sm:$0xff] }
 0xbe4   : > { %2162 = vmatpush.msrb.mxu2 %v2134_v6 }
 0xbe5   : > { %2251 = vmatpush.msra.mxu3 %v2219_v2  ;;  %v2422_v2 = vld [vmem:[#allocation13 + $0x3a8] sm:$0xff] }
 0xbe6   : > { %2163 = vmatpush.msrb.mxu2 %v2133_v7 }
 0xbe7   : > { %2252 = vmatpush.msra.mxu3 %v2218_v3  ;;  %v2421_v3 = vld [vmem:[#allocation13 + $0x3a0] sm:$0xff] }
 0xbe8   : > { %2164 = vmatpush.msrb.mxu2 %v2132_v31 }
 0xbe9   : > { %2253 = vmatpush.msra.mxu3 %v2217_v4  ;;  %v2420_v4 = vld [vmem:[#allocation13 + $0x398] sm:$0xff] }
 0xbea   : > { %2165 = vmatpush.msrb.mxu2 %v2131_v37  ;;  %2254 = vmatmul.f32.vlgmr.msra.gmra.mxu3 %v4012_v10 }
 0xbf2   : > { %2257 = vmatmul.f32.gmra.mxu3 %v4016_v11 }
 0xc3e   : > { %v1891_v28 = vpop.xlane.xlu2 %1890 }
 0xc3f   : > { %3185 = vrcp.f32 %v1891_v28  ;;  %v1903_v40 = vand.u32 2147483648, %v1891_v28  ;;  %v1901_v44 = vand.u32 2147483647, %v1891_v28  ;;  %vm1897_vm9 = vweird.f32 %v1891_v28 }
 0xc41   : > { %v1904_v46 = vor.u32 1.1754944e-38, %v1903_v40  ;;  %vm1902_vm11 = vcmp.eq.f32.partialorder %v1901_v44, 8.507059e+37  ;;  %v2332_v40 = vld [vmem:[#allocation7 + $0x390] sm:$0xff] }
 0xc45   : > { %v3186_v33 = vpop.eup %3185 }
 0xc46   : > { %v1893_v35 = vmul.f32 %v3186_v33, %v1891_v28  ;;  %v2061_v21 = vpop.xlane.xlu1 %2060  ;;  %vm1898_vm8 = vweird.f32 %v3186_v33  ;;  %v2343_v28 = vld [vmem:[#allocation7 + $0x3e8] sm:$0xff] }
 0xc47   : > { %v2062_v36 = vsub.f32 %v2056_v18, %v2061_v21  ;;  %vm1899_vm10 = vmor %vm1897_vm9, %vm1898_vm8  ;;  %v2336_v21 = vld [vmem:[#allocation7 + $0x3b0] sm:$0xff] }
 0xc48   : > { %v1894_v39 = vsub.f32 1.0, %v1893_v35  ;;  %v2337_v35 = vld [vmem:[#allocation7 + $0x3b8] sm:$0xff] }
 0xc49   : > { %v2063_v41 = vmul.f32 1.442695, %v2062_v36  ;;  %v2335_v36 = vld [vmem:[#allocation7 + $0x3a8] sm:$0xff] }
 0xc4a   : > { %v1895_v43 = vmul.f32 %v3186_v33, %v1894_v39  ;;  %v2333_v39 = vld [vmem:[#allocation7 + $0x398] sm:$0xff] }
 0xc4b   : > { %3187 = vpow2.f32 %v2063_v41  ;;  %v2331_v41 = vld [vmem:[#allocation7 + $0x388] sm:$0xff] }
 0xc4c   : > { %v1896_v45 = vadd.f32 %v3186_v33, %v1895_v43 }
 0xc4e   : > { %v1900_v47 = vsel %vm1899_vm10, %v3186_v33, %v1896_v45  ;;  %v2339_v33 = vld [vmem:[#allocation7 + $0x3c8] sm:$0xff] }
 0xc4f   : > { %v1905_v16 = vsel %vm1902_vm11, %v1904_v46, %v1900_v47  ;;  %v3152_v45 = vld [vmem:[#allocation11 + $0x6] ss:$0 sm:$0xff] }
 0xc50   : > { %v1906_v48 = vmul.f32 %v4035_v9, %v1905_v16  ;;  %v2130_v9 = vld [vmem:[#allocation7 + $0x300] sm:$0xff] }
 0xc51   : > { %v4043_v50 = vpop.eup %3187  ;;  %2166 = vmatpush.msrb.mxu2 %v2130_v9 }
 0xc52   : > { %2978 = vmatmul.msk.f32.vlgmr.msra.gmra.mxu1 %vm862_vm0, %v1906_v48  ;;  %v2065_v51 = vsel %vm862_vm0, %v4043_v50, 0.0 }
 0xc53   : > { %2066 = vadd.xlane.f32.xlu0 %v2065_v51  ;;  %2438 = vmatpush.msra.mxu1 %v2432_v59  ;;  %v2577_v59 = vld [vmem:[#allocation16 + $0x160] sm:$0xff] }
 0xc55   : > { %2439 = vmatpush.msra.mxu1 %v2431_v60  ;;  %v2578_v60 = vld [vmem:[#allocation16 + $0x168] sm:$0xff] }
 0xc5a   : > { %2209 = vmatmul.f32.vlgmr.msrb.gmra.mxu1 %v4012_v10 }
 0xc62   : > { %2212 = vmatmul.f32.gmra.mxu1 %v4016_v11 }
 0xcc6   : > { %v2067_v12 = vpop.xlane.xlu0 %2066 }
 0xcc7   : > { %3189 = vrcp.f32 %v2067_v12  ;;  %v2079_v17 = vand.u32 2147483648, %v2067_v12  ;;  %v2077_v19 = vand.u32 2147483647, %v2067_v12  ;;  %vm2073_vm13 = vweird.f32 %v2067_v12 }
 0xcc9   : > { %v2080_v22 = vor.u32 1.1754944e-38, %v2079_v17  ;;  %vm2078_vm15 = vcmp.eq.f32.partialorder %v2077_v19, 8.507059e+37  ;;  %v2387_v19 = vld [vmem:[#allocation10 + $0x3f8] sm:$0xff] }
 0xccd   : > { %v3190_v13 = vpop.eup %3189 }
 0xcce   : > { %v2069_v14 = vmul.f32 %v3190_v13, %v2067_v12  ;;  %vm2074_vm12 = vweird.f32 %v3190_v13 }
 0xccf   : > { %vm2075_vm14 = vmor %vm2073_vm13, %vm2074_vm12  ;;  %v2126_v43 = vpop.f32.mrf.mxu1 }
 0xcd0   : > { %v2070_v15 = vsub.f32 1.0, %v2069_v14  ;;  %v3155_v14 = vld [vmem:[#allocation14 + $0x6] ss:$0 sm:$0xff] }
 0xcd2   : > { %v2071_v18 = vmul.f32 %v3190_v13, %v2070_v15 }
 0xcd4   : > { %v2072_v20 = vadd.f32 %v3190_v13, %v2071_v18 }
 0xcd6   : > { %v2076_v23 = vsel %vm2075_vm14, %v3190_v13, %v2072_v20  ;;  %v2255_v13 = vpop.f32.mrf.mxu3  ;;  %v2386_v20 = vld [vmem:[#allocation10 + $0x3f0] sm:$0xff] }
 0xcd7   : > { %v2081_v24 = vsel %vm2078_vm15, %v2080_v22, %v2076_v23  ;;  %v2210_v44 = vpop.f32.mrf.mxu1  ;;  %v2256_v17 = vadd.f32 %v3155_v14, %v2255_v13  ;;  %v2385_v22 = vld [vmem:[#allocation10 + $0x3e8] sm:$0xff]  ;;  %v2384_v23 = vld [vmem:[#allocation10 + $0x3e0] sm:$0xff] }
 0xcd8   : > { %v2082_v25 = vmul.f32 %v4043_v50, %v2081_v24  ;;  %v2211_v16 = vadd.f32 %v3152_v45, %v2210_v44  ;;  %v3153_v50 = vld [vmem:[#allocation8 + $0x6] ss:$0 sm:$0xff] }
 0xcd9   : > { %v2383_v24 = vld [vmem:[#allocation10 + $0x3d8] sm:$0xff] }
 0xcda   : > { %2977 = vmatmul.msk.f32.vlgmr.msra.gmra.mxu2 %vm862_vm0, %v2082_v25  ;;  %v2382_v25 = vld [vmem:[#allocation10 + $0x3d0] sm:$0xff] }
 0xcdb   : > { %2351 = vmatpush.msra.mxu2 %v2345_v26  ;;  %v2381_v26 = vld [vmem:[#allocation10 + $0x3c8] sm:$0xff] }
 0xcdd   : > { %2352 = vmatpush.msra.mxu2 %v2344_v27  ;;  %v2380_v27 = vld [vmem:[#allocation10 + $0x3c0] sm:$0xff] }
 0xcde   : > { %v2258_v15 = vpop.f32.mrf.mxu3 }
 0xcdf   : > { %2353 = vmatpush.msra.mxu2 %v2343_v28  ;;  %v2213_v46 = vpop.f32.mrf.mxu1  ;;  %v2259_v18 = vadd.f32 %v3155_v14, %v2258_v15  ;;  %v2379_v28 = vld [vmem:[#allocation10 + $0x3b8] sm:$0xff] }
 0xce0   : > { %v2214_v47 = vadd.f32 %v3152_v45, %v2213_v46 }
 0xce1   : > { %2354 = vmatpush.msra.mxu2 %v2342_v29  ;;  %v2378_v29 = vld [vmem:[#allocation10 + $0x3b0] sm:$0xff] }
 0xce2   : > { %2167 = vmatmul.f32.vlgmr.msrb.gmra.mxu2 %v4026_v8  ;;  %2275 = vmatpush.xpose.msra.mxu0 %v2214_v47 }
 0xce3   : > { %2355 = vmatpush.msra.mxu2 %v2341_v30  ;;  %v2377_v30 = vld [vmem:[#allocation10 + $0x3a8] sm:$0xff] }
 0xce5   : > { %2356 = vmatpush.msra.mxu2 %v2340_v32  ;;  %v2376_v32 = vld [vmem:[#allocation10 + $0x3a0] sm:$0xff] }
 0xce6   : > { %2276 = vmatpush.xpose.msra.mxu0 %v2211_v16 }
 0xce7   : > { %2357 = vmatpush.msra.mxu2 %v2339_v33  ;;  %v2375_v33 = vld [vmem:[#allocation10 + $0x398] sm:$0xff] }
 0xce9   : > { %2358 = vmatpush.msra.mxu2 %v2338_v34  ;;  %v2374_v34 = vld [vmem:[#allocation10 + $0x390] sm:$0xff] }
 0xcea   : > { %2322 = vmatpush.msrb.mxu0 %v2259_v18 }
 0xceb   : > { %2359 = vmatpush.msra.mxu2 %v2337_v35  ;;  %v2373_v35 = vld [vmem:[#allocation10 + $0x388] sm:$0xff] }
 0xcec   : > { %2323 = vmatpush.msrb.mxu0 %v2256_v17 }
 0xced   : > { %2360 = vmatpush.msra.mxu2 %v2336_v21  ;;  %v2372_v21 = vld [vmem:[#allocation10 + $0x380] sm:$0xff] }
 0xcef   : > { %2361 = vmatpush.msra.mxu2 %v2335_v36 }
 0xcf1   : > { %2362 = vmatpush.msra.mxu2 %v2334_v38 }
 0xcf3   : > { %2363 = vmatpush.msra.mxu2 %v2333_v39 }
 0xcf5   : > { %2364 = vmatpush.msra.mxu2 %v2332_v40 }
 0xcf7   : > { %2365 = vmatpush.msra.mxu2 %v2331_v41 }
 0xcf9   : > { %2366 = vmatpush.msra.mxu2 %v2330_v42 }
 0xcfa   : > { %2367 = vmatmul.f32.vlgmr.msra.gmra.mxu2 %v4026_v8 }
 0xd5d   : > { %v2103_v48 = vpop.f32.mrf.mxu2 }
 0xd5e   : > { %v4054_v49 = vadd.f32 %v2126_v43, %v2103_v48 }
 0xd65   : > { %v2168_v51 = vpop.f32.mrf.mxu2 }
 0xd66   : > { %v2169_v52 = vadd.f32 %v3153_v50, %v2168_v51 }
 0xd68   : > { %2277 = vmatmul.f32.vlgmr.msra.gmra.mxu0 %v2169_v52  ;;  %v3156_v52 = vld [vmem:[#allocation11 + $0x7] ss:$0 sm:$0xff] }
 0xd69   : > { %2393 = vmatpush.msra.mxu0 %v2387_v19 }
 0xd6b   : > { %2394 = vmatpush.msra.mxu0 %v2386_v20  ;;  %v3157_v20 = vld [vmem:[#allocation14 + $0x7] ss:$0 sm:$0xff] }
 0xd6d   : > { %2395 = vmatpush.msra.mxu0 %v2385_v22 }
 0xd6f   : > { %2396 = vmatpush.msra.mxu0 %v2384_v23 }
 0xd71   : > { %2397 = vmatpush.msra.mxu0 %v2383_v24 }
 0xd73   : > { %2398 = vmatpush.msra.mxu0 %v2382_v25 }
 0xd75   : > { %2399 = vmatpush.msra.mxu0 %v2381_v26 }
 0xd77   : > { %2400 = vmatpush.msra.mxu0 %v2380_v27 }
 0xd79   : > { %2401 = vmatpush.msra.mxu0 %v2379_v28 }
 0xd7b   : > { %2402 = vmatpush.msra.mxu0 %v2378_v29 }
 0xd7d   : > { %2403 = vmatpush.msra.mxu0 %v2377_v30  ;;  %v2368_v56 = vpop.f32.mrf.mxu2 }
 0xd7e   : > { %v2369_v58 = vadd.f32 %v3154_v55, %v2368_v56  ;;  %v2581_v55 = vld [vmem:[#allocation16 + $0x180] sm:$0xff]  ;;  %v2582_v56 = vld [vmem:[#allocation16 + $0x188] sm:$0xff] }
 0xd7f   : > { %2404 = vmatpush.msra.mxu0 %v2376_v32 }
 0xd81   : > { %2405 = vmatpush.msra.mxu0 %v2375_v33 }
 0xd83   : > { %2406 = vmatpush.msra.mxu0 %v2374_v34 }
 0xd85   : > { %2407 = vmatpush.msra.mxu0 %v2373_v35 }
 0xd87   : > { %2408 = vmatpush.msra.mxu0 %v2372_v21 }
 0xde5   : > { %v2278_v5 = vpop.f32.mrf.mxu0 }
 0xde6   : > { %v2281_v6 = vsel %vm862_vm0, %v2278_v5, -inf }
 0xde7   : > { %2282 = vmax.xlane.f32.xlu1 %v2281_v6  ;;  %v2418_v6 = vld [vmem:[#allocation13 + $0x388] sm:$0xff] }
 0xe5a   : > { %v2283_v7 = vpop.xlane.xlu1 %2282 }
 0xe5b   : > { %v2284_v31 = vsub.f32 %v2278_v5, %v2283_v7  ;;  %v2419_v5 = vld [vmem:[#allocation13 + $0x390] sm:$0xff] }
 0xe5d   : > { %v2285_v37 = vmul.f32 1.442695, %v2284_v31 }
 0xe5f   : > { %3191 = vpow2.f32 %v2285_v37  ;;  %v2417_v37 = vld [vmem:[#allocation13 + $0x380] sm:$0xff] }
 0xe65   : > { %v3192_v9 = vpop.eup %3191 }
 0xe66   : > { %v2287_v12 = vsel %vm862_vm0, %v3192_v9, 0.0 }
 0xe67   : > { %2288 = vadd.xlane.f32.xlu2 %v2287_v12  ;;  %v3207_v12 = vld [vmem:[%s3896_s14 + $0x8] sm:$0xff] }
 0xeda   : > { %v2289_v36 = vpop.xlane.xlu2 %2288 }
 0xedb   : > { %3193 = vrcp.f32 %v2289_v36  ;;  %v2301_v41 = vand.u32 2147483648, %v2289_v36  ;;  %v2299_v43 = vand.u32 2147483647, %v2289_v36  ;;  %vm2295_vm2 = vweird.f32 %v2289_v36 }
 0xedd   : > { %v2302_v45 = vor.u32 1.1754944e-38, %v2301_v41  ;;  %vm2300_vm4 = vcmp.eq.f32.partialorder %v2299_v43, 8.507059e+37  ;;  %v2596_v43 = vld [vmem:[#allocation16 + $0x1f8] sm:$0xff] }
 0xee1   : > { %v3194_v38 = vpop.eup %3193 }
 0xee2   : > { %v2291_v39 = vmul.f32 %v3194_v38, %v2289_v36  ;;  %vm2296_vm1 = vweird.f32 %v3194_v38 }
 0xee3   : > { %vm2297_vm3 = vmor %vm2295_vm2, %vm2296_vm1 }
 0xee4   : > { %v2292_v40 = vsub.f32 1.0, %v2291_v39 }
 0xee6   : > { %v2293_v42 = vmul.f32 %v3194_v38, %v2292_v40 }
 0xee8   : > { %v2294_v44 = vadd.f32 %v3194_v38, %v2293_v42  ;;  %v2595_v42 = vld [vmem:[#allocation16 + $0x1f0] sm:$0xff] }
 0xee9   : > { %2604 = vmatpush.msrb.mxu2 %v2595_v42  ;;  %v2668_v42 = vld [vmem:[#allocation17 + $0x1a8] sm:$0xff] }
 0xeea   : > { %v2298_v46 = vsel %vm2297_vm3, %v3194_v38, %v2294_v44  ;;  %v2593_v44 = vld [vmem:[#allocation16 + $0x1e0] sm:$0xff] }
 0xeeb   : > { %v2303_v47 = vsel %vm2300_vm4, %v2302_v45, %v2298_v46  ;;  %v2594_v45 = vld [vmem:[#allocation16 + $0x1e8] sm:$0xff]  ;;  %2605 = vmatpush.msrb.mxu2 %v2593_v44  ;;  %v2591_v46 = vld [vmem:[#allocation16 + $0x1d0] sm:$0xff]  ;;  %v2651_v44 = vld [vmem:[#allocation17 + $0x120] sm:$0xff] }
 0xeec   : > { %v2304_v16 = vmul.f32 %v3192_v9, %v2303_v47  ;;  %v3206_v9 = vld [vmem:[%s3896_s14] sm:$0xff] }
 0xeed   : > { %v2592_v47 = vld [vmem:[#allocation16 + $0x1d8] sm:$0xff]  ;;  %2606 = vmatpush.msrb.mxu2 %v2591_v46 }
 0xeee   : > { %2979 = vmatmul.msk.f32.vlgmr.msrb.gmra.mxu0 %vm862_vm0, %v2304_v16  ;;  %v2590_v16 = vld [vmem:[#allocation16 + $0x1c8] sm:$0xff] }
 0xef6   : > { %2409 = vmatmul.f32.vlgmr.msra.gmra.mxu0 %v4012_v10  ;;  %v2430_v10 = vld [vmem:[#allocation13 + $0x3e8] sm:$0xff] }
 0xef7   : > { %2440 = vmatpush.msra.mxu1 %v2430_v10  ;;  %v2575_v10 = vld [vmem:[#allocation16 + $0x150] sm:$0xff] }
 0xefe   : > { %2412 = vmatmul.f32.gmra.mxu0 %v4016_v11  ;;  %v2429_v11 = vld [vmem:[#allocation13 + $0x3e0] sm:$0xff] }
 0xeff   : > { %2441 = vmatpush.msra.mxu1 %v2429_v11  ;;  %v2576_v11 = vld [vmem:[#allocation16 + $0x158] sm:$0xff] }
 0xf6b   : > { %v2325_v48 = vpop.f32.mrf.mxu0 }
 0xf6c   : > { %v4064_v50 = vadd.f32 %v2325_v48, %v4054_v49  ;;  %v2428_v49 = vld [vmem:[#allocation13 + $0x3d8] sm:$0xff] }
 0xf6d   : > { %2442 = vmatpush.msra.mxu1 %v2428_v49  ;;  %v2587_v48 = vld [vmem:[#allocation16 + $0x1b0] sm:$0xff]  ;;  %v2573_v49 = vld [vmem:[#allocation16 + $0x140] sm:$0xff] }
 0xf6f   : > { %2443 = vmatpush.msra.mxu1 %v2427_v61  ;;  %v2574_v61 = vld [vmem:[#allocation16 + $0x148] sm:$0xff] }
 0xf71   : > { %2444 = vmatpush.msra.mxu1 %v2426_v62  ;;  %v2571_v62 = vld [vmem:[#allocation16 + $0x130] sm:$0xff] }
 0xf73   : > { %v2410_v51 = vpop.f32.mrf.mxu0  ;;  %2445 = vmatpush.msra.mxu1 %v2425_v63  ;;  %v2572_v63 = vld [vmem:[#allocation16 + $0x138] sm:$0xff] }
 0xf74   : > { %v2411_v57 = vadd.f32 %v3156_v52, %v2410_v51  ;;  %v2585_v51 = vld [vmem:[#allocation16 + $0x1a0] sm:$0xff] }
 0xf75   : > { %2446 = vmatpush.msra.mxu1 %v2424_v0  ;;  %v2569_v0 = vld [vmem:[#allocation16 + $0x120] sm:$0xff] }
 0xf77   : > { %2447 = vmatpush.msra.mxu1 %v2423_v1  ;;  %v2570_v1 = vld [vmem:[#allocation16 + $0x128] sm:$0xff] }
 0xf79   : > { %2448 = vmatpush.msra.mxu1 %v2422_v2  ;;  %v2567_v2 = vld [vmem:[#allocation16 + $0x110] sm:$0xff] }
 0xf7b   : > { %v2413_v53 = vpop.f32.mrf.mxu0  ;;  %2449 = vmatpush.msra.mxu1 %v2421_v3  ;;  %v2568_v3 = vld [vmem:[#allocation16 + $0x118] sm:$0xff] }
 0xf7c   : > { %v2414_v54 = vadd.f32 %v3156_v52, %v2413_v53  ;;  %v2586_v52 = vld [vmem:[#allocation16 + $0x1a8] sm:$0xff]  ;;  %v2583_v53 = vld [vmem:[#allocation16 + $0x190] sm:$0xff] }
 0xf7d   : > { %2450 = vmatpush.msra.mxu1 %v2420_v4  ;;  %v2565_v4 = vld [vmem:[#allocation16 + $0x100] sm:$0xff] }
 0xf7e   : > { %2475 = vmatpush.xpose.msrb.mxu3 %v2414_v54  ;;  %v2584_v54 = vld [vmem:[#allocation16 + $0x198] sm:$0xff] }
 0xf7f   : > { %2451 = vmatpush.msra.mxu1 %v2419_v5  ;;  %v2566_v5 = vld [vmem:[#allocation16 + $0x108] sm:$0xff] }
 0xf81   : > { %2452 = vmatpush.msra.mxu1 %v2418_v6 }
 0xf82   : > { %2476 = vmatpush.xpose.msrb.mxu3 %v2411_v57  ;;  %v2579_v57 = vld [vmem:[#allocation16 + $0x170] sm:$0xff] }
 0xf83   : > { %2453 = vmatpush.msra.mxu1 %v2417_v37  ;;  %v2678_v37 = vld [vmem:[#allocation17 + $0x1f8] sm:$0xff] }
 0xf84   : > { %2454 = vmatmul.f32.vlgmr.msra.gmra.mxu1 %v3206_v9  ;;  %v2661_v9 = vld [vmem:[#allocation17 + $0x170] sm:$0xff] }
 0xf85   : > { %2477 = vmatmul.f32.vlgmr.msrb.gmra.mxu3 %v2369_v58  ;;  %v2580_v58 = vld [vmem:[#allocation16 + $0x178] sm:$0xff]  ;;  %2704 = vmatpush.msrb.mxu1 %v2678_v37 }
 0xf8c   : > { %2457 = vmatmul.f32.gmra.mxu1 %v3207_v12 }
0x1001   : > { %v2455_v19 = vpop.f32.mrf.mxu1 }
0x1002   : > { %v2456_v23 = vadd.f32 %v3157_v20, %v2455_v19 }
0x1008   : > { %v2478_v7 = vpop.f32.mrf.mxu3 }
0x1009   : > { %v2481_v31 = vsel %vm862_vm0, %v2478_v7, -inf  ;;  %v2458_v22 = vpop.f32.mrf.mxu1 }
0x100a   : > { %2482 = vmax.xlane.f32.xlu0 %v2481_v31  ;;  %v2459_v24 = vadd.f32 %v3157_v20, %v2458_v22  ;;  %v2662_v31 = vld [vmem:[#allocation17 + $0x178] sm:$0xff]  ;;  %v2659_v20 = vld [vmem:[#allocation17 + $0x160] sm:$0xff] }
0x100b   : > { %2684 = vmatpush.msrb.mxu0 %v2662_v31  ;;  %v2675_v22 = vld [vmem:[#allocation17 + $0x1e0] sm:$0xff] }
0x100c   : > { %2522 = vmatpush.msra.mxu3 %v2459_v24  ;;  %v2658_v24 = vld [vmem:[#allocation17 + $0x158] sm:$0xff] }
0x100d   : > { %2685 = vmatpush.msrb.mxu0 %v2661_v9 }
0x100e   : > { %2523 = vmatpush.msra.mxu3 %v2456_v23 }
0x1010   : > { %2624 = vmatpush.msrb.mxu3 %v2596_v43 }
0x1012   : > { %2625 = vmatpush.msrb.mxu3 %v2594_v45  ;;  %v2667_v45 = vld [vmem:[#allocation17 + $0x1a0] sm:$0xff] }
0x1014   : > { %2626 = vmatpush.msrb.mxu3 %v2592_v47  ;;  %v2650_v47 = vld [vmem:[#allocation17 + $0x118] sm:$0xff] }
0x1016   : > { %2627 = vmatpush.msrb.mxu3 %v2590_v16 }
0x107d   : > { %v2483_v13 = vpop.xlane.xlu0 %2482 }
0x107e   : > { %v2484_v14 = vsub.f32 %v2478_v7, %v2483_v13  ;;  %v2677_v13 = vld [vmem:[#allocation17 + $0x1f0] sm:$0xff] }
0x107f   : > { %2705 = vmatpush.msrb.mxu1 %v2677_v13 }
0x1080   : > { %v2485_v15 = vmul.f32 1.442695, %v2484_v14 }
0x1082   : > { %3195 = vpow2.f32 %v2485_v15 }
0x1088   : > { %v3196_v17 = vpop.eup %3195 }
0x1089   : > { %v2487_v18 = vsel %vm862_vm0, %v3196_v17, 0.0 }
0x108a   : > { %2488 = vadd.xlane.f32.xlu1 %v2487_v18  ;;  %v2676_v18 = vld [vmem:[#allocation17 + $0x1e8] sm:$0xff] }
0x108b   : > { %2706 = vmatpush.msrb.mxu1 %v2676_v18 }
0x108d   : > { %2707 = vmatpush.msrb.mxu1 %v2675_v22 }
0x10fd   : > { %v2489_v25 = vpop.xlane.xlu1 %2488 }
0x10fe   : > { %3197 = vrcp.f32 %v2489_v25  ;;  %v2501_v29 = vand.u32 2147483648, %v2489_v25  ;;  %v2499_v32 = vand.u32 2147483647, %v2489_v25  ;;  %vm2495_vm6 = vweird.f32 %v2489_v25 }
0x1100   : > { %v2502_v34 = vor.u32 1.1754944e-38, %v2501_v29  ;;  %vm2500_vm8 = vcmp.eq.f32.partialorder %v2499_v32, 8.507059e+37  ;;  %v2672_v29 = vld [vmem:[#allocation17 + $0x1c8] sm:$0xff]  ;;  %v2671_v32 = vld [vmem:[#allocation17 + $0x1c0] sm:$0xff] }
0x1104   : > { %v3198_v26 = vpop.eup %3197 }
0x1105   : > { %v2491_v27 = vmul.f32 %v3198_v26, %v2489_v25  ;;  %vm2496_vm5 = vweird.f32 %v3198_v26  ;;  %v2674_v25 = vld [vmem:[#allocation17 + $0x1d8] sm:$0xff] }
0x1106   : > { %vm2497_vm7 = vmor %vm2495_vm6, %vm2496_vm5  ;;  %2708 = vmatpush.msrb.mxu1 %v2674_v25 }
0x1107   : > { %v2492_v28 = vsub.f32 1.0, %v2491_v27  ;;  %v2673_v27 = vld [vmem:[#allocation17 + $0x1d0] sm:$0xff] }
0x1108   : > { %2709 = vmatpush.msrb.mxu1 %v2673_v27  ;;  %v3161_v27 = vld [vmem:[%s4200_s10 + $0x1] ss:$0 sm:$0xff] }
0x1109   : > { %v2493_v30 = vmul.f32 %v3198_v26, %v2492_v28  ;;  %v2656_v28 = vld [vmem:[#allocation17 + $0x148] sm:$0xff] }
0x110a   : > { %2710 = vmatpush.msrb.mxu1 %v2672_v29 }
0x110b   : > { %v2494_v33 = vadd.f32 %v3198_v26, %v2493_v30  ;;  %v2655_v30 = vld [vmem:[#allocation17 + $0x140] sm:$0xff] }
0x110c   : > { %2711 = vmatpush.msrb.mxu1 %v2671_v32 }
0x110d   : > { %v2498_v35 = vsel %vm2497_vm7, %v3198_v26, %v2494_v33  ;;  %v2657_v26 = vld [vmem:[#allocation17 + $0x150] sm:$0xff] }
0x110e   : > { %v2503_v21 = vsel %vm2500_vm8, %v2502_v34, %v2498_v35  ;;  %v2654_v34 = vld [vmem:[#allocation17 + $0x138] sm:$0xff] }
0x110f   : > { %v2504_v36 = vmul.f32 %v3196_v17, %v2503_v21  ;;  %v2660_v17 = vld [vmem:[#allocation17 + $0x168] sm:$0xff]  ;;  %v2670_v35 = vld [vmem:[#allocation17 + $0x1b8] sm:$0xff] }
0x1110   : > { %2686 = vmatpush.msrb.mxu0 %v2660_v17  ;;  %2712 = vmatpush.msrb.mxu1 %v2670_v35 }
0x1111   : > { %2980 = vmatmul.msk.f32.vlgmr.msra.gmra.mxu3 %vm862_vm0, %v2504_v36  ;;  %v2653_v36 = vld [vmem:[#allocation17 + $0x130] sm:$0xff] }
0x1112   : > { %2687 = vmatpush.msrb.mxu0 %v2659_v20 }
0x1114   : > { %2688 = vmatpush.msrb.mxu0 %v2658_v24 }
0x1116   : > { %2689 = vmatpush.msrb.mxu0 %v2657_v26 }
0x1118   : > { %2690 = vmatpush.msrb.mxu0 %v2656_v28 }
0x111a   : > { %2691 = vmatpush.msrb.mxu0 %v2655_v30  ;;  %v3162_v30 = vld [vmem:[%s4201_s29 + $0x1] ss:$0 sm:$0xff] }
0x111c   : > { %2692 = vmatpush.msrb.mxu0 %v2654_v34 }
0x111e   : > { %2693 = vmatpush.msrb.mxu0 %v2653_v36 }
0x1194   : > { %v2525_v38 = vpop.f32.mrf.mxu3 }
0x1195   : > { %v2528_v39 = vadd.f32 %v2525_v38, %v4064_v50  ;;  %v2588_v50 = vld [vmem:[#allocation16 + $0x1b8] sm:$0xff]  ;;  %v2669_v38 = vld [vmem:[#allocation17 + $0x1b0] sm:$0xff] }
0x1196   : > { %2628 = vmatpush.msrb.mxu3 %v2588_v50  ;;  %2713 = vmatpush.msrb.mxu1 %v2669_v38  ;;  %v3158_v50 = vld [vmem:[%s4145_s8 + $0x1] ss:$0 sm:$0xff] }
0x1197   : > { %v4073_v40 = vadd.f32 %v2528_v39, %v4026_v8  ;;  %v2589_v8 = vld [vmem:[#allocation16 + $0x1c0] sm:$0xff] }
0x1198   : > { %2607 = vmatpush.msrb.mxu2 %v2589_v8  ;;  %2629 = vmatpush.msrb.mxu3 %v2586_v52  ;;  %v2666_v8 = vld [vmem:[#allocation17 + $0x198] sm:$0xff] }
0x1199   : > { %2534 = vadd.xlane.f32.xlu2 %v4073_v40  ;;  %v2537_v41 = vmul.f32 %v4073_v40, %v4073_v40  ;;  %2714 = vmatpush.msrb.mxu1 %v2668_v42 }
0x119a   : > { %2608 = vmatpush.msrb.mxu2 %v2587_v48  ;;  %2630 = vmatpush.msrb.mxu3 %v2584_v54 }
0x119b   : > { %2538 = vadd.xlane.f32.xlu0 %v2537_v41  ;;  %v2652_v41 = vld [vmem:[#allocation17 + $0x128] sm:$0xff]  ;;  %2715 = vmatpush.msrb.mxu1 %v2667_v45 }
0x119c   : > { %2609 = vmatpush.msrb.mxu2 %v2585_v51  ;;  %2631 = vmatpush.msrb.mxu3 %v2582_v56  ;;  %v2649_v56 = vld [vmem:[#allocation17 + $0x110] sm:$0xff] }
0x119d   : > { %2694 = vmatpush.msrb.mxu0 %v2652_v41  ;;  %2716 = vmatpush.msrb.mxu1 %v2666_v8 }
0x119e   : > { %2610 = vmatpush.msrb.mxu2 %v2583_v53  ;;  %2632 = vmatpush.msrb.mxu3 %v2580_v58  ;;  %v3159_v53 = vld [vmem:[%s4146_s9 + $0x1] ss:$0 sm:$0xff]  ;;  %v2664_v58 = vld [vmem:[#allocation17 + $0x188] sm:$0xff] }
0x119f   : > { %2695 = vmatpush.msrb.mxu0 %v2651_v44 }
0x11a0   : > { %2611 = vmatpush.msrb.mxu2 %v2581_v55  ;;  %2633 = vmatpush.msrb.mxu3 %v2578_v60  ;;  %v2663_v60 = vld [vmem:[#allocation17 + $0x180] sm:$0xff] }
0x11a1   : > { %2696 = vmatpush.msrb.mxu0 %v2650_v47 }
0x11a2   : > { %2612 = vmatpush.msrb.mxu2 %v2579_v57  ;;  %2634 = vmatpush.msrb.mxu3 %v2576_v11  ;;  %v2665_v57 = vld [vmem:[#allocation17 + $0x190] sm:$0xff] }
0x11a3   : > { %2697 = vmatpush.msrb.mxu0 %v2649_v56  ;;  %2717 = vmatpush.msrb.mxu1 %v2665_v57 }
0x11a4   : > { %2613 = vmatpush.msrb.mxu2 %v2577_v59  ;;  %2635 = vmatpush.msrb.mxu3 %v2574_v61  ;;  %v2647_v59 = vld [vmem:[#allocation17 + $0x100] sm:$0xff] }
0x11a5   : > { %2718 = vmatpush.msrb.mxu1 %v2664_v58 }
0x11a6   : > { %2614 = vmatpush.msrb.mxu2 %v2575_v10  ;;  %2636 = vmatpush.msrb.mxu3 %v2572_v63  ;;  %v2983_v10 = vld [vmem:[%s4198_s4 + $0x2] sm:$0x3] }
0x11a7   : > { %2719 = vmatpush.msrb.mxu1 %v2663_v60  ;;  %v2600_v11 = vperm.slane %v2983_v10, 0 }
0x11a8   : > { %2615 = vmatpush.msrb.mxu2 %v2573_v49  ;;  %2637 = vmatpush.msrb.mxu3 %v2570_v1  ;;  %v2601_v49 = vperm.slane %v2983_v10, 1 }
0x11aa   : > { %2616 = vmatpush.msrb.mxu2 %v2571_v62  ;;  %2638 = vmatpush.msrb.mxu3 %v2568_v3  ;;  %v3160_v3 = vld [vmem:[%s4199_s17 + $0x1] ss:$0 sm:$0xff] }
0x11ac   : > { %2617 = vmatpush.msrb.mxu2 %v2569_v0  ;;  %2639 = vmatpush.msrb.mxu3 %v2566_v5 }
0x11ae   : > { %2618 = vmatpush.msrb.mxu2 %v2567_v2 }
0x11b0   : > { %2619 = vmatpush.msrb.mxu2 %v2565_v4 }
0x120c   : > { %v2535_v6 = vpop.xlane.xlu2 %2534 }
0x120d   : > { %v4078_v7 = vmul.f32 0.03125, %v2535_v6 }
0x120e   : > { %v2539_v12 = vpop.xlane.xlu0 %2538 }
0x120f   : > { %v2541_v14 = vmul.f32 %v4078_v7, %v4078_v7  ;;  %v2540_v15 = vmul.f32 0.03125, %v2539_v12  ;;  %v2543_v48 = vsub.f32 %v4073_v40, %v4078_v7  ;;  %v2648_v40 = vld [vmem:[#allocation17 + $0x108] sm:$0xff] }
0x1210   : > { %2698 = vmatpush.msrb.mxu0 %v2648_v40 }
0x1211   : > { %v2542_v19 = vsub.f32 %v2540_v15, %v2541_v14 }
0x1212   : > { %2699 = vmatpush.msrb.mxu0 %v2647_v59 }
0x1213   : > { %v2544_v23 = vadd.f32 1e-05, %v2542_v19 }
0x1215   : > { %3199 = vrsqrt.f32 %v2544_v23  ;;  %vm2551_vm9 = vweird.f32 %v2544_v23 }
0x121b   : > { %v3200_v33 = vpop.eup %3199 }
0x121c   : > { %v2546_v21 = vmul.f32 %v3200_v33, %v2544_v23  ;;  %vm2552_vm0 = vweird.f32 %v3200_v33 }
0x121d   : > { %vm2553_vm10 = vmor %vm2551_vm9, %vm2552_vm0 }
0x121e   : > { %v2547_v39 = vmul.f32 %v3200_v33, %v2546_v21 }
0x1220   : > { %v2548_v43 = vmul.f32 0.5, %v2547_v39 }
0x1222   : > { %v2549_v46 = vsub.f32 1.5, %v2548_v43 }
0x1224   : > { %v2550_v16 = vmul.f32 %v3200_v33, %v2549_v46 }
0x1226   : > { %v2554_v51 = vsel %vm2553_vm10, %v3200_v33, %v2550_v16 }
0x1227   : > { %v2555_v52 = vmul.f32 %v2554_v51, %v2543_v48 }
0x1229   : > { %v2559_v54 = vmul.f32 %v3158_v50, %v2555_v52 }
0x122b   : > { %v2563_v55 = vadd.f32 %v3159_v53, %v2559_v54 }
0x122d   : > { %2620 = vmatmul.f32.vlgmr.msrb.gmra.mxu2 %v2563_v55  ;;  %2640 = vmatmul.f32.vlgmr.msrb.gmra.mxu3 %v2563_v55 }
0x12b0   : > { %v2621_v61 = vpop.f32.mrf.mxu2  ;;  %v2641_v62 = vpop.f32.mrf.mxu3 }
0x12b1   : > { %v2622_v63 = vadd.f32 %v2621_v61, %v2600_v11  ;;  %v2642_v0 = vadd.f32 %v2641_v62, %v2601_v49 }
0x12b3   : > { %v2644_v1 = vmax.f32 %v2622_v63, 0.0  ;;  %v2645_v2 = vmax.f32 %v2642_v0, 0.0 }
0x12b5   : > { %2700 = vmatmul.f32.vlgmr.msrb.gmra.mxu0 %v2644_v1  ;;  %2720 = vmatmul.f32.vlgmr.msrb.gmra.mxu1 %v2645_v2 }
0x1332   : > { %v2701_v4 = vpop.f32.mrf.mxu0  ;;  %v2721_v6 = vpop.f32.mrf.mxu1 }
0x1333   : > { %v2702_v5 = vadd.f32 %v3160_v3, %v2701_v4 }
0x1335   : > { %v2722_v7 = vadd.f32 %v2721_v6, %v2702_v5 }
0x1337   : > { %v2724_v31 = vadd.f32 %v2722_v7, %v2563_v55 }
0x1339   : > { %2729 = vadd.xlane.f32.xlu1 %v2724_v31  ;;  %v2732_v37 = vmul.f32 %v2724_v31, %v2724_v31 }
0x133b   : > { %2733 = vadd.xlane.f32.xlu2 %v2732_v37 }
0x13ac   : > { %v2730_v9 = vpop.xlane.xlu1 %2729 }
0x13ad   : > { %v2731_v12 = vmul.f32 0.03125, %v2730_v9 }
0x13ae   : > { %v2734_v13 = vpop.xlane.xlu2 %2733 }
0x13af   : > { %v2736_v14 = vmul.f32 %v2731_v12, %v2731_v12  ;;  %v2735_v15 = vmul.f32 0.03125, %v2734_v13  ;;  %v2738_v26 = vsub.f32 %v2724_v31, %v2731_v12 }
0x13b1   : > { %v2737_v17 = vsub.f32 %v2735_v15, %v2736_v14 }
0x13b3   : > { %v2739_v18 = vadd.f32 1e-05, %v2737_v17 }
0x13b5   : > { %3201 = vrsqrt.f32 %v2739_v18  ;;  %vm2746_vm12 = vweird.f32 %v2739_v18 }
0x13bb   : > { %v3202_v19 = vpop.eup %3201 }
0x13bc   : > { %v2741_v20 = vmul.f32 %v3202_v19, %v2739_v18  ;;  %vm2747_vm11 = vweird.f32 %v3202_v19 }
0x13bd   : > { %vm2748_vm13 = vmor %vm2746_vm12, %vm2747_vm11 }
0x13be   : > { %v2742_v22 = vmul.f32 %v3202_v19, %v2741_v20 }
0x13c0   : > { %v2743_v23 = vmul.f32 0.5, %v2742_v22 }
0x13c2   : > { %v2744_v24 = vsub.f32 1.5, %v2743_v23 }
0x13c4   : > { %v2745_v25 = vmul.f32 %v3202_v19, %v2744_v24 }
0x13c6   : > { %v2749_v28 = vsel %vm2748_vm13, %v3202_v19, %v2745_v25 }
0x13c7   : > { %v2750_v29 = vmul.f32 %v2749_v28, %v2738_v26 }
0x13c9   : > { %v2754_v32 = vmul.f32 %v3161_v27, %v2750_v29 }
0x13cb   : > { %v2758_v33 = vadd.f32 %v3162_v30, %v2754_v32 }
0x13cd   : > { %2759 = vst [vmem:[%s712_s28] sm:$0xff] %v2758_v33 }
0x13ce   : > { %3535 = shalt.err (!%p3532_p5)
}
0x13cf   : > { %3028 = dma.vmem_to_hbm [thread:$0]  (%p3822_p0), %s2774_s0, 128, %s2776_s2, %s2761_s20  }
0x13d0 PF: > { %s2787_s16 = sand.u32 1, %s3586_s21   ;;  %p4203_p10 = scmp.ge.s32.totalorder %s3598_s24, 2 }
0x13d1   : > { %s2788_s19 = scalar_lea.sflag [#allocation4], %s2787_s16 }
0x13d2   : > { %p3063_p11 = pnand %p4203_p10, %p3830_p6 }
0x13d4   : > { %p3064_p12 = pneg %p3063_p11 }
0x13d6   : > { %3581 = dma.done.wait (%p3064_p12), %s2788_s19, 128  }
0x13d7   : > { %3583 = vsyncadd (%p3064_p12), %s2788_s19, 4294967168  ;;  %s4204_s15 = sld [smem:[#allocation28_spill]]  ;;  %p36_p2 = scmp.ge.s32.totalorder %s3798_s30, 4  }
0x13d8   : > { %s4205_s23 = sld [smem:[#allocation29_spill]]  ;;  %s4206_s21 = smov %s3590_s22 }
0x13d9   : > { %s4208_s24 = smov %s3798_s30  ;;  %38 = sbr.rel (!%p36_p2) target bundleno = 26 (0x1a), region = 224 }
0x13dd   : > { %s4207_s22 = smov %s4204_s15 }
0x13de   :  { %2794 = vsyncpa [#allocation3], 1 }
0x13df   :  { %2796 = vsyncpa [#allocation3 + $0x1], 1 }
0x13e0   :  { %2797 = vsyncpa [#allocation6], 1 }
0x13e1   :  { %2799 = vsyncpa [#allocation6 + $0x1], 1 }
0x13e2   :  { %2800 = vsyncpa [#allocation9], 1 }
0x13e3   :  { %2801 = vsyncpa [#allocation12], 1 }
0x13e4   :  { %2802 = vsyncpa [#allocation15], 1 }
0x13e5   :  { %2803 = vsyncpa [#allocation18], 1 }
0x13e6   :  { %2804 = vsyncpa [#allocation4], 1 }
0x13e7   :  { %2806 = vsyncpa [#allocation4 + $0x1], 1 }

</bundles_post_ra>
